<compile_context>
chip_gen: v7x
topology: tpu7x:2x2x1
jax: 0.10.0
libtpu: 0.0.40
codegen_flags: <defaults>
</compile_context>

<pallas_src>
import functools

import jax
import jax.numpy as jnp
from jax.experimental import pallas as pl
from jax.experimental.pallas import tpu as pltpu


def _round_up(x, m):
    return ((x + m - 1) // m) * m


def _vmem_physical_bytes():
    """Best-effort physical VMEM query (v5e/v6e: 128 MiB, v7x: 64 MiB)."""
    try:
        info = pltpu.get_tpu_info()
        for attr in ("vmem_capacity_bytes", "vmem_size_bytes", "vmem_bytes"):
            v = getattr(info, attr, None)
            if v:
                return int(v)
    except Exception:
        pass
    return 64 * 1024 * 1024   # conservative (v7x) fallback


# --------------------------------------------------------------------------- #
# Kernels
# --------------------------------------------------------------------------- #
def _tft_embed_kernel_blockdiag(reg_ref, cat_ref, w_ref, b_ref, tbl_ref, out_ref,
                                *, nc, cpad):
    """One lane-dense chunk of the flattened B*T axis, all variables at once.

    reg_ref : (NR, S)              f32  regular inputs, variable-major
    cat_ref : (NC, S)              i32  categorical indices, variable-major
    w_ref   : (NR, H)              f32  Linear(1->H).weight[:, 0]
    b_ref   : (NR, H)              f32  Linear(1->H).bias
    tbl_ref : (NC*H, NC*Cpad)      f32  block-diagonal merged embedding tables
    out_ref : (NR+NC, H, S)        f32  combined embeddings, variable-major
    """
    NR = reg_ref.shape[0]
    H = w_ref.shape[1]
    S = out_ref.shape[2]

    # Regular variables: all NR Linear(1->H) at once as a broadcast FMA, in the
    # lane-dense (var, H, S) layout (unmasked full-width stores).
    out_ref[0:NR] = (w_ref[...][:, :, None] * reg_ref[...][:, None, :]
                     + b_ref[...][:, :, None])

    # Categorical variables: ONE block-diagonal one-hot matmul on the MXU.
    # Only a 2-D iota is materialized; the compare broadcasts it.
    idx = cat_ref[...]                                            # (NC, S)
    iota_c = jax.lax.broadcasted_iota(jnp.int32, (cpad, S), 0)    # (Cpad, S)
    onehot = (iota_c[None, :, :] == idx[:, None, :]).astype(jnp.float32)
    onehot = onehot.reshape(nc * cpad, S)      # layout no-op: cpad % 128 == 0
    # HIGHEST keeps the lookup bit-exact (nn.Embedding gather semantics).
    # TODO(synk): per-operand precision (table HIGHEST, exact 0/1 one-hot
    # DEFAULT) or a 3x-bf16 table split would halve the MXU passes for big Cpad.
    res = jax.lax.dot_general(
        tbl_ref[...], onehot,
        dimension_numbers=(((1,), (0,)), ((), ())),
        preferred_element_type=jnp.float32,
        precision=jax.lax.Precision.HIGHEST)                      # (NC*H, S)
    out_ref[NR:NR + nc] = res.reshape(nc, H, S)


def _tft_embed_kernel_batched(reg_ref, cat_ref, w_ref, b_ref, tblT_ref, out_ref):
    """Fallback path when the block-diagonal merged table would be too large.

    tblT_ref : (NC, H, Cpad) per-variable tables; batched one-hot einsum.
    """
    NR = reg_ref.shape[0]
    NC, _, Cpad = tblT_ref.shape
    S = out_ref.shape[2]

    out_ref[0:NR] = (w_ref[...][:, :, None] * reg_ref[...][:, None, :]
                     + b_ref[...][:, :, None])

    idx = cat_ref[...]                                            # (NC, S)
    iota_c = jax.lax.broadcasted_iota(jnp.int32, (Cpad, S), 0)    # 2-D iota only
    onehot = (iota_c[None, :, :] == idx[:, None, :]).astype(jnp.float32)
    out_ref[NR:NR + NC] = jnp.einsum(
        'vhc,vcs->vhs', tblT_ref[...], onehot,
        preferred_element_type=jnp.float32,
        precision=jax.lax.Precision.HIGHEST)
    # TODO(synk): for very large Cpad (>~1-2K) a scalar-prefetch gather path
    # (DMA only the selected table rows) beats the one-hot matmul entirely.


# --------------------------------------------------------------------------- #
# Wrapper: one pallas_call computing all per-variable embeddings
# --------------------------------------------------------------------------- #
def tft_embed_all(regular_inputs, categorical_inputs, reg_w, reg_b, cat_tables):
    """Returns emb of shape (NR + NC, H, B, T): regular rows first, then cat."""
    B, T, NR = regular_inputs.shape
    NC = categorical_inputs.shape[-1]
    C, H = cat_tables.shape[1], cat_tables.shape[2]
    V = NR + NC
    BT = B * T

    # Table prep: pad category axis to a multiple of 128 with zero rows.
    Cpad = _round_up(max(C, 1), 128)
    tbl = cat_tables if Cpad == C else jnp.pad(
        cat_tables, ((0, 0), (0, Cpad - C), (0, 0)))
    tblT = jnp.transpose(tbl, (0, 2, 1))                          # (NC, H, Cpad)

    # ---- generation-aware VMEM budgeting -----------------------------------
    physical = _vmem_physical_bytes()
    budget = int(physical * 0.6)          # headroom for compiler-internal scratch

    bd_table_bytes = NC * H * NC * Cpad * 4
    use_blockdiag = bd_table_bytes <= max(budget // 8, 4 << 20)
    if use_blockdiag:
        eye = jnp.eye(NC, dtype=tblT.dtype)
        tbl_arg = jnp.einsum('vw,vhc->vhwc', eye, tblT).reshape(NC * H, NC * Cpad)
        tbl_spec = pl.BlockSpec((NC * H, NC * Cpad), lambda c: (0, 0))
        tbl_bytes = bd_table_bytes
        kernel = functools.partial(_tft_embed_kernel_blockdiag, nc=NC, cpad=Cpad)
    else:
        tbl_arg = tblT
        tbl_spec = pl.BlockSpec((NC, H, Cpad), lambda c: (0, 0, 0))
        tbl_bytes = NC * H * Cpad * 4
        kernel = _tft_embed_kernel_batched

    # Full per-chunk footprint: sized PER S-column, double-buffered blocks and
    # in-kernel intermediates included (this also feeds vmem_limit_bytes).
    per_col = (2 * V * H * 4              # output block, double-buffered
               + 2 * (NR + NC) * 4        # input chunks, double-buffered
               + NC * Cpad * 4            # f32 one-hot
               + NC * Cpad * 4            # broadcast-compare temp slack
               + V * H * 4)               # pre-store result temps
    const = 2 * (2 * NR * H * 4) + 2 * tbl_bytes + (2 << 20)   # w, b, table, misc

    S = max(128, (budget - const) // per_col // 128 * 128)
    S = min(S, _round_up(BT, 128))
    if _round_up(BT, 128) > 128:
        # Keep >= 2 chunks so the "parallel" grid axis can shard across v7x's
        # two TensorCores and the DMA pipeline has >= 2 steps to overlap.
        S = min(S, max(128, _round_up(-(-BT // 2), 128)))
    BT_pad = _round_up(BT, S)
    num_chunks = BT_pad // S

    need = const + per_col * S
    vmem_limit = int(min(physical - (4 << 20), need + (8 << 20)))
    vmem_limit = max(vmem_limit, min(32 << 20, physical // 2))

    # Variable-major, time-flattened inputs (tiny transposes of the raw inputs).
    reg_t = jnp.transpose(regular_inputs, (2, 0, 1)).reshape(NR, BT)
    cat_t = jnp.transpose(categorical_inputs, (2, 0, 1)).reshape(NC, BT)
    cat_t = cat_t.astype(jnp.int32)
    if BT_pad != BT:
        reg_t = jnp.pad(reg_t, ((0, 0), (0, BT_pad - BT)))
        cat_t = jnp.pad(cat_t, ((0, 0), (0, BT_pad - BT)))

    emb = pl.pallas_call(
        kernel,
        out_shape=jax.ShapeDtypeStruct((V, H, BT_pad), jnp.float32),
        grid=(num_chunks,),
        in_specs=[
            pl.BlockSpec((NR, S), lambda c: (0, c)),
            pl.BlockSpec((NC, S), lambda c: (0, c)),
            pl.BlockSpec((NR, H), lambda c: (0, 0)),
            pl.BlockSpec((NR, H), lambda c: (0, 0)),
            tbl_spec,
        ],
        out_specs=pl.BlockSpec((V, H, S), lambda c: (0, 0, c)),
        compiler_params=pltpu.CompilerParams(
            dimension_semantics=("parallel",),
            vmem_limit_bytes=vmem_limit),
    )(reg_t, cat_t, reg_w, reg_b, tbl_arg)

    # TODO(synk): if downstream TFT blocks run in bf16, store bf16 here instead
    # (halves the HBM traffic of this store-bound kernel).
    return emb[:, :, :BT].reshape(V, H, B, T)


# --------------------------------------------------------------------------- #
# Module forward (grouping done on contiguous row slices of the kernel output)
# --------------------------------------------------------------------------- #
def _dedup(seq):
    seen, out = set(), []
    for x in seq:
        if x not in seen:
            seen.add(x)
            out.append(x)
    return out


def _take_rows(emb, rows):
    """Gather rows along axis 0 using contiguous slices for ascending runs."""
    pieces, i = [], 0
    while i < len(rows):
        j = i
        while j + 1 < len(rows) and rows[j + 1] == rows[j] + 1:
            j += 1
        pieces.append(jax.lax.slice_in_dim(emb, rows[i], rows[j] + 1, axis=0))
        i = j + 1
    return pieces[0] if len(pieces) == 1 else jnp.concatenate(pieces, axis=0)


def tft_embedding_forward(regular_inputs, categorical_inputs, reg_w, reg_b,
                          cat_tables, cfg):
    """Reproduces TFTEmbedding.forward: returns (unknown, known, obs, static)."""
    NR = cfg["num_regular_variables"]
    NC = cfg["num_categorical_variables"]
    known_reg_idx = cfg["known_regular_input_idx"]
    known_cat_idx = cfg["known_categorical_input_idx"]
    static_idx = cfg["static_input_idx"]
    obs_idx = cfg["input_obs_idx"]

    # Group membership (same selection logic and ordering as the PyTorch module).
    unk_reg = [i for i in range(NR) if i not in known_reg_idx and i not in obs_idx]
    unk_cat = [j for j in range(NC) if j not in known_cat_idx and j not in obs_idx]
    k_reg = [i for i in known_reg_idx if i not in static_idx]
    k_cat = [j for j in known_cat_idx if (j + NR) not in static_idx]
    obs_reg = list(obs_idx)
    st_reg = [i for i in range(NR) if i in static_idx]
    st_cat = [j for j in range(NC) if (j + NR) in static_idx]

    # Reorder the variable axis so each output group is (nearly) contiguous in
    # the kernel's (V, H, B, T) buffer -> group extraction is a cheap slice.
    reg_order = _dedup(unk_reg + k_reg + obs_reg + st_reg + list(range(NR)))
    cat_order = _dedup(unk_cat + k_cat + st_cat + list(range(NC)))
    reg_pos = {v: r for r, v in enumerate(reg_order)}
    cat_pos = {v: NR + r for r, v in enumerate(cat_order)}

    reg_in = regular_inputs[..., jnp.asarray(reg_order)]
    cat_in = categorical_inputs[..., jnp.asarray(cat_order)]
    w_p = reg_w[jnp.asarray(reg_order)]
    b_p = reg_b[jnp.asarray(reg_order)]
    tbl_p = cat_tables[jnp.asarray(cat_order)]

    emb = tft_embed_all(reg_in, cat_in, w_p, b_p, tbl_p)      # (V, H, B, T)

    def group_time(reg_vars, cat_vars):
        rows = [reg_pos[i] for i in reg_vars] + [cat_pos[j] for j in cat_vars]
        if not rows:
            return None
        g = _take_rows(emb, rows)                  # (Ng, H, B, T)
        return jnp.transpose(g, (2, 3, 1, 0))      # (B, T, H, Ng)

    def group_static(reg_vars, cat_vars):
        rows = [reg_pos[i] for i in reg_vars] + [cat_pos[j] for j in cat_vars]
        if not rows:
            return None
        g = _take_rows(emb, rows)[:, :, :, 0]      # (Ng, H, B), time step 0
        return jnp.transpose(g, (2, 0, 1))         # (B, Ng, H)

    unknown_inputs = group_time(unk_reg, unk_cat)
    known_combined = group_time(k_reg, k_cat)
    obs_inputs = group_time(obs_reg, [])
    static_inputs = group_static(st_reg, st_cat) if static_idx else None
    return unknown_inputs, known_combined, obs_inputs, static_inputs


# --------------------------------------------------------------------------- #
# Demo + correctness check
# --------------------------------------------------------------------------- #
if __name__ == "__main__":
    B, T, H = 2, 8, 32
    NR, NC = 4, 3
    category_counts = [6, 4, 5]
    cfg = dict(
        num_regular_variables=NR,
        num_categorical_variables=NC,
        known_regular_input_idx=[1],
        known_categorical_input_idx=[0, 1],
        static_input_idx=[3, 5],   # regular var 3, categorical var 1 (= 5 - NR)
        input_obs_idx=[0],
    )

    key = jax.random.PRNGKey(0)
    k1, k2, k3, k4, k5 = jax.random.split(key, 5)

    regular_inputs = jax.random.normal(k1, (B, T, NR), dtype=jnp.float32)
    cat_cols = [jax.random.randint(jax.random.fold_in(k2, j), (B, T), 0, c)
                for j, c in enumerate(category_counts)]
    categorical_inputs = jnp.stack(cat_cols, axis=-1).astype(jnp.int32)

    # Deterministic synthetic parameters (no checkpoint).
    reg_w = 0.1 * jax.random.normal(k3, (NR, H), dtype=jnp.float32)   # Linear(1,H).weight[:, 0]
    reg_b = 0.1 * jax.random.normal(k4, (NR, H), dtype=jnp.float32)   # Linear(1,H).bias
    C = max(category_counts)
    cat_tables = 0.1 * jax.random.normal(k5, (NC, C, H), dtype=jnp.float32)
    row_iota = jnp.arange(C)[None, :, None]
    counts = jnp.asarray(category_counts)[:, None, None]
    cat_tables = jnp.where(row_iota < counts, cat_tables, 0.0)  # zero unused rows

    outs = tft_embedding_forward(regular_inputs, categorical_inputs,
                                 reg_w, reg_b, cat_tables, cfg)
    outs = jax.block_until_ready(outs)
    unknown_inputs, known_combined, obs_inputs, static_inputs = outs

    # --- correctness check against a plain-JAX reference (exact gather) -------
    reg_emb_ref = jnp.einsum('bti,ih->ibth', regular_inputs, reg_w) + reg_b[:, None, None, :]
    cat_emb_ref = jnp.stack(
        [cat_tables[j][categorical_inputs[:, :, j]] for j in range(NC)], axis=0)

    def ref_forward():
        known_reg, known_cat = cfg["known_regular_input_idx"], cfg["known_categorical_input_idx"]
        static_idx, obs_idx = cfg["static_input_idx"], cfg["input_obs_idx"]
        unk_reg = [i for i in range(NR) if i not in known_reg and i not in obs_idx]
        unk_cat = [j for j in range(NC) if j not in known_cat and j not in obs_idx]
        unk = jnp.stack([reg_emb_ref[i] for i in unk_reg] +
                        [cat_emb_ref[j] for j in unk_cat], axis=-1)
        k_reg = [i for i in known_reg if i not in static_idx]
        k_cat = [j for j in known_cat if (j + NR) not in static_idx]
        kn = jnp.stack([reg_emb_ref[i] for i in k_reg] +
                       [cat_emb_ref[j] for j in k_cat], axis=-1)
        ob = jnp.stack([reg_emb_ref[i] for i in obs_idx], axis=-1)
        s_reg = [i for i in range(NR) if i in static_idx]
        s_cat = [j for j in range(NC) if (j + NR) in static_idx]
        st = jnp.stack([reg_emb_ref[i][:, 0, :] for i in s_reg] +
                       [cat_emb_ref[j][:, 0, :] for j in s_cat], axis=1)
        return unk, kn, ob, st

    refs = ref_forward()
    for got, want in zip((unknown_inputs, known_combined, obs_inputs, static_inputs), refs):
        assert got.shape == want.shape, (got.shape, want.shape)
        assert jnp.allclose(got, want, atol=1e-5, rtol=1e-5)

    # Expected shapes: unknown (B,T,H,3), known (B,T,H,2), obs (B,T,H,1), static (B,2,H)
    print("KERNEL_OK")
</pallas_src>

<mosaic_0001>
module attributes {stable_mosaic.version = 11 : i64} {
  func.func @_tft_embed_kernel_blockdiag(%arg0: i32, %arg1: memref<4x128xf32, #tpu.memory_space<vmem>>, %arg2: memref<3x128xi32, #tpu.memory_space<vmem>>, %arg3: memref<4x32xf32, #tpu.memory_space<vmem>>, %arg4: memref<4x32xf32, #tpu.memory_space<vmem>>, %arg5: memref<96x384xf32, #tpu.memory_space<vmem>>, %arg6: memref<7x32x128xf32, #tpu.memory_space<vmem>>) attributes {dimension_semantics = [#tpu.dimension_semantics<parallel>], iteration_bounds = array<i64: 1>, scalar_prefetch = 0 : i64, scratch_operands = 0 : i64, tpu.core_type = #tpu.core_type<tc>, window_params = [{transform_indices = @transform_0, window_bounds = array<i64: 4, 128>}, {transform_indices = @transform_1, window_bounds = array<i64: 3, 128>}, {pipeline_mode = #tpu.pipeline_mode<synchronous>, transform_indices = @transform_2, window_bounds = array<i64: 4, 32>}, {pipeline_mode = #tpu.pipeline_mode<synchronous>, transform_indices = @transform_3, window_bounds = array<i64: 4, 32>}, {pipeline_mode = #tpu.pipeline_mode<synchronous>, transform_indices = @transform_4, window_bounds = array<i64: 96, 384>}, {transform_indices = @transform_5, window_bounds = array<i64: 7, 32, 128>}]} {
    %c0 = arith.constant 0 : index
    %c0_0 = arith.constant 0 : index
    %0 = vector.load %arg3[%c0, %c0_0] : memref<4x32xf32, #tpu.memory_space<vmem>>, vector<4x32xf32>
    %1 = vector.shape_cast %0 : vector<4x32xf32> to vector<4x32x1xf32>
    %c0_1 = arith.constant 0 : index
    %c0_2 = arith.constant 0 : index
    %2 = vector.load %arg1[%c0_1, %c0_2] : memref<4x128xf32, #tpu.memory_space<vmem>>, vector<4x128xf32>
    %3 = vector.shape_cast %2 : vector<4x128xf32> to vector<4x1x128xf32>
    %4 = vector.broadcast %1 : vector<4x32x1xf32> to vector<4x32x128xf32>
    %5 = vector.broadcast %3 : vector<4x1x128xf32> to vector<4x32x128xf32>
    %6 = arith.mulf %4, %5 : vector<4x32x128xf32>
    %c0_3 = arith.constant 0 : index
    %c0_4 = arith.constant 0 : index
    %7 = vector.load %arg4[%c0_3, %c0_4] : memref<4x32xf32, #tpu.memory_space<vmem>>, vector<4x32xf32>
    %8 = vector.shape_cast %7 : vector<4x32xf32> to vector<4x32x1xf32>
    %9 = vector.broadcast %8 : vector<4x32x1xf32> to vector<4x32x128xf32>
    %10 = arith.addf %6, %9 : vector<4x32x128xf32>
    %c0_5 = arith.constant 0 : index
    %c0_6 = arith.constant 0 : index
    %c0_7 = arith.constant 0 : index
    %11 = vector.load %arg6[%c0_5, %c0_6, %c0_7] : memref<7x32x128xf32, #tpu.memory_space<vmem>>, vector<4x32x128xf32>
    tpu.vector_store %arg6[%c0_5, %c0_6, %c0_7], %10 {strides = array<i32>} : memref<7x32x128xf32, #tpu.memory_space<vmem>>, vector<4x32x128xf32>,
    %c0_8 = arith.constant 0 : index
    %c0_9 = arith.constant 0 : index
    %12 = vector.load %arg2[%c0_8, %c0_9] : memref<3x128xi32, #tpu.memory_space<vmem>>, vector<3x128xi32>
    %13 = tpu.iota {dimensions = array<i32: 0>} : vector<128x128xi32>
    %14 = vector.shape_cast %13 : vector<128x128xi32> to vector<1x128x128xi32>
    %15 = vector.shape_cast %12 : vector<3x128xi32> to vector<3x1x128xi32>
    %16 = vector.broadcast %14 : vector<1x128x128xi32> to vector<3x128x128xi32>
    %17 = vector.broadcast %15 : vector<3x1x128xi32> to vector<3x128x128xi32>
    %18 = arith.cmpi eq, %16, %17 : vector<3x128x128xi32>
    %19 = arith.extui %18 : vector<3x128x128xi1> to vector<3x128x128xi32>
    %20 = arith.sitofp %19 : vector<3x128x128xi32> to vector<3x128x128xf32>
    %21 = vector.shape_cast %20 : vector<3x128x128xf32> to vector<384x128xf32>
    %c0_10 = arith.constant 0 : index
    %c0_11 = arith.constant 0 : index
    %22 = vector.load %arg5[%c0_10, %c0_11] : memref<96x384xf32, #tpu.memory_space<vmem>>, vector<96x384xf32>
    %cst = arith.constant dense<0.000000e+00> : vector<96x128xf32>
    %23 = tpu.matmul %22, %21, %cst {dimension_numbers = #tpu.dot_dimension_numbers<[1], [0], [0], [1], [0, 0, 1, 1], [], []>, precision = #tpu.contract_precision<fp32>} : vector<96x384xf32>, vector<384x128xf32>, vector<96x128xf32> -> vector<96x128xf32>
    %24 = vector.shape_cast %23 : vector<96x128xf32> to vector<3x32x128xf32>
    %c4 = arith.constant 4 : index
    %c0_12 = arith.constant 0 : index
    %c0_13 = arith.constant 0 : index
    %25 = vector.load %arg6[%c4, %c0_12, %c0_13] : memref<7x32x128xf32, #tpu.memory_space<vmem>>, vector<3x32x128xf32>
    tpu.vector_store %arg6[%c4, %c0_12, %c0_13], %24 {strides = array<i32>} : memref<7x32x128xf32, #tpu.memory_space<vmem>>, vector<3x32x128xf32>,
    return
  }
  func.func @transform_0(%arg0: i32) -> (i32, i32) {
    %c0_i32 = arith.constant 0 : i32
    %c0_i32_0 = arith.constant 0 : i32
    return %c0_i32, %arg0 : i32, i32
  }
  func.func @transform_1(%arg0: i32) -> (i32, i32) {
    %c0_i32 = arith.constant 0 : i32
    %c0_i32_0 = arith.constant 0 : i32
    return %c0_i32, %arg0 : i32, i32
  }
  func.func @transform_2(%arg0: i32) -> (i32, i32) {
    %c0_i32 = arith.constant 0 : i32
    %c0_i32_0 = arith.constant 0 : i32
    %c0_i32_1 = arith.constant 0 : i32
    return %c0_i32, %c0_i32_0 : i32, i32
  }
  func.func @transform_3(%arg0: i32) -> (i32, i32) {
    %c0_i32 = arith.constant 0 : i32
    %c0_i32_0 = arith.constant 0 : i32
    %c0_i32_1 = arith.constant 0 : i32
    return %c0_i32, %c0_i32_0 : i32, i32
  }
  func.func @transform_4(%arg0: i32) -> (i32, i32) {
    %c0_i32 = arith.constant 0 : i32
    %c0_i32_0 = arith.constant 0 : i32
    %c0_i32_1 = arith.constant 0 : i32
    return %c0_i32, %c0_i32_0 : i32, i32
  }
  func.func @transform_5(%arg0: i32) -> (i32, i32, i32) {
    %c0_i32 = arith.constant 0 : i32
    %c0_i32_0 = arith.constant 0 : i32
    %c0_i32_1 = arith.constant 0 : i32
    return %c0_i32, %c0_i32_0, %arg0 : i32, i32, i32
  }
}

</mosaic_0001>

<bundles_post_ra>
// kernel: tpu_custom_call.1
= control target key start
LH: loop header
LB: loop body
LE: loop exit
PB: predicated region body
PF: predicated region fallthrough
CT: control target
= control target key end

     0   :  { %10 = vsyncpa [#allocation3], 0  ;;  %s6747_s0 = inlined_call_operand.hbm [shape: f32[4,128], index: 0, kind: input, shape index: {}]   ;;  %s6748_s1 = inlined_call_operand.hbm [shape: s32[3,128], index: 1, kind: input, shape index: {}]   ;;  %s6749_s2 = inlined_call_operand.vmem [shape: f32[4,32], index: 2, kind: input, shape index: {}]   ;;  %s6750_s3 = inlined_call_operand.vmem [shape: f32[4,32], index: 3, kind: input, shape index: {}]   ;;  %s6751_s4 = inlined_call_operand.hbm [shape: f32[96,384], index: 4, kind: input, shape index: {}]   ;;  %s6752_s5 = inlined_call_operand.hbm [shape: f32[7,32,128], index: 5, kind: output, shape index: {}]  }
   0x1   :  { %11 = vsyncpa [#allocation6], 0 }
   0x2   :  { %12 = vsyncpa [#allocation4], 0  ;;  %s4793_s18 = smov [#allocation5]   ;;  %s4794_s20 = smov [#allocation2]  }
   0x3   :  { %s29_s19 = sshll.u32 %s4793_s18, 4  ;;  %s19_s21 = sshll.u32 %s4794_s20, 4  ;;  %s30_s19 = int_to_ptr.vmem [resolvable:$true] %s29_s19  ;;  %s20_s21 = int_to_ptr.vmem [resolvable:$true] %s19_s21 }
   0x4   :  { %s4699_s24 = scalar_lea.hbm %s6748_s1, 64 }
   0x5   :  { %p4700_p0 = scmp.ne.s32.totalorder %s6748_s1, %s4699_s24  ;;  %p4703_p1 = scmp.lt.u32.totalorder %s4699_s24, %s6748_s1 }
   0x7   :  { %p4705_p2 = pnand %p4703_p1, %p4700_p0 }
   0x9   :  { %4708 = shalt.err (!%p4705_p2)
}
   0xa   :  { %s4709_s29 = scalar_lea.vmem %s30_s19, 64  ;;  %p4714_p4 = scmp.lt.s32.totalorder %s30_s19, %s30_s19 }
   0xb   :  { %p4710_p3 = scmp.ne.s32.totalorder %s30_s19, %s4709_s29  ;;  %p4715_p5 = scmp.lt.s32.totalorder %s4709_s29, %s4709_s29 }
   0xd   :  { %p4716_p6 = por %p4715_p5, %p4714_p4 }
   0xf   :  { %p4717_p7 = pnand %p4716_p6, %p4710_p3 }
  0x11   :  { %4720 = shalt.err (!%p4717_p7)
}
  0x12   :  { %32 = dma.hbm_to_vmem [thread:$0]  %s6748_s1, 64, %s30_s19, [#allocation6]  }
  0x13   :  { %s4721_s9 = scalar_lea.hbm %s6747_s0, 64 }
  0x14   :  { %p4722_p8 = scmp.ne.s32.totalorder %s6747_s0, %s4721_s9  ;;  %p4725_p9 = scmp.lt.u32.totalorder %s4721_s9, %s6747_s0 }
  0x16   :  { %p4727_p10 = pnand %p4725_p9, %p4722_p8 }
  0x18   :  { %4730 = shalt.err (!%p4727_p10)
}
  0x19   :  { %s4731_s14 = scalar_lea.vmem %s20_s21, 64  ;;  %p4736_p12 = scmp.lt.s32.totalorder %s20_s21, %s20_s21 }
  0x1a   :  { %p4732_p11 = scmp.ne.s32.totalorder %s20_s21, %s4731_s14  ;;  %p4737_p13 = scmp.lt.s32.totalorder %s4731_s14, %s4731_s14 }
  0x1c   :  { %p4738_p0 = por %p4737_p13, %p4736_p12 }
  0x1e   :  { %p4739_p1 = pnand %p4738_p0, %p4732_p11 }
  0x20   :  { %4742 = shalt.err (!%p4739_p1)
}
  0x21   :  { %22 = dma.hbm_to_vmem [thread:$0]  %s6747_s0, 64, %s20_s21, [#allocation3]  }
  0x22   :  { %s4795_s16 = smov [#allocation7]   ;;  %s4743_s20 = scalar_lea.hbm %s6751_s4, 4608 }
  0x23   :  { %s42_s17 = sshll.u32 %s4795_s16, 4  ;;  %p4744_p2 = scmp.ne.s32.totalorder %s6751_s4, %s4743_s20  ;;  %s43_s17 = int_to_ptr.vmem [resolvable:$true] %s42_s17 }
  0x24   :  { %p4747_p3 = scmp.lt.u32.totalorder %s4743_s20, %s6751_s4 }
  0x26   :  { %p4749_p4 = pnand %p4747_p3, %p4744_p2 }
  0x28   :  { %4752 = shalt.err (!%p4749_p4)
}
  0x29   :  { %s4753_s26 = scalar_lea.vmem %s43_s17, 4608  ;;  %p4758_p6 = scmp.lt.s32.totalorder %s43_s17, %s43_s17 }
  0x2a   :  { %p4754_p5 = scmp.ne.s32.totalorder %s43_s17, %s4753_s26  ;;  %p4759_p7 = scmp.lt.s32.totalorder %s4753_s26, %s4753_s26 }
  0x2c   :  { %p4760_p8 = por %p4759_p7, %p4758_p6 }
  0x2e   :  { %p4761_p9 = pnand %p4760_p8, %p4754_p5 }
  0x30   :  { %4764 = shalt.err (!%p4761_p9)
}
  0x31   :  { %s4796_s0 = smov 384   ;;  %s4797_s21 = smov 24  }
  0x32   :  { %48 = dma.hbm_to_vmem [thread:$0]  %s6751_s4, 4608, %s43_s17, [#allocation6], %s4796_s0, %s4796_s0, %s4797_s21  }
  0x33   :  { %4787 = dma.done.wait [#allocation3], 64  }
  0x34   :  { %4788 = vsyncadd [#allocation3], 4294967232 }
  0x35   :  { %4789 = dma.done.wait [#allocation6], 4672  }
  0x36   :  { %4790 = vsyncadd [#allocation6], 4294962624  ;;  %v59_v0 = vlaneseq  ;;  %v4798_v1 = vmov 1966171168   ;;  %v504_v24 = vld [vmem:[#allocation7 + $0x8] sm:$0xff]  ;;  %v503_v25 = vld [vmem:[#allocation7] sm:$0xff] }
  0x37   :  { %v146_v2 = vunpack.c.l.s4 %v4798_v1  ;;  %v3163_v17 = vld.sshfl [vmem:[#allocation5] sm:$0x13 pattern:$0x75316420]  ;;  %v507_v26 = vld [vmem:[#allocation7 + $0x20] sm:$0xff]  ;;  %v4924_v28 = vand.u32 4294901760, %v504_v24 }
  0x38   :  { %v4870_v3 = vshrl.u32 %v59_v0, 7  ;;  %v331_v20 = vcombine.high %v3163_v17, %v3163_v17  ;;  %v4926_v29 = vand.u32 4294901760, %v503_v25  ;;  %v4928_v30 = vand.u32 4294901760, %v507_v26  ;;  %v4930_v31 = vld [vmem:[#allocation7 + $0x18] sm:$0xff] }
  0x39   :  { %v147_v4 = vunpack.c.0.s8 %v146_v2  ;;  %7049 = vst [vmem:[#allocation25_spill] sm:$0xff] %v4924_v28  ;;  %v4932_v32 = vld [vmem:[#allocation7 + $0x38] sm:$0xff]  ;;  %v4939_v36 = vand.u32 4294901760, %v4930_v31  ;;  %v4942_v37 = vsub.f32 %v504_v24, %v4924_v28  ;;  %1752 = vmatprep.mubr.f32.mxu0 %v4924_v28  ;;  %v6763_v43 = vmov 0.0  }
  0x3a   :  { %7036 = vst [vmem:[#allocation12_spill] sm:$0xff] %v4870_v3  ;;  %v4873_v5 = vsub.s32 0, %v4870_v3  ;;  %v4876_v6 = vadd.s32 8, %v4870_v3  ;;  %v4879_v7 = vadd.s32 16, %v4870_v3  ;;  %v4882_v8 = vadd.s32 24, %v4870_v3  ;;  %7050 = vst [vmem:[#allocation26_spill] sm:$0xff] %v4926_v29 }
  0x3b   :  { %v4885_v9 = vsub.s32 %v147_v4, %v4870_v3  ;;  %v4888_v10 = vadd.s32 32, %v4870_v3  ;;  %v4891_v11 = vadd.s32 40, %v4870_v3  ;;  %v4894_v12 = vadd.s32 48, %v4870_v3  ;;  %7051 = vst [vmem:[#allocation27_spill] sm:$0xff] %v4928_v30  ;;  %7052 = vst [vmem:[#allocation28_spill] sm:$0xff] %v4939_v36 }
  0x3c   :  { %7037 = vst [vmem:[#allocation13_spill] sm:$0xff] %v4873_v5  ;;  %v4897_v13 = vadd.s32 56, %v4870_v3  ;;  %v4900_v14 = vadd.s32 64, %v4870_v3  ;;  %v4903_v15 = vadd.s32 72, %v4870_v3  ;;  %v4906_v16 = vadd.s32 80, %v4870_v3  ;;  %7053 = vst [vmem:[#allocation29_spill] sm:$0xff] %v4942_v37 }
  0x3d   :  { %7038 = vst [vmem:[#allocation14_spill] sm:$0xff] %v4885_v9  ;;  %7039 = vst [vmem:[#allocation15_spill] sm:$0xff] %v4894_v12  ;;  %v4909_v18 = vadd.s32 88, %v4870_v3  ;;  %v4912_v19 = vadd.s32 96, %v4870_v3  ;;  %v338_v21 = vrot.slane %v3163_v17, %v4885_v9  ;;  %v4916_v22 = vadd.s32 104, %v4870_v3 }
  0x3e   :  { %7040 = vst [vmem:[#allocation16_spill] sm:$0xff] %v4897_v13  ;;  %7041 = vst [vmem:[#allocation17_spill] sm:$0xff] %v4900_v14  ;;  %v4919_v23 = vadd.s32 112, %v4870_v3  ;;  %v4922_v27 = vadd.s32 120, %v4870_v3  ;;  %v345_v33 = vrot.slane %v331_v20, %v4885_v9  ;;  %v4945_v38 = vsub.f32 %v503_v25, %v4926_v29 }
  0x3f   :  { %7042 = vst [vmem:[#allocation18_spill] sm:$0xff] %v4903_v15  ;;  %7043 = vst [vmem:[#allocation19_spill] sm:$0xff] %v4906_v16  ;;  %v346_v34 = vcombine.high %v338_v21, %v338_v21  ;;  %v4936_v35 = vrot.slane %v338_v21, %v4873_v5  ;;  %v4948_v39 = vsub.f32 %v507_v26, %v4928_v30  ;;  %v4952_v40 = vand.u32 4294901760, %v4932_v32 }
  0x40   :  { %7044 = vst [vmem:[#allocation20_spill] sm:$0xff] %v4909_v18  ;;  %7045 = vst [vmem:[#allocation21_spill] sm:$0xff] %v4912_v19  ;;  %v4955_v41 = vrot.slane %v345_v33, %v4873_v5  ;;  %v7057_v46 = vmov 0  ;;  %v7062_v51 = vmov 0  ;;  %v6765_v52 = vmov 1.0|1.0  }
  0x41   :  { %7046 = vst [vmem:[#allocation22_spill] sm:$0xff] %v4916_v22  ;;  %7047 = vst [vmem:[#allocation23_spill] sm:$0xff] %v4919_v23  ;;  %v4958_v42 = vrot.slane %v346_v34, %v4873_v5  ;;  %vm359_vm0 = vcmp.eq.s32.totalorder %v4870_v3, %v4936_v35  ;;  %vm360_vm1 = vcmp.eq.s32.totalorder %v4876_v6, %v4936_v35  ;;  %v7067_v57 = vmov 0 }
  0x42   :  { %7048 = vst [vmem:[#allocation24_spill] sm:$0xff] %v4922_v27  ;;  %7054 = vst [vmem:[#allocation30_spill] sm:$0xff] %v4945_v38  ;;  %v3164_v44 = vsel %vm359_vm0, 1.0, %v6763_v43  ;;  %v3165_v45 = vsel %vm360_vm1, 1.0, %v6763_v43  ;;  %vm361_vm2 = vcmp.eq.s32.totalorder %v4879_v7, %v4936_v35  ;;  %vm362_vm3 = vcmp.eq.s32.totalorder %v4882_v8, %v4936_v35 }
  0x43   :  { %7055 = vst [vmem:[#allocation31_spill] sm:$0xff] %v4948_v39  ;;  %7056 = vst [vmem:[#allocation32_spill] sm:$0xff] %v4952_v40  ;;  %vm375_vm4 = vcmp.eq.s32.totalorder %v4870_v3, %v4955_v41  ;;  %vm376_vm5 = vcmp.eq.s32.totalorder %v4876_v6, %v4955_v41  ;;  %v4978_v47 = vsub.f32 %v3164_v44, %v3164_v44  ;;  %v3166_v60 = vsel %vm361_vm2, 1.0, %v6763_v43 }
  0x44   :  { %vm4974_vm6 = vmpackc.low %vm360_vm1, %vm359_vm0  ;;  %v4980_v48 = vsub.f32 %v3165_v45, %v3165_v45  ;;  %v3180_v49 = vsel %vm375_vm4, 1.0, %v6763_v43  ;;  %v3181_v50 = vsel %vm376_vm5, 1.0, %v6763_v43  ;;  %vm377_vm8 = vcmp.eq.s32.totalorder %v4879_v7, %v4955_v41 }
  0x45   :  { %v7058_v46 = vsel %vm4974_vm6, 4294967295, %v7057_v46  ;;  %7060 = vst [vmem:[#allocation34_spill] sm:$0xff] %v4978_v47  ;;  %vm4984_vm7 = vmpackc.low %vm376_vm5, %vm375_vm4  ;;  %vm378_vm9 = vcmp.eq.s32.totalorder %v4882_v8, %v4955_v41  ;;  %v4995_v53 = vsub.f32 %v3180_v49, %v3180_v49  ;;  %v4997_v54 = vsub.f32 %v3181_v50, %v3181_v50 }
  0x46   :  { %7059 = vst [vmem:[#allocation33_spill] sm:$0xff] %v7058_v46  ;;  %7061 = vst [vmem:[#allocation35_spill] sm:$0xff] %v4980_v48  ;;  %v7063_v51 = vsel %vm4984_vm7, 4294967295, %v7062_v51  ;;  %4233 = vmatprep.subr.msk.bf16.mxu1 %vm4984_vm7, %v6765_v52  ;;  %v3182_v55 = vsel %vm377_vm8, 1.0, %v6763_v43  ;;  %v3183_v56 = vsel %vm378_vm9, 1.0, %v6763_v43  ;;  %v3167_v61 = vsel %vm362_vm3, 1.0, %v6763_v43 }
  0x47   :  { %7064 = vst [vmem:[#allocation36_spill] sm:$0xff] %v7063_v51  ;;  %7065 = vst [vmem:[#allocation37_spill] sm:$0xff] %v4995_v53  ;;  %4235 = vmatpush3.bf16.msk.msra.mxu1 %vm4974_vm6, %v6765_v52  ;;  %v5008_v58 = vsub.f32 %v3182_v55, %v3182_v55  ;;  %v5010_v59 = vsub.f32 %v3183_v56, %v3183_v56  ;;  %v7070_v62 = vmov 0  ;;  %v5033_v63 = vsub.f32 %v3166_v60, %v3166_v60 }
  0x48   :  { %7066 = vst [vmem:[#allocation38_spill] sm:$0xff] %v4997_v54  ;;  %vm5001_vm10 = vmpackc.low %vm378_vm9, %vm377_vm8  ;;  %v5035_v0 = vsub.f32 %v3167_v61, %v3167_v61  ;;  %v931_v1 = vand.u32 4294901760, %v4995_v53  ;;  %v938_v2 = vand.u32 4294901760, %v4997_v54  ;;  %v819_v4 = vand.u32 4294901760, %v4978_v47 }
  0x49   :  { %v7068_v57 = vsel %vm5001_vm10, 4294967295, %v7067_v57  ;;  %4237 = vmatprep.subr.msk.bf16.mxu1 %vm5001_vm10, %v6765_v52  ;;  %vm5029_vm11 = vmpackc.low %vm362_vm3, %vm361_vm2  ;;  %7073 = vst [vmem:[#allocation41_spill] sm:$0xff] %v5033_v63  ;;  %v826_v17 = vand.u32 4294901760, %v4980_v48  ;;  %vm379_vm12 = vcmp.eq.s32.totalorder %v4888_v10, %v4955_v41  ;;  %vm380_vm13 = vcmp.eq.s32.totalorder %v4891_v11, %v4955_v41 }
  0x4a   :  { %7069 = vst [vmem:[#allocation39_spill] sm:$0xff] %v7068_v57  ;;  %v7071_v62 = vsel %vm5029_vm11, 4294967295, %v7070_v62  ;;  %7074 = vst [vmem:[#allocation42_spill] sm:$0xff] %v5035_v0  ;;  %v5046_v20 = vsub.f32 %v4995_v53, %v931_v1  ;;  %v5049_v21 = vsub.f32 %v4997_v54, %v938_v2  ;;  %v4360_v24 = vpack.c.bf16 %v938_v2, %v931_v1 }
  0x4b   :  { %7072 = vst [vmem:[#allocation40_spill] sm:$0xff] %v7071_v62  ;;  %v3184_v25 = vsel %vm379_vm12, 1.0, %v6763_v43  ;;  %vm5052_vm14 = vmpackc.low %vm380_vm13, %vm379_vm12  ;;  %v7075_v26 = vmov 0  ;;  %4239 = vmatpush3.bf16.msk.msra.mxu1 %vm5029_vm11, %v6765_v52  ;;  %v5060_v33 = vsub.f32 %v4978_v47, %v819_v4  ;;  %v5063_v34 = vsub.f32 %v4980_v48, %v826_v17 }
  0x4c   :  { %v7076_v26 = vsel %vm5052_vm14, 4294967295, %v7075_v26  ;;  %v4362_v44 = vpack.c.bf16 %v826_v17, %v819_v4  ;;  %v3185_v45 = vsel %vm380_vm13, 1.0, %v6763_v43  ;;  %4361 = vmatprep.subr.bf16.mxu0 %v4360_v24  ;;  %4241 = vmatprep.subr.msk.bf16.mxu1 %vm5052_vm14, %v6765_v52  ;;  %v5071_v55 = vsub.f32 %v3184_v25, %v3184_v25 }
  0x4d   :  { %7077 = vst [vmem:[#allocation43_spill] sm:$0xff] %v7076_v26  ;;  %v5073_v56 = vsub.f32 %v3185_v45, %v3185_v45  ;;  %vm363_vm15 = vcmp.eq.s32.totalorder %v4888_v10, %v4936_v35  ;;  %vm364_vm0 = vcmp.eq.s32.totalorder %v4891_v11, %v4936_v35  ;;  %v7078_v4 = vmov 0 }
  0x4e   :  { %4363 = vmatpush3.bf16.msra.mxu0 %v4362_v44  ;;  %v3168_v1 = vsel %vm363_vm15, 1.0, %v6763_v43  ;;  %v3169_v2 = vsel %vm364_vm0, 1.0, %v6763_v43  ;;  %vm5083_vm1 = vmpackc.low %vm364_vm0, %vm363_vm15  ;;  %v6754_v17 = vand.u32 4294901760, %v5008_v58  ;;  %v6753_v24 = vand.u32 4294901760, %v5010_v59 }
  0x4f   :  { %v7079_v4 = vsel %vm5083_vm1, 4294967295, %v7078_v4  ;;  %4243 = vmatpush3.bf16.msk.msra.mxu1 %vm5083_vm1, %v6765_v52  ;;  %v5092_v25 = vsub.f32 %v3168_v1, %v3168_v1  ;;  %v5094_v44 = vsub.f32 %v3169_v2, %v3169_v2  ;;  %v833_v45 = vand.u32 4294901760, %v5033_v63 }
  0x50   :  { %7080 = vst [vmem:[#allocation44_spill] sm:$0xff] %v7079_v4  ;;  %v840_v61 = vand.u32 4294901760, %v5035_v0  ;;  %v4364_v60 = vpack.c.bf16 %v6753_v24, %v6754_v17  ;;  %vm381_vm2 = vcmp.eq.s32.totalorder %v4894_v12, %v4955_v41  ;;  %vm382_vm3 = vcmp.eq.s32.totalorder %v4897_v13, %v4955_v41 }
  0x51   :  { %7081 = vst [vmem:[#allocation45_spill] sm:$0xff] %v5092_v25  ;;  %7082 = vst [vmem:[#allocation46_spill] sm:$0xff] %v5094_v44  ;;  %vm365_vm4 = vcmp.eq.s32.totalorder %v4894_v12, %v4936_v35  ;;  %v5109_v1 = vsub.f32 %v5033_v63, %v833_v45  ;;  %v3186_v49 = vsel %vm381_vm2, 1.0, %v6763_v43  ;;  %v7083_v24 = vmov 0 }
  0x52   :  { %v5112_v2 = vsub.f32 %v5035_v0, %v840_v61  ;;  %v4366_v50 = vpack.c.bf16 %v840_v61, %v833_v45  ;;  %vm5115_vm5 = vmpackc.low %vm382_vm3, %vm381_vm2  ;;  %4365 = vmatprep.subr.bf16.mxu0 %v4364_v60  ;;  %v3187_v17 = vsel %vm382_vm3, 1.0, %v6763_v43  ;;  %v5123_v9 = vsub.f32 %v3186_v49, %v3186_v49 }
  0x53   :  { %v7084_v24 = vsel %vm5115_vm5, 4294967295, %v7083_v24  ;;  %4245 = vmatprep.subr.msk.bf16.mxu1 %vm5115_vm5, %v6765_v52  ;;  %vm366_vm8 = vcmp.eq.s32.totalorder %v4897_v13, %v4936_v35  ;;  %v3170_v61 = vsel %vm365_vm4, 1.0, %v6763_v43  ;;  %v5133_v5 = vsub.f32 %v3187_v17, %v3187_v17 }
  0x54   :  { %7085 = vst [vmem:[#allocation47_spill] sm:$0xff] %v7084_v24  ;;  %4367 = vmatpush3.bf16.msra.mxu0 %v4366_v50  ;;  %v3171_v24 = vsel %vm366_vm8, 1.0, %v6763_v43  ;;  %vm5139_vm9 = vmpackc.low %vm366_vm8, %vm365_vm4  ;;  %v7086_v49 = vmov 0  ;;  %v5146_v4 = vsub.f32 %v3170_v61, %v3170_v61  ;;  %v6780_v50 = vand.u32 4294901760, %v5071_v55 }
  0x55   :  { %v7087_v49 = vsel %vm5139_vm9, 4294967295, %v7086_v49  ;;  %4247 = vmatpush3.bf16.msk.msra.mxu1 %vm5139_vm9, %v6765_v52  ;;  %v5148_v45 = vsub.f32 %v3171_v24, %v3171_v24  ;;  %v6779_v17 = vand.u32 4294901760, %v5073_v56  ;;  %v847_v60 = vand.u32 4294901760, %v5092_v25 }
  0x56   :  { %7088 = vst [vmem:[#allocation48_spill] sm:$0xff] %v7087_v49  ;;  %7089 = vst [vmem:[#allocation49_spill] sm:$0xff] %v5146_v4  ;;  %v854_v43 = vand.u32 4294901760, %v5094_v44  ;;  %vm383_vm12 = vcmp.eq.s32.totalorder %v4900_v14, %v4955_v41  ;;  %vm384_vm13 = vcmp.eq.s32.totalorder %v4903_v15, %v4955_v41  ;;  %v7091_v61 = vmov 0.0  }
  0x57   :  { %7090 = vst [vmem:[#allocation50_spill] sm:$0xff] %v5148_v45  ;;  %v4368_v24 = vpack.c.bf16 %v6779_v17, %v6780_v50  ;;  %v3188_v52 = vsel %vm383_vm12, 1.0, %v7091_v61  ;;  %v3189_v49 = vsel %vm384_vm13, 1.0, %v7091_v61  ;;  %vm5164_vm15 = vmpackc.low %vm384_vm13, %vm383_vm12  ;;  %v7092_v26 = vmov 0 }
  0x58   :  { %v7093_v26 = vsel %vm5164_vm15, 4294967295, %v7092_v26  ;;  %vm367_vm0 = vcmp.eq.s32.totalorder %v4900_v14, %v4936_v35  ;;  %v5171_v62 = vsub.f32 %v5092_v25, %v847_v60  ;;  %v5174_v57 = vsub.f32 %v5094_v44, %v854_v43 }
  0x59   :  { %7094 = vst [vmem:[#allocation51_spill] sm:$0xff] %v7093_v26  ;;  %v4370_v46 = vpack.c.bf16 %v854_v43, %v847_v60  ;;  %v7095_v51 = vmov 1.0|1.0   ;;  %v5179_v17 = vsub.f32 %v3188_v52, %v3188_v52  ;;  %4369 = vmatprep.subr.bf16.mxu0 %v4368_v24  ;;  %v5181_v50 = vsub.f32 %v3189_v49, %v3189_v49 }
  0x5a   :  { %4249 = vmatprep.subr.msk.bf16.mxu1 %vm5164_vm15, %v7095_v51  ;;  %vm368_vm2 = vcmp.eq.s32.totalorder %v4903_v15, %v4936_v35  ;;  %v3172_v25 = vsel %vm367_vm0, 1.0, %v7091_v61  ;;  %v7096_v49 = vmov 0  ;;  %v6794_v60 = vand.u32 4294901760, %v5133_v5 }
  0x5b   :  { %4371 = vmatpush3.bf16.msra.mxu0 %v4370_v46  ;;  %v3173_v52 = vsel %vm368_vm2, 1.0, %v7091_v61  ;;  %vm5196_vm3 = vmpackc.low %vm368_vm2, %vm367_vm0  ;;  %v5200_v24 = vsub.f32 %v3172_v25, %v3172_v25  ;;  %v861_v46 = vand.u32 4294901760, %v5146_v4  ;;  %v868_v43 = vand.u32 4294901760, %v5148_v45 }
  0x5c   :  { %v7097_v49 = vsel %vm5196_vm3, 4294967295, %v7096_v49  ;;  %4251 = vmatpush3.bf16.msk.msra.mxu1 %vm5196_vm3, %v7095_v51  ;;  %v5205_v44 = vsub.f32 %v3173_v52, %v3173_v52  ;;  %vm385_vm4 = vcmp.eq.s32.totalorder %v4906_v16, %v4955_v41  ;;  %vm386_vm8 = vcmp.eq.s32.totalorder %v4909_v18, %v4955_v41 }
  0x5d   :  { %7098 = vst [vmem:[#allocation52_spill] sm:$0xff] %v7097_v49  ;;  %7099 = vst [vmem:[#allocation53_spill] sm:$0xff] %v5200_v24  ;;  %vm369_vm12 = vcmp.eq.s32.totalorder %v4906_v16, %v4936_v35  ;;  %vm370_vm13 = vcmp.eq.s32.totalorder %v4909_v18, %v4936_v35  ;;  %v7101_v25 = vand.u32 4294901760, %v5123_v9  ;;  %v5223_v49 = vsub.f32 %v5146_v4, %v861_v46 }
  0x5e   :  { %7100 = vst [vmem:[#allocation54_spill] sm:$0xff] %v5205_v44  ;;  %v5226_v26 = vsub.f32 %v5148_v45, %v868_v43  ;;  %v4374_v28 = vpack.c.bf16 %v868_v43, %v861_v46  ;;  %vm5228_vm0 = vmpackc.low %vm386_vm8, %vm385_vm4  ;;  %v7102_v0 = vmov 0  ;;  %v3190_v63 = vsel %vm385_vm4, 1.0, %v7091_v61 }
  0x5f   :  { %v4372_v52 = vpack.c.bf16 %v6794_v60, %v7101_v25  ;;  %v7103_v0 = vsel %vm5228_vm0, 4294967295, %v7102_v0  ;;  %v3191_v48 = vsel %vm386_vm8, 1.0, %v7091_v61  ;;  %4253 = vmatprep.subr.msk.bf16.mxu1 %vm5228_vm0, %v7095_v51  ;;  %v3174_v25 = vsel %vm369_vm12, 1.0, %v7091_v61  ;;  %vm5239_vm2 = vmpackc.low %vm370_vm13, %vm369_vm12 }
  0x60   :  { %7104 = vst [vmem:[#allocation55_spill] sm:$0xff] %v7103_v0  ;;  %v3175_v60 = vsel %vm370_vm13, 1.0, %v7091_v61  ;;  %v7105_v45 = vmov 0  ;;  %v5245_v4 = vsub.f32 %v3190_v63, %v3190_v63  ;;  %v5247_v47 = vsub.f32 %v3191_v48, %v3191_v48  ;;  %4255 = vmatpush3.bf16.msk.msra.mxu1 %vm5239_vm2, %v7095_v51 }
  0x61   :  { %v7106_v45 = vsel %vm5239_vm2, 4294967295, %v7105_v45  ;;  %4373 = vmatprep.subr.bf16.mxu0 %v4372_v52  ;;  %v5252_v0 = vsub.f32 %v3174_v25, %v3174_v25  ;;  %v5254_v54 = vsub.f32 %v3175_v60, %v3175_v60  ;;  %v6806_v53 = vand.u32 4294901760, %v5179_v17 }
  0x62   :  { %7107 = vst [vmem:[#allocation56_spill] sm:$0xff] %v7106_v45  ;;  %4375 = vmatpush3.bf16.msra.mxu0 %v4374_v28  ;;  %v6805_v52 = vand.u32 4294901760, %v5181_v50  ;;  %v875_v43 = vand.u32 4294901760, %v5200_v24  ;;  %v882_v63 = vand.u32 4294901760, %v5205_v44  ;;  %vm387_vm4 = vcmp.eq.s32.totalorder %v4912_v19, %v4955_v41 }
  0x63   :  { %7108 = vst [vmem:[#allocation57_spill] sm:$0xff] %v5252_v0  ;;  %7109 = vst [vmem:[#allocation58_spill] sm:$0xff] %v5254_v54  ;;  %vm388_vm8 = vcmp.eq.s32.totalorder %v4916_v22, %v4955_v41  ;;  %v3192_v48 = vsel %vm387_vm4, 1.0, %v7091_v61  ;;  %v7110_v25 = vmov 0  ;;  %vm371_vm13 = vcmp.eq.s32.totalorder %v4912_v19, %v4936_v35 }
  0x64   :  { %v4376_v28 = vpack.c.bf16 %v6805_v52, %v6806_v53  ;;  %v3193_v60 = vsel %vm388_vm8, 1.0, %v7091_v61  ;;  %vm5270_vm12 = vmpackc.low %vm388_vm8, %vm387_vm4  ;;  %v5277_v46 = vsub.f32 %v5200_v24, %v875_v43  ;;  %v5280_v45 = vsub.f32 %v5205_v44, %v882_v63 }
  0x65   :  { %v7111_v25 = vsel %vm5270_vm12, 4294967295, %v7110_v25  ;;  %v4378_v18 = vpack.c.bf16 %v882_v63, %v875_v43  ;;  %4257 = vmatprep.subr.msk.bf16.mxu1 %vm5270_vm12, %v7095_v51  ;;  %v5285_v52 = vsub.f32 %v3192_v48, %v3192_v48  ;;  %v5287_v53 = vsub.f32 %v3193_v60, %v3193_v60 }
  0x66   :  { %7112 = vst [vmem:[#allocation59_spill] sm:$0xff] %v7111_v25  ;;  %4377 = vmatprep.subr.bf16.mxu0 %v4376_v28  ;;  %vm372_vm4 = vcmp.eq.s32.totalorder %v4916_v22, %v4936_v35  ;;  %v3176_v24 = vsel %vm371_vm13, 1.0, %v7091_v61  ;;  %v7114_v28 = vmov 0  ;;  %v6821_v63 = vand.u32 4294901760, %v5247_v47 }
  0x67   :  { %7113 = vst [vmem:[#allocation60_spill] sm:$0xff] %v5285_v52  ;;  %4379 = vmatpush3.bf16.msra.mxu0 %v4378_v18  ;;  %v3177_v48 = vsel %vm372_vm4, 1.0, %v7091_v61  ;;  %vm5302_vm8 = vmpackc.low %vm372_vm4, %vm371_vm13  ;;  %v5306_v60 = vsub.f32 %v3176_v24, %v3176_v24  ;;  %v889_v18 = vand.u32 4294901760, %v5252_v0  ;;  %v896_v43 = vand.u32 4294901760, %v5254_v54 }
  0x68   :  { %v7115_v28 = vsel %vm5302_vm8, 4294967295, %v7114_v28  ;;  %4259 = vmatpush3.bf16.msk.msra.mxu1 %vm5302_vm8, %v7095_v51  ;;  %v5311_v44 = vsub.f32 %v3177_v48, %v3177_v48  ;;  %vm389_vm13 = vcmp.eq.s32.totalorder %v4919_v23, %v4955_v41  ;;  %vm390_vm4 = vcmp.eq.s32.totalorder %v4922_v27, %v4955_v41 }
  0x69   :  { %7116 = vst [vmem:[#allocation61_spill] sm:$0xff] %v7115_v28  ;;  %7117 = vst [vmem:[#allocation62_spill] sm:$0xff] %v5306_v60  ;;  %vm373_vm12 = vcmp.eq.s32.totalorder %v4919_v23, %v4936_v35  ;;  %vm374_vm8 = vcmp.eq.s32.totalorder %v4922_v27, %v4936_v35  ;;  %v7119_v24 = vand.u32 4294901760, %v5245_v4  ;;  %v5329_v28 = vsub.f32 %v5252_v0, %v889_v18 }
  0x6a   :  { %7118 = vst [vmem:[#allocation63_spill] sm:$0xff] %v5311_v44  ;;  %v5332_v25 = vsub.f32 %v5254_v54, %v896_v43  ;;  %v4382_v22 = vpack.c.bf16 %v896_v43, %v889_v18  ;;  %vm5334_vm2 = vmpackc.low %vm390_vm4, %vm389_vm13  ;;  %v7120_v41 = vmov 0  ;;  %v3194_v23 = vsel %vm389_vm13, 1.0, %v7091_v61 }
  0x6b   :  { %v4380_v48 = vpack.c.bf16 %v6821_v63, %v7119_v24  ;;  %v7121_v41 = vsel %vm5334_vm2, 4294967295, %v7120_v41  ;;  %v3195_v35 = vsel %vm390_vm4, 1.0, %v7091_v61  ;;  %4261 = vmatprep.subr.msk.bf16.mxu1 %vm5334_vm2, %v7095_v51  ;;  %v3178_v24 = vsel %vm373_vm12, 1.0, %v7091_v61  ;;  %vm5345_vm0 = vmpackc.low %vm374_vm8, %vm373_vm12 }
  0x6c   :  { %7122 = vst [vmem:[#allocation64_spill] sm:$0xff] %v7121_v41  ;;  %v3179_v63 = vsel %vm374_vm8, 1.0, %v7091_v61  ;;  %v7123_v54 = vmov 0  ;;  %v5351_v0 = vsub.f32 %v3194_v23, %v3194_v23  ;;  %v5353_v27 = vsub.f32 %v3195_v35, %v3195_v35  ;;  %4263 = vmatpush3.bf16.msk.msra.mxu1 %vm5345_vm0, %v7095_v51 }
  0x6d   :  { %v7124_v54 = vsel %vm5345_vm0, 4294967295, %v7123_v54  ;;  %4381 = vmatprep.subr.bf16.mxu0 %v4380_v48  ;;  %v5358_v41 = vsub.f32 %v3178_v24, %v3178_v24  ;;  %v5360_v19 = vsub.f32 %v3179_v63, %v3179_v63  ;;  %v6843_v16 = vand.u32 4294901760, %v5285_v52 }
  0x6e   :  { %7125 = vst [vmem:[#allocation65_spill] sm:$0xff] %v7124_v54  ;;  %7126 = vst [vmem:[#allocation66_spill] sm:$0xff] %v5353_v27  ;;  %4383 = vmatpush3.bf16.msra.mxu0 %v4382_v22  ;;  %v6839_v48 = vand.u32 4294901760, %v5287_v53  ;;  %v903_v23 = vand.u32 4294901760, %v5306_v60  ;;  %v910_v35 = vand.u32 4294901760, %v5311_v44  ;;  %v7129_v63 = vand.u32 4294901760, %v5046_v20 }
  0x6f   :  { %7127 = vst [vmem:[#allocation67_spill] sm:$0xff] %v5358_v41  ;;  %7128 = vst [vmem:[#allocation68_spill] sm:$0xff] %v5360_v19  ;;  %v7130_v24 = vand.u32 4294901760, %v5049_v21  ;;  %v7131_v15 = vand.u32 4294901760, %v5060_v33  ;;  %v7132_v43 = vand.u32 4294901760, %v5063_v34  ;;  %v6841_v13 = vand.u32 4294901760, %v5351_v0 }
  0x70   :  { %v4384_v22 = vpack.c.bf16 %v6839_v48, %v6843_v16  ;;  %v7133_v12 = vand.u32 4294901760, %v4942_v37  ;;  %v5385_v52 = vsub.f32 %v5306_v60, %v903_v23  ;;  %v5388_v48 = vsub.f32 %v5311_v44, %v910_v35 }
  0x71   :  { %v4264_v54 = vpack.c.bf16 %v7130_v24, %v7129_v63  ;;  %v4266_v14 = vpack.c.bf16 %v7132_v43, %v7131_v15  ;;  %v4386_v20 = vpack.c.bf16 %v910_v35, %v903_v23  ;;  %v7134_v21 = vand.u32 4294901760, %v4945_v38  ;;  %v513_v63 = vld [vmem:[#allocation7 + $0x50] sm:$0xff] }
  0x72   :  { %v638_v18 = vsub.f32 %v4942_v37, %v7133_v12  ;;  %4385 = vmatprep.subr.bf16.mxu0 %v4384_v22  ;;  %v6840_v15 = vand.u32 4294901760, %v5353_v27  ;;  %v6842_v34 = vand.u32 4294901760, %v4948_v39  ;;  %v917_v43 = vand.u32 4294901760, %v5358_v41 }
  0x73   :  { %v644_v33 = vsub.f32 %v4945_v38, %v7134_v21  ;;  %4265 = vmatprep.subr.bf16.mxu1 %v4264_v54  ;;  %4387 = vmatpush3.bf16.msra.mxu0 %v4386_v20  ;;  %v924_v23 = vand.u32 4294901760, %v5360_v19  ;;  %v7136_v24 = vand.u32 4294901760, %v5008_v58  ;;  %vm391_vm12 = vcmp.eq.s32.totalorder %v4870_v3, %v4958_v42 }
  0x74   :  { %v639_v12 = vand.u32 4294901760, %v638_v18  ;;  %v4388_v54 = vpack.c.bf16 %v6840_v15, %v6841_v13  ;;  %v653_v22 = vsub.f32 %v4948_v39, %v6842_v34  ;;  %v5407_v21 = vsub.f32 %v5358_v41, %v917_v43  ;;  %v509_v13 = vld [vmem:[#allocation7 + $0x30] sm:$0xff] }
  0x75   :  { %v645_v35 = vand.u32 4294901760, %v644_v33  ;;  %v5410_v18 = vsub.f32 %v5360_v19, %v924_v23  ;;  %v4390_v20 = vpack.c.bf16 %v924_v23, %v917_v43  ;;  %v5414_v33 = vsub.f32 %v4930_v31, %v4939_v36  ;;  %v512_v31 = vld [vmem:[#allocation7 + $0x48] sm:$0xff] }
  0x76   :  { %640 = vmatprep.mubr.f32.mxu1 %v639_v12  ;;  %v946_v15 = vsub.f32 %v5008_v58, %v7136_v24  ;;  %4389 = vmatprep.subr.bf16.mxu0 %v4388_v54  ;;  %v654_v34 = vand.u32 4294901760, %v653_v22  ;;  %v7137_v12 = vand.u32 4294901760, %v5010_v59  ;;  %v5425_v43 = vsub.f32 %v4932_v32, %v4952_v40  ;;  %v516_v19 = vld [vmem:[#allocation7 + $0x68] sm:$0xff] }
  0x77   :  { %7135 = vst [vmem:[#allocation69_spill] sm:$0xff] %v5414_v33  ;;  %646 = vmatmul.mubr.f32.vlgmr.msra.gmra.mrb[0].mxu1 %v645_v35  ;;  %4391 = vmatpush3.bf16.msra.mxu0 %v4390_v20  ;;  %v6850_v24 = vand.u32 4294901760, %v5414_v33  ;;  %v7139_v54 = vand.u32 4294901760, %v5109_v1  ;;  %v7140_v22 = vand.u32 4294901760, %v5112_v2  ;;  %v5434_v37 = vand.u32 4294901760, %v509_v13 }
  0x78   :  { %v953_v39 = vsub.f32 %v5010_v59, %v7137_v12  ;;  %7138 = vst [vmem:[#allocation70_spill] sm:$0xff] %v5425_v43  ;;  %4267 = vmatpush3.bf16.msra.mxu1 %v4266_v14  ;;  %v947_v35 = vand.u32 4294901760, %v946_v15  ;;  %655 = vmatprep.mubr.f32.mxu1 %v654_v34  ;;  %v6853_v12 = vand.u32 4294901760, %v5425_v43  ;;  %v5436_v32 = vand.u32 4294901760, %v513_v63 }
  0x79   :  { %v4270_v16 = vpack.c.bf16 %v7140_v22, %v7139_v54  ;;  %7141 = vst [vmem:[#allocation71_spill] sm:$0xff] %v5434_v37  ;;  %v659_v14 = vsub.f32 %v5414_v33, %v6850_v24  ;;  %v5441_v20 = vand.u32 4294901760, %v512_v31  ;;  %v7144_v15 = vand.u32 4294901760, %v5071_v55 }
  0x7a   :  { %v954_v38 = vand.u32 4294901760, %v953_v39  ;;  %7142 = vst [vmem:[#allocation72_spill] sm:$0xff] %v5436_v32  ;;  %v7145_v2 = vand.u32 4294901760, %v5073_v56  ;;  %1754 = vmatmul.mubr.f32.vlgmr.msra.gmra.mrb[0].mxu0 %v4926_v29  ;;  %v668_v54 = vsub.f32 %v5425_v43, %v6853_v12  ;;  %v5454_v22 = vsub.f32 %v509_v13, %v5434_v37 }
  0x7b   :  { %7143 = vst [vmem:[#allocation73_spill] sm:$0xff] %v5441_v20  ;;  %v960_v1 = vsub.f32 %v5071_v55, %v7144_v15  ;;  %v5457_v24 = vsub.f32 %v513_v63, %v5436_v32  ;;  %v660_v23 = vand.u32 4294901760, %v659_v14  ;;  %1759 = vmatprep.mubr.f32.mxu0 %v4928_v30  ;;  %v5461_v15 = vsub.f32 %v512_v31, %v5441_v20  ;;  %v515_v31 = vld [vmem:[#allocation7 + $0x60] sm:$0xff] }
  0x7c   :  { %v967_v39 = vsub.f32 %v5073_v56, %v7145_v2  ;;  %v4268_v34 = vpack.c.bf16 %v954_v38, %v947_v35  ;;  %7146 = vst [vmem:[#allocation74_spill] sm:$0xff] %v5454_v22  ;;  %v669_v35 = vand.u32 4294901760, %v668_v54  ;;  %v6860_v33 = vand.u32 4294901760, %v5454_v22 }
  0x7d   :  { %7147 = vst [vmem:[#allocation75_spill] sm:$0xff] %v5457_v24  ;;  %7148 = vst [vmem:[#allocation76_spill] sm:$0xff] %v5461_v15  ;;  %v961_v2 = vand.u32 4294901760, %v960_v1  ;;  %v6859_v12 = vand.u32 4294901760, %v5457_v24  ;;  %v7149_v13 = vand.u32 4294901760, %v5171_v62  ;;  %v7150_v43 = vand.u32 4294901760, %v5174_v57  ;;  %661 = vmatmul.mubr.f32.gmra.mrb[2].mxu1 %v660_v23 }
  0x7e   :  { %v968_v38 = vand.u32 4294901760, %v967_v39  ;;  %4269 = vmatprep.subr.bf16.mxu1 %v4268_v34  ;;  %v6858_v14 = vand.u32 4294901760, %v5461_v15  ;;  %vm392_vm8 = vcmp.eq.s32.totalorder %v4876_v6, %v4958_v42  ;;  %670 = vmatprep.mubr.f32.mxu1 %v669_v35  ;;  %v674_v62 = vsub.f32 %v5454_v22, %v6860_v33  ;;  %v519_v6 = vld [vmem:[#allocation7 + $0x80] sm:$0xff] }
  0x7f   :  { %v4274_v63 = vpack.c.bf16 %v7150_v43, %v7149_v13  ;;  %4271 = vmatpush3.bf16.msra.mxu1 %v4270_v16  ;;  %v683_v57 = vsub.f32 %v5457_v24, %v6859_v12  ;;  %v3196_v43 = vsel %vm391_vm12, 1.0, %v7091_v61  ;;  %v3197_v23 = vsel %vm392_vm8, 1.0, %v7091_v61  ;;  %vm5482_vm13 = vmpackc.low %vm392_vm8, %vm391_vm12  ;;  %1761 = vmatmul.mubr.f32.gmra.mrb[2].mxu0 %v4939_v36  ;;  %v518_v12 = vld [vmem:[#allocation7 + $0x78] sm:$0xff] }
  0x80   :  { %v4272_v41 = vpack.c.bf16 %v968_v38, %v961_v2  ;;  %v7151_v1 = vmov 0  ;;  %v689_v16 = vsub.f32 %v5461_v15, %v6858_v14  ;;  %v5490_v39 = vsub.f32 %v3196_v43, %v3196_v43  ;;  %1766 = vmatprep.mubr.f32.mxu0 %v4952_v40  ;;  %4425 = vmatprep.subr.msk.bf16.mxu0 %vm5482_vm13, %v7095_v51 }
  0x81   :  { %v7152_v1 = vsel %vm5482_vm13, 4294967295, %v7151_v1  ;;  %v5492_v34 = vsub.f32 %v3197_v23, %v3197_v23  ;;  %v5494_v54 = vand.u32 4294901760, %v516_v19  ;;  %v675_v2 = vand.u32 4294901760, %v674_v62  ;;  %4427 = vmatpush3.bf16.msk.msra.mxu0 %vm5482_vm13, %v7095_v51 }
  0x82   :  { %7153 = vst [vmem:[#allocation77_spill] sm:$0xff] %v7152_v1  ;;  %4273 = vmatprep.subr.bf16.mxu1 %v4272_v41  ;;  %v684_v38 = vand.u32 4294901760, %v683_v57  ;;  %v5500_v35 = vand.u32 4294901760, %v515_v31  ;;  %v7156_v13 = vand.u32 4294901760, %v5123_v9  ;;  %v690_v43 = vand.u32 4294901760, %v689_v16 }
  0x83   :  { %7154 = vst [vmem:[#allocation78_spill] sm:$0xff] %v5494_v54  ;;  %v5509_v62 = vsub.f32 %v516_v19, %v5494_v54  ;;  %v7158_v57 = vand.u32 4294901760, %v5133_v5  ;;  %v5514_v14 = vand.u32 4294901760, %v519_v6  ;;  %676 = vmatmul.mubr.f32.gmra.mrb[4].mxu1 %v675_v2  ;;  %v7161_v16 = vand.u32 4294901760, %v5223_v49  ;;  %1768 = vmatmul.mubr.f32.gmra.mrb[4].mxu0 %v5434_v37 }
  0x84   :  { %7155 = vst [vmem:[#allocation79_spill] sm:$0xff] %v5500_v35  ;;  %v974_v41 = vsub.f32 %v5123_v9, %v7156_v13  ;;  %v5517_v33 = vsub.f32 %v515_v31, %v5500_v35  ;;  %v7162_v3 = vand.u32 4294901760, %v5226_v26  ;;  %vm393_vm4 = vcmp.eq.s32.totalorder %v4879_v7, %v4958_v42  ;;  %685 = vmatprep.mubr.f32.mxu1 %v684_v38  ;;  %v522_v31 = vld [vmem:[#allocation7 + $0x98] sm:$0xff] }
  0x85   :  { %7157 = vst [vmem:[#allocation80_spill] sm:$0xff] %v5509_v62  ;;  %v981_v23 = vsub.f32 %v5133_v5, %v7158_v57  ;;  %7159 = vst [vmem:[#allocation81_spill] sm:$0xff] %v5514_v14  ;;  %4275 = vmatpush3.bf16.msra.mxu1 %v4274_v63  ;;  %v6867_v19 = vand.u32 4294901760, %v5509_v62  ;;  %v5527_v15 = vsub.f32 %v519_v6, %v5514_v14  ;;  %v7164_v49 = vmov 0  ;;  %v521_v6 = vld [vmem:[#allocation7 + $0x90] sm:$0xff]  ;;  %1773 = vmatprep.mubr.f32.mxu0 %v5436_v32 }
  0x86   :  { %7160 = vst [vmem:[#allocation82_spill] sm:$0xff] %v5517_v33  ;;  %v975_v13 = vand.u32 4294901760, %v974_v41  ;;  %v4278_v1 = vpack.c.bf16 %v7162_v3, %v7161_v16  ;;  %vm394_vm12 = vcmp.eq.s32.totalorder %v4882_v8, %v4958_v42  ;;  %v6868_v26 = vand.u32 4294901760, %v5517_v33 }
  0x87   :  { %v982_v57 = vand.u32 4294901760, %v981_v23  ;;  %7163 = vst [vmem:[#allocation83_spill] sm:$0xff] %v5527_v15  ;;  %v3198_v3 = vsel %vm393_vm4, 1.0, %v7091_v61  ;;  %v3199_v7 = vsel %vm394_vm12, 1.0, %v7091_v61  ;;  %vm5535_vm8 = vmpackc.low %vm394_vm12, %vm393_vm4  ;;  %v5539_v63 = vand.u32 4294901760, %v518_v12  ;;  %691 = vmatmul.mubr.f32.gmra.mrb[6].mxu1 %v690_v43  ;;  %1775 = vmatmul.mubr.f32.gmra.mrb[6].mxu0 %v5441_v20 }
  0x88   :  { %v7165_v49 = vsel %vm5535_vm8, 4294967295, %v7164_v49  ;;  %v698_v8 = vsub.f32 %v5509_v62, %v6867_v19  ;;  %v6873_v38 = vand.u32 4294901760, %v5527_v15  ;;  %4429 = vmatprep.subr.msk.bf16.mxu0 %vm5535_vm8, %v7095_v51  ;;  %v5549_v41 = vsub.f32 %v3198_v3, %v3198_v3  ;;  %1780 = vmatprep.mubr.f32.mxu0 %v5494_v54 }
  0x89   :  { %7166 = vst [vmem:[#allocation84_spill] sm:$0xff] %v7165_v49  ;;  %7167 = vst [vmem:[#allocation85_spill] sm:$0xff] %v5539_v63  ;;  %v4276_v2 = vpack.c.bf16 %v982_v57, %v975_v13  ;;  %v704_v23 = vsub.f32 %v5517_v33, %v6868_v26  ;;  %v5554_v16 = vsub.f32 %v3199_v7, %v3199_v7  ;;  %4431 = vmatpush3.bf16.msk.msra.mxu0 %vm5535_vm8, %v7095_v51 }
  0x8a   :  { %v5557_v19 = vsub.f32 %v518_v12, %v5539_v63  ;;  %v5562_v13 = vand.u32 4294901760, %v522_v31  ;;  %v699_v57 = vand.u32 4294901760, %v698_v8  ;;  %v713_v43 = vsub.f32 %v5527_v15, %v6873_v38  ;;  %v525_v38 = vld [vmem:[#allocation7 + $0xb0] sm:$0xff] }
  0x8b   :  { %4277 = vmatprep.subr.bf16.mxu1 %v4276_v2  ;;  %v5567_v3 = vand.u32 4294901760, %v521_v6  ;;  %v7171_v7 = vand.u32 4294901760, %v5179_v17  ;;  %v705_v12 = vand.u32 4294901760, %v704_v23  ;;  %v7173_v8 = vand.u32 4294901760, %v5181_v50  ;;  %1782 = vmatmul.mubr.f32.gmra.mrb[8].mxu0 %v5500_v35 }
  0x8c   :  { %7168 = vst [vmem:[#allocation86_spill] sm:$0xff] %v5557_v19  ;;  %7169 = vst [vmem:[#allocation87_spill] sm:$0xff] %v5562_v13  ;;  %4279 = vmatpush3.bf16.msra.mxu1 %v4278_v1  ;;  %v5575_v33 = vsub.f32 %v522_v31, %v5562_v13  ;;  %700 = vmatprep.mubr.f32.mxu1 %v699_v57  ;;  %v714_v15 = vand.u32 4294901760, %v713_v43  ;;  %v7175_v1 = vand.u32 4294901760, %v5277_v46  ;;  %v7176_v49 = vand.u32 4294901760, %v5280_v45  ;;  %v524_v43 = vld [vmem:[#allocation7 + $0xa8] sm:$0xff] }
  0x8d   :  { %7170 = vst [vmem:[#allocation88_spill] sm:$0xff] %v5567_v3  ;;  %v988_v26 = vsub.f32 %v5179_v17, %v7171_v7  ;;  %v995_v2 = vsub.f32 %v5181_v50, %v7173_v8  ;;  %v5582_v7 = vsub.f32 %v521_v6, %v5567_v3  ;;  %706 = vmatmul.mubr.f32.gmra.mrb[8].mxu1 %v705_v12  ;;  %v7177_v31 = vand.u32 4294901760, %v5557_v19 }
  0x8e   :  { %7172 = vst [vmem:[#allocation89_spill] sm:$0xff] %v5575_v33  ;;  %v4282_v62 = vpack.c.bf16 %v7176_v49, %v7175_v1  ;;  %v6883_v8 = vand.u32 4294901760, %v5575_v33  ;;  %vm395_vm4 = vcmp.eq.s32.totalorder %v4888_v10, %v4958_v42  ;;  %715 = vmatprep.mubr.f32.mxu1 %v714_v15  ;;  %vm396_vm12 = vcmp.eq.s32.totalorder %v4891_v11, %v4958_v42 }
  0x8f   :  { %7174 = vst [vmem:[#allocation90_spill] sm:$0xff] %v5582_v7  ;;  %v989_v23 = vand.u32 4294901760, %v988_v26  ;;  %v719_v24 = vsub.f32 %v5557_v19, %v7177_v31  ;;  %v996_v57 = vand.u32 4294901760, %v995_v2  ;;  %v6882_v26 = vand.u32 4294901760, %v5582_v7  ;;  %vm5605_vm0 = vmpackc.low %vm396_vm12, %vm395_vm4  ;;  %v528_v2 = vld [vmem:[#allocation7 + $0xc8] sm:$0xff]  ;;  %1787 = vmatprep.mubr.f32.mxu0 %v5514_v14 }
  0x90   :  { %v3200_v45 = vsel %vm395_vm4, 1.0, %v7091_v61  ;;  %v5598_v46 = vand.u32 4294901760, %v525_v38  ;;  %v728_v6 = vsub.f32 %v5575_v33, %v6883_v8  ;;  %v3201_v10 = vsel %vm396_vm12, 1.0, %v7091_v61  ;;  %4433 = vmatprep.subr.msk.bf16.mxu0 %vm5605_vm0, %v7095_v51  ;;  %1789 = vmatmul.mubr.f32.gmra.mrb[10].mxu0 %v5539_v63 }
  0x91   :  { %v720_v49 = vand.u32 4294901760, %v719_v24  ;;  %v4280_v12 = vpack.c.bf16 %v996_v57, %v989_v23  ;;  %v7179_v15 = vmov 0  ;;  %v734_v11 = vsub.f32 %v5582_v7, %v6882_v26  ;;  %4435 = vmatpush3.bf16.msk.msra.mxu0 %vm5605_vm0, %v7095_v51  ;;  %1794 = vmatprep.mubr.f32.mxu0 %v5562_v13 }
  0x92   :  { %7178 = vst [vmem:[#allocation91_spill] sm:$0xff] %v5598_v46  ;;  %v7180_v15 = vsel %vm5605_vm0, 4294967295, %v7179_v15  ;;  %v5616_v24 = vsub.f32 %v3200_v45, %v3200_v45  ;;  %v5618_v23 = vsub.f32 %v3201_v10, %v3201_v10  ;;  %v5620_v1 = vand.u32 4294901760, %v524_v43 }
  0x93   :  { %7181 = vst [vmem:[#allocation92_spill] sm:$0xff] %v7180_v15  ;;  %721 = vmatmul.mubr.f32.gmra.mrb[10].mxu1 %v720_v49  ;;  %v729_v31 = vand.u32 4294901760, %v728_v6  ;;  %4281 = vmatprep.subr.bf16.mxu1 %v4280_v12  ;;  %v5623_v57 = vsub.f32 %v525_v38, %v5598_v46  ;;  %v7184_v26 = vand.u32 4294901760, %v5245_v4  ;;  %v7185_v7 = vand.u32 4294901760, %v5247_v47  ;;  %v527_v15 = vld [vmem:[#allocation7 + $0xc0] sm:$0xff] }
  0x94   :  { %7182 = vst [vmem:[#allocation93_spill] sm:$0xff] %v5620_v1  ;;  %v735_v45 = vand.u32 4294901760, %v734_v11  ;;  %4283 = vmatpush3.bf16.msra.mxu1 %v4282_v62  ;;  %v5635_v49 = vsub.f32 %v524_v43, %v5620_v1  ;;  %v5637_v6 = vand.u32 4294901760, %v528_v2  ;;  %v7188_v38 = vand.u32 4294901760, %v5329_v28  ;;  %v7190_v11 = vld [vmem:[#allocation15_spill] sm:$0xff]  ;;  %1796 = vmatmul.mubr.f32.gmra.mrb[12].mxu0 %v5567_v3 }
  0x95   :  { %7183 = vst [vmem:[#allocation94_spill] sm:$0xff] %v5623_v57  ;;  %v1002_v8 = vsub.f32 %v5245_v4, %v7184_v26  ;;  %v1009_v33 = vsub.f32 %v5247_v47, %v7185_v7  ;;  %v7189_v12 = vand.u32 4294901760, %v5332_v25  ;;  %730 = vmatprep.mubr.f32.mxu1 %v729_v31  ;;  %v6896_v7 = vand.u32 4294901760, %v5623_v57  ;;  %v7192_v25 = vld [vmem:[#allocation16_spill] sm:$0xff]  ;;  %1801 = vmatprep.mubr.f32.mxu0 %v5598_v46  ;;  %v534_v46 = vld [vmem:[#allocation7 + $0xf8] sm:$0xff] }
  0x96   :  { %7186 = vst [vmem:[#allocation95_spill] sm:$0xff] %v5635_v49  ;;  %7187 = vst [vmem:[#allocation96_spill] sm:$0xff] %v5637_v6  ;;  %vm397_vm4 = vcmp.eq.s32.totalorder %v7190_v11, %v4958_v42  ;;  %v5650_v28 = vsub.f32 %v528_v2, %v5637_v6  ;;  %vm398_vm12 = vcmp.eq.s32.totalorder %v7192_v25, %v4958_v42  ;;  %v7193_v43 = vmov 0 }
  0x97   :  { %v4286_v26 = vpack.c.bf16 %v7189_v12, %v7188_v38  ;;  %v1003_v62 = vand.u32 4294901760, %v1002_v8  ;;  %v1010_v10 = vand.u32 4294901760, %v1009_v33  ;;  %v3202_v31 = vsel %vm397_vm4, 1.0, %v7091_v61  ;;  %v531_v38 = vld [vmem:[#allocation7 + $0xe0] sm:$0xff]  ;;  %v530_v12 = vld [vmem:[#allocation7 + $0xd8] sm:$0xff]  ;;  %736 = vmatmul.mubr.f32.gmra.mrb[12].mxu1 %v735_v45  ;;  %vm5659_vm2 = vmpackc.low %vm398_vm12, %vm397_vm4 }
  0x98   :  { %7191 = vst [vmem:[#allocation15_spill] sm:$0xff] %v5650_v28  ;;  %v743_v33 = vsub.f32 %v5623_v57, %v6896_v7  ;;  %v3203_v11 = vsel %vm398_vm12, 1.0, %v7091_v61  ;;  %v7194_v43 = vsel %vm5659_vm2, 4294967295, %v7193_v43  ;;  %v5663_v2 = vsub.f32 %v3202_v31, %v3202_v31  ;;  %4437 = vmatprep.subr.msk.bf16.mxu0 %vm5659_vm2, %v7095_v51  ;;  %v7200_v57 = vld [vmem:[#allocation60_spill] sm:$0xff]  ;;  %1803 = vmatmul.mubr.f32.gmra.mrb[14].mxu0 %v5620_v1 }
  0x99   :  { %v4284_v8 = vpack.c.bf16 %v1010_v10, %v1003_v62  ;;  %7195 = vst [vmem:[#allocation16_spill] sm:$0xff] %v7194_v43  ;;  %v7196_v25 = vand.u32 4294901760, %v5635_v49  ;;  %v5672_v45 = vsub.f32 %v3203_v11, %v3203_v11  ;;  %v5674_v62 = vand.u32 4294901760, %v527_v15  ;;  %4439 = vmatpush3.bf16.msk.msra.mxu0 %vm5659_vm2, %v7095_v51  ;;  %1808 = vmatprep.mubr.f32.mxu0 %v5637_v6 }
  0x9a   :  { %v744_v10 = vand.u32 4294901760, %v743_v33  ;;  %v5677_v31 = vand.u32 4294901760, %v531_v38  ;;  %v5679_v7 = vand.u32 4294901760, %v530_v12  ;;  %v7202_v44 = vand.u32 4294901760, %v5650_v28 }
  0x9b   :  { %v749_v19 = vsub.f32 %v5635_v49, %v7196_v25  ;;  %7197 = vst [vmem:[#allocation97_spill] sm:$0xff] %v5674_v62  ;;  %4285 = vmatprep.subr.bf16.mxu1 %v4284_v8  ;;  %v7201_v25 = vand.u32 4294901760, %v7200_v57  ;;  %v5688_v60 = vsub.f32 %v527_v15, %v5674_v62  ;;  %v7204_v33 = vand.u32 4294901760, %v5287_v53 }
  0x9c   :  { %7198 = vst [vmem:[#allocation98_spill] sm:$0xff] %v5677_v31  ;;  %7199 = vst [vmem:[#allocation99_spill] sm:$0xff] %v5679_v7  ;;  %v758_v11 = vsub.f32 %v5650_v28, %v7202_v44  ;;  %4287 = vmatpush3.bf16.msra.mxu1 %v4286_v26  ;;  %745 = vmatprep.mubr.f32.mxu1 %v744_v10  ;;  %v5701_v44 = vsub.f32 %v530_v12, %v5679_v7  ;;  %v7207_v15 = vand.u32 4294901760, %v5385_v52  ;;  %v7209_v10 = vld [vmem:[#allocation17_spill] sm:$0xff]  ;;  %v7210_v52 = vld [vmem:[#allocation18_spill] sm:$0xff] }
  0x9d   :  { %v1016_v22 = vsub.f32 %v7200_v57, %v7201_v25  ;;  %v750_v49 = vand.u32 4294901760, %v749_v19  ;;  %7203 = vst [vmem:[#allocation60_spill] sm:$0xff] %v5688_v60  ;;  %v1023_v8 = vsub.f32 %v5287_v53, %v7204_v33  ;;  %v5698_v19 = vsub.f32 %v531_v38, %v5677_v31  ;;  %1810 = vmatmul.mubr.f32.gmra.mrb[16].mxu0 %v5674_v62 }
  0x9e   :  { %7206 = vst [vmem:[#allocation101_spill] sm:$0xff] %v5701_v44  ;;  %v7208_v25 = vand.u32 4294901760, %v5388_v48  ;;  %v759_v28 = vand.u32 4294901760, %v758_v11  ;;  %v6915_v3 = vand.u32 4294901760, %v5688_v60  ;;  %vm399_vm4 = vcmp.eq.s32.totalorder %v7209_v10, %v4958_v42  ;;  %1815 = vmatprep.mubr.f32.mxu0 %v5677_v31 }
  0x9f   :  { %7205 = vst [vmem:[#allocation100_spill] sm:$0xff] %v5698_v19  ;;  %v1017_v26 = vand.u32 4294901760, %v1016_v22  ;;  %751 = vmatmul.mubr.f32.gmra.mrb[14].mxu1 %v750_v49  ;;  %v1024_v33 = vand.u32 4294901760, %v1023_v8  ;;  %v6913_v38 = vand.u32 4294901760, %v5698_v19  ;;  %v6914_v22 = vand.u32 4294901760, %v5701_v44  ;;  %v533_v49 = vld [vmem:[#allocation7 + $0xf0] sm:$0xff] }
  0xa0   :  { %v4290_v43 = vpack.c.bf16 %v7208_v25, %v7207_v15  ;;  %vm400_vm12 = vcmp.eq.s32.totalorder %v7210_v52, %v4958_v42  ;;  %v3204_v48 = vsel %vm399_vm4, 1.0, %v7091_v61  ;;  %760 = vmatprep.mubr.f32.mxu1 %v759_v28  ;;  %v764_v12 = vsub.f32 %v5688_v60, %v6915_v3  ;;  %v537_v3 = vld [vmem:[#allocation7 + $0x110] sm:$0xff] }
  0xa1   :  { %v4288_v11 = vpack.c.bf16 %v1024_v33, %v1017_v26  ;;  %v3205_v8 = vsel %vm400_vm12, 1.0, %v7091_v61  ;;  %vm5721_vm2 = vmpackc.low %vm400_vm12, %vm399_vm4  ;;  %v7211_v15 = vmov 0  ;;  %v5725_v25 = vsub.f32 %v3204_v48, %v3204_v48  ;;  %1817 = vmatmul.mubr.f32.gmra.mrb[18].mxu0 %v5679_v7  ;;  %v7241_v7 = vld [vmem:[#allocation35_spill] sm:$0xff] }
  0xa2   :  { %v7212_v15 = vsel %vm5721_vm2, 4294967295, %v7211_v15  ;;  %v773_v10 = vsub.f32 %v5698_v19, %v6913_v38  ;;  %v779_v28 = vsub.f32 %v5701_v44, %v6914_v22  ;;  %4441 = vmatprep.subr.msk.bf16.mxu0 %vm5721_vm2, %v7095_v51  ;;  %v5736_v26 = vsub.f32 %v3205_v8, %v3205_v8  ;;  %v7216_v38 = vld [vmem:[#allocation19_spill] sm:$0xff]  ;;  %v7217_v22 = vld [vmem:[#allocation20_spill] sm:$0xff]  ;;  %v536_v19 = vld [vmem:[#allocation7 + $0x108] sm:$0xff] }
  0xa3   :  { %7213 = vst [vmem:[#allocation17_spill] sm:$0xff] %v7212_v15  ;;  %v5738_v33 = vand.u32 4294901760, %v534_v46  ;;  %v765_v52 = vand.u32 4294901760, %v764_v12  ;;  %4289 = vmatprep.subr.bf16.mxu1 %v4288_v11  ;;  %4443 = vmatpush3.bf16.msk.msra.mxu0 %vm5721_vm2, %v7095_v51  ;;  %v5743_v48 = vand.u32 4294901760, %v533_v49  ;;  %vm401_vm4 = vcmp.eq.s32.totalorder %v7216_v38, %v4958_v42 }
  0xa4   :  { %vm402_vm12 = vcmp.eq.s32.totalorder %v7217_v22, %v4958_v42  ;;  %v774_v44 = vand.u32 4294901760, %v773_v10  ;;  %v780_v8 = vand.u32 4294901760, %v779_v28  ;;  %4291 = vmatpush3.bf16.msra.mxu1 %v4290_v43  ;;  %v3206_v11 = vsel %vm401_vm4, 1.0, %v7091_v61 }
  0xa5   :  { %7214 = vst [vmem:[#allocation18_spill] sm:$0xff] %v5738_v33  ;;  %7215 = vst [vmem:[#allocation102_spill] sm:$0xff] %v5743_v48  ;;  %v5751_v12 = vsub.f32 %v534_v46, %v5738_v33  ;;  %v7219_v15 = vmov 0  ;;  %766 = vmatmul.mubr.f32.gmra.mrb[16].mxu1 %v765_v52  ;;  %v5759_v38 = vsub.f32 %v533_v49, %v5743_v48  ;;  %v3207_v43 = vsel %vm402_vm12, 1.0, %v7091_v61  ;;  %1822 = vmatprep.mubr.f32.mxu0 %v5738_v33 }
  0xa6   :  { %vm5754_vm2 = vmpackc.low %vm402_vm12, %vm401_vm4  ;;  %v5763_v22 = vsub.f32 %v3206_v11, %v3206_v11  ;;  %v7223_v46 = vand.u32 4294901760, %v5351_v0  ;;  %775 = vmatprep.mubr.f32.mxu1 %v774_v44  ;;  %v5772_v52 = vsub.f32 %v3207_v43, %v3207_v43  ;;  %v7224_v49 = vand.u32 4294901760, %v5353_v27  ;;  %v7231_v11 = vld [vmem:[#allocation21_spill] sm:$0xff]  ;;  %1824 = vmatmul.mubr.f32.gmra.mrb[20].mxu0 %v5743_v48 }
  0xa7   :  { %7218 = vst [vmem:[#allocation19_spill] sm:$0xff] %v5751_v12  ;;  %v7220_v15 = vsel %vm5754_vm2, 4294967295, %v7219_v15  ;;  %7222 = vst [vmem:[#allocation103_spill] sm:$0xff] %v5759_v38  ;;  %4445 = vmatprep.subr.msk.bf16.mxu0 %vm5754_vm2, %v7095_v51  ;;  %v5777_v31 = vand.u32 4294901760, %v537_v3  ;;  %v7226_v44 = vand.u32 4294901760, %v5407_v21  ;;  %v5787_v43 = vand.u32 4294901760, %v536_v19 }
  0xa8   :  { %7221 = vst [vmem:[#allocation20_spill] sm:$0xff] %v7220_v15  ;;  %v1030_v10 = vsub.f32 %v5351_v0, %v7223_v46  ;;  %v1037_v60 = vsub.f32 %v5353_v27, %v7224_v49  ;;  %4447 = vmatpush3.bf16.msk.msra.mxu0 %vm5754_vm2, %v7095_v51  ;;  %v7227_v46 = vand.u32 4294901760, %v5410_v18  ;;  %v7229_v6 = vand.u32 4294901760, %v5751_v12 }
  0xa9   :  { %7225 = vst [vmem:[#allocation104_spill] sm:$0xff] %v5777_v31  ;;  %7228 = vst [vmem:[#allocation105_spill] sm:$0xff] %v5787_v43  ;;  %vm403_vm4 = vcmp.eq.s32.totalorder %v7231_v11, %v4958_v42  ;;  %781 = vmatmul.mubr.f32.gmra.mrb[18].mxu1 %v780_v8  ;;  %v7232_v21 = vand.u32 4294901760, %v5759_v38  ;;  %1829 = vmatprep.mubr.f32.mxu0 %v5777_v31 }
  0xaa   :  { %v1031_v62 = vand.u32 4294901760, %v1030_v10  ;;  %v4294_v28 = vpack.c.bf16 %v7227_v46, %v7226_v44  ;;  %v788_v49 = vsub.f32 %v5751_v12, %v7229_v6  ;;  %v1038_v1 = vand.u32 4294901760, %v1037_v60  ;;  %v7234_v60 = vld [vmem:[#allocation22_spill] sm:$0xff]  ;;  %1831 = vmatmul.mubr.f32.gmra.mrb[22].mxu0 %v5787_v43 }
  0xab   :  { %v5794_v10 = vsub.f32 %v537_v3, %v5777_v31  ;;  %v794_v18 = vsub.f32 %v5759_v38, %v7232_v21  ;;  %v5802_v44 = vsub.f32 %v536_v19, %v5787_v43  ;;  %vm404_vm12 = vcmp.eq.s32.totalorder %v7234_v60, %v4958_v42  ;;  %v505_v3 = vld [vmem:[#allocation7 + $0x10] sm:$0xff] }
  0xac   :  { %v3208_v6 = vsel %vm403_vm4, 1.0, %v7091_v61  ;;  %v789_v46 = vand.u32 4294901760, %v788_v49  ;;  %v4292_v15 = vpack.c.bf16 %v1038_v1, %v1031_v62  ;;  %v3209_v8 = vsel %vm404_vm12, 1.0, %v7091_v61  ;;  %vm5810_vm2 = vmpackc.low %vm404_vm12, %vm403_vm4  ;;  %v7238_v62 = vld [vmem:[#allocation37_spill] sm:$0xff]  ;;  %v7239_v49 = vld [vmem:[#allocation38_spill] sm:$0xff] }
  0xad   :  { %7230 = vst [vmem:[#allocation106_spill] sm:$0xff] %v5794_v10  ;;  %7233 = vst [vmem:[#allocation21_spill] sm:$0xff] %v5802_v44  ;;  %v6947_v11 = vand.u32 4294901760, %v5794_v10  ;;  %v7235_v12 = vmov 0  ;;  %v795_v19 = vand.u32 4294901760, %v794_v18  ;;  %4449 = vmatprep.subr.msk.bf16.mxu0 %vm5810_vm2, %v7095_v51  ;;  %v5818_v60 = vsub.f32 %v3208_v6, %v3208_v6  ;;  %v7240_v18 = vld [vmem:[#allocation34_spill] sm:$0xff] }
  0xae   :  { %v7236_v12 = vsel %vm5810_vm2, 4294967295, %v7235_v12  ;;  %v5820_v38 = vsub.f32 %v3209_v8, %v3209_v8  ;;  %790 = vmatprep.mubr.f32.mxu1 %v789_v46  ;;  %4293 = vmatprep.subr.bf16.mxu1 %v4292_v15  ;;  %v4296_v33 = vpack.c.bf16 %v7239_v49, %v7238_v62  ;;  %v4298_v21 = vpack.c.bf16 %v7241_v7, %v7240_v18  ;;  %v7243_v15 = vld [vmem:[#allocation23_spill] sm:$0xff]  ;;  %v7244_v46 = vld [vmem:[#allocation24_spill] sm:$0xff]  ;;  %v508_v49 = vld [vmem:[#allocation7 + $0x28] sm:$0xff] }
  0xaf   :  { %7237 = vst [vmem:[#allocation22_spill] sm:$0xff] %v7236_v12  ;;  %v803_v1 = vsub.f32 %v5794_v10, %v6947_v11  ;;  %v5829_v27 = vand.u32 4294901760, %v505_v3  ;;  %796 = vmatmul.mubr.f32.gmra.mrb[20].mxu1 %v795_v19  ;;  %v7242_v6 = vand.u32 4294901760, %v5802_v44  ;;  %vm405_vm4 = vcmp.eq.s32.totalorder %v7243_v15, %v4958_v42  ;;  %4451 = vmatpush3.bf16.msk.msra.mxu0 %vm5810_vm2, %v7095_v51  ;;  %v7252_v12 = vld [vmem:[#allocation25_spill] sm:$0xff]  ;;  %v7254_v10 = vld [vmem:[#allocation46_spill] sm:$0xff] }
  0xb0   :  { %vm406_vm12 = vcmp.eq.s32.totalorder %v7244_v46, %v4958_v42  ;;  %v6950_v62 = vand.u32 4294901760, %v5490_v39  ;;  %4295 = vmatpush3.bf16.msra.mxu1 %v4294_v28  ;;  %v3210_v7 = vsel %vm405_vm4, 1.0, %v7091_v61  ;;  %v7245_v18 = vmov 0 }
  0xb1   :  { %v809_v8 = vsub.f32 %v5802_v44, %v7242_v6  ;;  %v804_v11 = vand.u32 4294901760, %v803_v1  ;;  %v3211_v19 = vsel %vm406_vm12, 1.0, %v7091_v61  ;;  %vm5845_vm0 = vmpackc.low %vm406_vm12, %vm405_vm4  ;;  %v5850_v6 = vsub.f32 %v505_v3, %v5829_v27  ;;  %4297 = vmatprep.subr.bf16.mxu1 %v4296_v33 }
  0xb2   :  { %v7246_v18 = vsel %vm5845_vm0, 4294967295, %v7245_v18  ;;  %v5853_v28 = vsub.f32 %v3210_v7, %v3210_v7  ;;  %v5855_v1 = vsub.f32 %v3211_v19, %v3211_v19  ;;  %v2222_v15 = vsub.f32 %v5490_v39, %v6950_v62  ;;  %4453 = vmatprep.subr.msk.bf16.mxu0 %vm5845_vm0, %v7095_v51  ;;  %v7250_v7 = vld [vmem:[#allocation41_spill] sm:$0xff]  ;;  %v7251_v19 = vld [vmem:[#allocation42_spill] sm:$0xff] }
  0xb3   :  { %7247 = vst [vmem:[#allocation37_spill] sm:$0xff] %v7246_v18  ;;  %7248 = vst [vmem:[#allocation38_spill] sm:$0xff] %v5850_v6  ;;  %v810_v42 = vand.u32 4294901760, %v809_v8  ;;  %805 = vmatprep.mubr.f32.mxu1 %v804_v11  ;;  %v6955_v61 = vand.u32 4294901760, %v5850_v6  ;;  %v6960_v3 = vand.u32 4294901760, %v5492_v34  ;;  %v4300_v33 = vpack.c.bf16 %v5010_v59, %v5008_v58  ;;  %4455 = vmatpush3.bf16.msk.msra.mxu0 %vm5845_vm0, %v7095_v51  ;;  %v7253_v18 = vld [vmem:[#allocation45_spill] sm:$0xff] }
  0xb4   :  { %v5867_v8 = vand.u32 4294901760, %v508_v49  ;;  %v2223_v46 = vand.u32 4294901760, %v2222_v15  ;;  %v4302_v11 = vpack.c.bf16 %v7251_v19, %v7250_v7  ;;  %v6967_v62 = vand.u32 4294901760, %v5549_v41  ;;  %v511_v7 = vld [vmem:[#allocation7 + $0x40] sm:$0xff] }
  0xb5   :  { %811 = vmatmul.mubr.f32.gmra.mrb[22].mxu1 %v810_v42  ;;  %v6970_v44 = vand.u32 4294901760, %v5554_v16  ;;  %v2101_v58 = vsub.f32 %v5850_v6, %v6955_v61  ;;  %v2229_v59 = vsub.f32 %v5492_v34, %v6960_v3  ;;  %v6973_v15 = vand.u32 4294901760, %v5616_v24 }
  0xb6   :  { %7249 = vst [vmem:[#allocation34_spill] sm:$0xff] %v5867_v8  ;;  %1041 = vmatprep.mubr.f32.mxu1 %v7252_v12  ;;  %v5885_v42 = vsub.f32 %v508_v49, %v5867_v8  ;;  %v2236_v19 = vsub.f32 %v5549_v41, %v6967_v62  ;;  %v4304_v61 = vpack.c.bf16 %v5073_v56, %v5071_v55  ;;  %v5904_v8 = vand.u32 4294901760, %v511_v7  ;;  %v514_v55 = vld [vmem:[#allocation7 + $0x58] sm:$0xff] }
  0xb7   :  { %v2243_v12 = vsub.f32 %v5554_v16, %v6970_v44  ;;  %v2102_v6 = vand.u32 4294901760, %v2101_v58  ;;  %v2230_v49 = vand.u32 4294901760, %v2229_v59  ;;  %v2250_v31 = vsub.f32 %v5616_v24, %v6973_v15 }
  0xb8   :  { %v6974_v43 = vand.u32 4294901760, %v5885_v42  ;;  %v2237_v62 = vand.u32 4294901760, %v2236_v19  ;;  %v6975_v44 = vand.u32 4294901760, %v5618_v23  ;;  %7255 = vst [vmem:[#allocation35_spill] sm:$0xff] %v5904_v8  ;;  %v6977_v15 = vand.u32 4294901760, %v5663_v2 }
  0xb9   :  { %1043 = vmatmul.mubr.f32.vlgmr.msra.gmra.mrb[24].mxu1 %v4926_v29  ;;  %v2244_v48 = vand.u32 4294901760, %v2243_v12  ;;  %v4456_v56 = vpack.c.bf16 %v2230_v49, %v2223_v46  ;;  %v2251_v59 = vand.u32 4294901760, %v2250_v31  ;;  %3964 = vmatprep.mubr.f32.mxu0 %v2102_v6  ;;  %v5915_v3 = vsub.f32 %v511_v7, %v5904_v8  ;;  %v517_v46 = vld [vmem:[#allocation7 + $0x70] sm:$0xff]  ;;  %v7343_v29 = vld [vmem:[#allocation95_spill] sm:$0xff] }
  0xba   :  { %4299 = vmatpush3.bf16.msra.mxu1 %v4298_v21  ;;  %1048 = vmatprep.mubr.f32.mxu1 %v4928_v30  ;;  %v2111_v58 = vsub.f32 %v5885_v42, %v6974_v43  ;;  %v2257_v12 = vsub.f32 %v5618_v23, %v6975_v44  ;;  %v6978_v21 = vand.u32 4294901760, %v5672_v45  ;;  %v2264_v31 = vsub.f32 %v5663_v2, %v6977_v15  ;;  %v7257_v43 = vld [vmem:[#allocation49_spill] sm:$0xff] }
  0xbb   :  { %4301 = vmatprep.subr.bf16.mxu1 %v4300_v33  ;;  %v4460_v19 = vpack.c.bf16 %v2244_v48, %v2237_v62  ;;  %4457 = vmatprep.subr.bf16.mxu0 %v4456_v56  ;;  %v4308_v6 = vpack.c.bf16 %v5133_v5, %v5123_v9  ;;  %v5923_v48 = vand.u32 4294901760, %v514_v55  ;;  %v520_v30 = vld [vmem:[#allocation7 + $0x88] sm:$0xff]  ;;  %v5936_v9 = vand.u32 4294901760, %v517_v46 }
  0xbc   :  { %v2112_v49 = vand.u32 4294901760, %v2111_v58  ;;  %v2258_v62 = vand.u32 4294901760, %v2257_v12  ;;  %v2271_v7 = vsub.f32 %v5672_v45, %v6978_v21  ;;  %v7258_v58 = vld [vmem:[#allocation50_spill] sm:$0xff]  ;;  %v2265_v15 = vand.u32 4294901760, %v2264_v31 }
  0xbd   :  { %7256 = vst [vmem:[#allocation23_spill] sm:$0xff] %v5923_v48  ;;  %1050 = vmatmul.mubr.f32.gmra.mrb[26].mxu1 %v4939_v36  ;;  %v4310_v44 = vpack.c.bf16 %v7258_v58, %v7257_v43  ;;  %v5934_v5 = vsub.f32 %v514_v55, %v5923_v48  ;;  %7259 = vst [vmem:[#allocation24_spill] sm:$0xff] %v5936_v9  ;;  %v6980_v12 = vand.u32 4294901760, %v5725_v25  ;;  %v7260_v21 = vand.u32 4294901760, %v5915_v3 }
  0xbe   :  { %3965 = vmatmul.mubr.f32.vlgmr.msra.gmra.mrb[24].mxu0 %v2112_v49  ;;  %1055 = vmatprep.mubr.f32.mxu1 %v4952_v40  ;;  %v4464_v33 = vpack.c.bf16 %v2258_v62, %v2251_v59  ;;  %v2272_v43 = vand.u32 4294901760, %v2271_v7  ;;  %v6982_v49 = vand.u32 4294901760, %v5736_v26  ;;  %v5945_v55 = vsub.f32 %v517_v46, %v5936_v9  ;;  %v523_v59 = vld [vmem:[#allocation7 + $0xa0] sm:$0xff]  ;;  %v529_v40 = vld [vmem:[#allocation7 + $0xd0] sm:$0xff] }
  0xbf   :  { %4459 = vmatpush3.bf16.msra.mxu0 %v4456_v56  ;;  %4303 = vmatpush3.bf16.msra.mxu1 %v4302_v11  ;;  %v2121_v36 = vsub.f32 %v5915_v3, %v7260_v21  ;;  %v6984_v31 = vand.u32 4294901760, %v5934_v5  ;;  %v2278_v56 = vsub.f32 %v5725_v25, %v6980_v12  ;;  %v5950_v11 = vand.u32 4294901760, %v520_v30 }
  0xc0   :  { %4461 = vmatprep.subr.bf16.mxu0 %v4460_v19  ;;  %4305 = vmatprep.subr.bf16.mxu1 %v4304_v61  ;;  %v4468_v62 = vpack.c.bf16 %v2272_v43, %v2265_v15  ;;  %v2285_v61 = vsub.f32 %v5736_v26, %v6982_v49  ;;  %v4312_v7 = vpack.c.bf16 %v5181_v50, %v5179_v17  ;;  %v6987_v58 = vand.u32 4294901760, %v5945_v55  ;;  %v7263_v50 = vld [vmem:[#allocation53_spill] sm:$0xff]  ;;  %v7264_v17 = vld [vmem:[#allocation54_spill] sm:$0xff] }
  0xc1   :  { %7261 = vst [vmem:[#allocation41_spill] sm:$0xff] %v5950_v11  ;;  %1057 = vmatmul.mubr.f32.gmra.mrb[28].mxu1 %v5434_v37  ;;  %v2122_v21 = vand.u32 4294901760, %v2121_v36  ;;  %v2131_v46 = vsub.f32 %v5934_v5, %v6984_v31  ;;  %v2279_v12 = vand.u32 4294901760, %v2278_v56  ;;  %v5964_v37 = vsub.f32 %v520_v30, %v5950_v11  ;;  %v526_v36 = vld [vmem:[#allocation7 + $0xb8] sm:$0xff] }
  0xc2   :  { %1062 = vmatprep.mubr.f32.mxu1 %v5436_v32  ;;  %v7262_v15 = vpack.c.bf16 %v7254_v10, %v7253_v18  ;;  %v2286_v43 = vand.u32 4294901760, %v2285_v61  ;;  %v4314_v49 = vpack.c.bf16 %v7264_v17, %v7263_v50  ;;  %v5971_v32 = vand.u32 4294901760, %v523_v59 }
  0xc3   :  { %4463 = vmatpush3.bf16.msra.mxu0 %v4460_v19  ;;  %v6988_v31 = vand.u32 4294901760, %v5763_v22  ;;  %3967 = vmatprep.mubr.f32.mxu0 %v2122_v21  ;;  %v2132_v56 = vand.u32 4294901760, %v2131_v46  ;;  %v2141_v30 = vsub.f32 %v5945_v55, %v6987_v58  ;;  %v6986_v19 = vand.u32 4294901760, %v5964_v37 }
  0xc4   :  { %4307 = vmatpush3.bf16.msra.mxu1 %v7262_v15  ;;  %7265 = vst [vmem:[#allocation42_spill] sm:$0xff] %v5971_v32  ;;  %4465 = vmatprep.subr.bf16.mxu0 %v4464_v33  ;;  %v6989_v10 = vand.u32 4294901760, %v5772_v52  ;;  %v4472_v18 = vpack.c.bf16 %v2286_v43, %v2279_v12  ;;  %v5981_v61 = vsub.f32 %v523_v59, %v5971_v32  ;;  %v5986_v46 = vand.u32 4294901760, %v526_v36 }
  0xc5   :  { %1064 = vmatmul.mubr.f32.gmra.mrb[30].mxu1 %v5441_v20  ;;  %4309 = vmatprep.subr.bf16.mxu1 %v4308_v6  ;;  %v2292_v21 = vsub.f32 %v5763_v22, %v6988_v31  ;;  %v2142_v15 = vand.u32 4294901760, %v2141_v30  ;;  %v2151_v50 = vsub.f32 %v5964_v37, %v6986_v19  ;;  %v5995_v12 = vand.u32 4294901760, %v529_v40  ;;  %v532_v30 = vld [vmem:[#allocation7 + $0xe8] sm:$0xff]  ;;  %v7351_v20 = vld [vmem:[#allocation60_spill] sm:$0xff] }
  0xc6   :  { %7266 = vst [vmem:[#allocation45_spill] sm:$0xff] %v5986_v46  ;;  %1069 = vmatprep.mubr.f32.mxu1 %v5494_v54  ;;  %3968 = vmatmul.mubr.f32.gmra.mrb[26].mxu0 %v2132_v56  ;;  %v2299_v6 = vsub.f32 %v5772_v52, %v6989_v10  ;;  %v6990_v59 = vand.u32 4294901760, %v5981_v61  ;;  %v5999_v17 = vsub.f32 %v526_v36, %v5986_v46  ;;  %v6991_v56 = vand.u32 4294901760, %v5818_v60 }
  0xc7   :  { %7267 = vst [vmem:[#allocation46_spill] sm:$0xff] %v5995_v12  ;;  %4467 = vmatpush3.bf16.msra.mxu0 %v4464_v33  ;;  %v2293_v43 = vand.u32 4294901760, %v2292_v21  ;;  %3970 = vmatprep.mubr.f32.mxu0 %v2142_v15  ;;  %v2152_v19 = vand.u32 4294901760, %v2151_v50  ;;  %v6003_v31 = vsub.f32 %v529_v40, %v5995_v12  ;;  %v6993_v10 = vand.u32 4294901760, %v5820_v38  ;;  %v535_v40 = vld [vmem:[#allocation7 + $0x100] sm:$0xff] }
  0xc8   :  { %4311 = vmatpush3.bf16.msra.mxu1 %v4310_v44  ;;  %4469 = vmatprep.subr.bf16.mxu0 %v4468_v62  ;;  %v2300_v58 = vand.u32 4294901760, %v2299_v6  ;;  %v2161_v44 = vsub.f32 %v5981_v61, %v6990_v59  ;;  %v6996_v33 = vand.u32 4294901760, %v5999_v17  ;;  %v2306_v36 = vsub.f32 %v5818_v60, %v6991_v56  ;;  %v538_v59 = vld [vmem:[#allocation7 + $0x118] sm:$0xff] }
  0xc9   :  { %1071 = vmatmul.mubr.f32.gmra.mrb[32].mxu1 %v5500_v35  ;;  %4313 = vmatprep.subr.bf16.mxu1 %v4312_v7  ;;  %v4316_v21 = vpack.c.bf16 %v5247_v47, %v5245_v4  ;;  %v6995_v7 = vand.u32 4294901760, %v6003_v31  ;;  %v2313_v50 = vsub.f32 %v5820_v38, %v6993_v10  ;;  %v6021_v6 = vand.u32 4294901760, %v532_v30 }
  0xca   :  { %1076 = vmatprep.mubr.f32.mxu1 %v5514_v14  ;;  %3971 = vmatmul.mubr.f32.gmra.mrb[28].mxu0 %v2152_v19  ;;  %v4476_v15 = vpack.c.bf16 %v2300_v58, %v2293_v43  ;;  %v2162_v56 = vand.u32 4294901760, %v2161_v44  ;;  %v2171_v47 = vsub.f32 %v5999_v17, %v6996_v33  ;;  %v2307_v4 = vand.u32 4294901760, %v2306_v36  ;;  %v7269_v14 = vld [vmem:[#allocation57_spill] sm:$0xff]  ;;  %v7270_v19 = vld [vmem:[#allocation58_spill] sm:$0xff]  ;;  %v7275_v33 = vld [vmem:[#allocation88_spill] sm:$0xff] }
  0xcb   :  { %7268 = vst [vmem:[#allocation49_spill] sm:$0xff] %v6021_v6  ;;  %4471 = vmatpush3.bf16.msra.mxu0 %v4468_v62  ;;  %v4318_v58 = vpack.c.bf16 %v7270_v19, %v7269_v14  ;;  %v2181_v43 = vsub.f32 %v6003_v31, %v6995_v7  ;;  %v2314_v10 = vand.u32 4294901760, %v2313_v50  ;;  %v6032_v35 = vsub.f32 %v532_v30, %v6021_v6 }
  0xcc   :  { %4315 = vmatpush3.bf16.msra.mxu1 %v4314_v49  ;;  %4473 = vmatprep.subr.bf16.mxu0 %v4472_v18  ;;  %v6034_v49 = vand.u32 4294901760, %v535_v40  ;;  %v2172_v62 = vand.u32 4294901760, %v2171_v47  ;;  %v2319_v44 = vand.u32 4294901760, %v5853_v28  ;;  %v2326_v14 = vand.u32 4294901760, %v5855_v1 }
  0xcd   :  { %4317 = vmatprep.subr.bf16.mxu1 %v4316_v21  ;;  %1078 = vmatmul.mubr.f32.gmra.mrb[34].mxu1 %v5539_v63  ;;  %v6039_v36 = vand.u32 4294901760, %v538_v59  ;;  %v2182_v19 = vand.u32 4294901760, %v2181_v43  ;;  %v4480_v50 = vpack.c.bf16 %v2314_v10, %v2307_v4  ;;  %v7000_v21 = vand.u32 4294901760, %v6032_v35 }
  0xce   :  { %7271 = vst [vmem:[#allocation50_spill] sm:$0xff] %v6034_v49  ;;  %3973 = vmatprep.mubr.f32.mxu0 %v2162_v56  ;;  %1083 = vmatprep.mubr.f32.mxu1 %v5562_v13  ;;  %v6044_v30 = vsub.f32 %v535_v40, %v6034_v49  ;;  %v2320_v56 = vsub.f32 %v5853_v28, %v2319_v44 }
  0xcf   :  { %7272 = vst [vmem:[#allocation53_spill] sm:$0xff] %v6039_v36  ;;  %4475 = vmatpush3.bf16.msra.mxu0 %v4472_v18  ;;  %v2327_v47 = vsub.f32 %v5855_v1, %v2326_v14  ;;  %v6049_v7 = vsub.f32 %v538_v59, %v6039_v36  ;;  %v2191_v10 = vsub.f32 %v6032_v35, %v7000_v21  ;;  %v7273_v18 = vld [vmem:[#allocation62_spill] sm:$0xff] }
  0xd0   :  { %4319 = vmatpush3.bf16.msra.mxu1 %v4318_v58  ;;  %4477 = vmatprep.subr.bf16.mxu0 %v4476_v15  ;;  %v7001_v4 = vand.u32 4294901760, %v6044_v30  ;;  %v4320_v40 = vpack.c.bf16 %v5287_v53, %v7200_v57  ;;  %v7274_v58 = vld [vmem:[#allocation63_spill] sm:$0xff]  ;;  %v2321_v13 = vand.u32 4294901760, %v2320_v56  ;;  %v7277_v53 = vld [vmem:[#allocation66_spill] sm:$0xff] }
  0xd1   :  { %3974 = vmatmul.mubr.f32.gmra.mrb[30].mxu0 %v2172_v62  ;;  %v4322_v43 = vpack.c.bf16 %v7274_v58, %v7273_v18  ;;  %1085 = vmatmul.mubr.f32.gmra.mrb[36].mxu1 %v7275_v33  ;;  %v2328_v59 = vand.u32 4294901760, %v2327_v47  ;;  %v7002_v63 = vand.u32 4294901760, %v6049_v7  ;;  %v7276_v62 = vld [vmem:[#allocation91_spill] sm:$0xff]  ;;  %v2192_v54 = vand.u32 4294901760, %v2191_v10  ;;  %v7279_v47 = vld [vmem:[#allocation68_spill] sm:$0xff]  ;;  %v7331_v33 = vld [vmem:[#allocation89_spill] sm:$0xff] }
  0xd2   :  { %3976 = vmatprep.mubr.f32.mxu0 %v2182_v19  ;;  %1090 = vmatprep.mubr.f32.mxu1 %v7276_v62  ;;  %v2201_v21 = vsub.f32 %v6044_v30, %v7001_v4  ;;  %v4324_v57 = vpack.c.bf16 %v7277_v53, %v5351_v0  ;;  %v7278_v56 = vld [vmem:[#allocation67_spill] sm:$0xff]  ;;  %v4504_v4 = vpack.c.bf16 %v5736_v26, %v5725_v25  ;;  %v7281_v0 = vld [vmem:[#allocation96_spill] sm:$0xff] }
  0xd3   :  { %4321 = vmatprep.subr.bf16.mxu1 %v4320_v40  ;;  %4479 = vmatpush3.bf16.msra.mxu0 %v4476_v15  ;;  %v2211_v19 = vsub.f32 %v6049_v7, %v7002_v63  ;;  %v4326_v18 = vpack.c.bf16 %v7279_v47, %v7278_v56  ;;  %v4484_v58 = vpack.c.bf16 %v2328_v59, %v2321_v13  ;;  %v7280_v40 = vld [vmem:[#allocation93_spill] sm:$0xff]  ;;  %v7282_v15 = vand.u32 4294901760, %v5490_v39 }
  0xd4   :  { %4323 = vmatpush3.bf16.msra.mxu1 %v4322_v43  ;;  %4481 = vmatprep.subr.bf16.mxu0 %v4480_v50  ;;  %v2202_v10 = vand.u32 4294901760, %v2201_v21  ;;  %v7283_v43 = vand.u32 4294901760, %v5492_v34  ;;  %v7285_v13 = vand.u32 4294901760, %v5554_v16  ;;  %v7286_v59 = vand.u32 4294901760, %v5616_v24 }
  0xd5   :  { %3977 = vmatmul.mubr.f32.gmra.mrb[32].mxu0 %v2192_v54  ;;  %1092 = vmatmul.mubr.f32.gmra.mrb[38].mxu1 %v7280_v40  ;;  %v2212_v62 = vand.u32 4294901760, %v2211_v19  ;;  %v7284_v54 = vand.u32 4294901760, %v5549_v41  ;;  %v7287_v19 = vand.u32 4294901760, %v5618_v23  ;;  %v7288_v56 = vand.u32 4294901760, %v5663_v2  ;;  %v7330_v40 = vld [vmem:[#allocation86_spill] sm:$0xff] }
  0xd6   :  { %4325 = vmatprep.subr.bf16.mxu1 %v4324_v57  ;;  %1097 = vmatprep.mubr.f32.mxu1 %v7281_v0  ;;  %v6080_v53 = vpack.c.bf16 %v7283_v43, %v7282_v15  ;;  %v7289_v47 = vand.u32 4294901760, %v5672_v45  ;;  %v7290_v15 = vand.u32 4294901760, %v5725_v25  ;;  %v7291_v43 = vand.u32 4294901760, %v5736_v26  ;;  %v7356_v0 = vld [vmem:[#allocation101_spill] sm:$0xff] }
  0xd7   :  { %3979 = vmatprep.mubr.f32.mxu0 %v2202_v10  ;;  %v6086_v21 = vpack.c.bf16 %v7285_v13, %v7284_v54  ;;  %v6092_v57 = vpack.c.bf16 %v7287_v19, %v7286_v59  ;;  %4483 = vmatpush3.bf16.msra.mxu0 %v4480_v50  ;;  %v7292_v13 = vand.u32 4294901760, %v5763_v22  ;;  %v7293_v63 = vand.u32 4294901760, %v5772_v52 }
  0xd8   :  { %4327 = vmatpush3.bf16.msra.mxu1 %v4326_v18  ;;  %v6098_v10 = vpack.c.bf16 %v7289_v47, %v7288_v56  ;;  %v6104_v54 = vpack.c.bf16 %v7291_v43, %v7290_v15  ;;  %4485 = vmatprep.subr.bf16.mxu0 %v4484_v58  ;;  %v4488_v50 = vpack.c.bf16 %v5492_v34, %v5490_v39  ;;  %v7294_v18 = vand.u32 4294901760, %v5818_v60  ;;  %v7296_v56 = vld [vmem:[#allocation97_spill] sm:$0xff]  ;;  %v7297_v47 = vld [vmem:[#allocation98_spill] sm:$0xff]  ;;  %v7299_v34 = vld [vmem:[#allocation99_spill] sm:$0xff] }
  0xd9   :  { %v6110_v59 = vpack.c.bf16 %v7293_v63, %v7292_v13  ;;  %3980 = vmatmul.mubr.f32.gmra.mrb[34].mxu0 %v2212_v62  ;;  %v7295_v19 = vand.u32 4294901760, %v5820_v38  ;;  %v6120_v26 = vpack.c.bf16 %v2326_v14, %v2319_v44  ;;  %1099 = vmatmul.mubr.f32.gmra.mrb[40].mxu1 %v7296_v56  ;;  %v4492_v39 = vpack.c.bf16 %v5554_v16, %v5549_v41  ;;  %v7300_v62 = vld [vmem:[#allocation34_spill] sm:$0xff]  ;;  %v7304_v16 = vld [vmem:[#allocation105_spill] sm:$0xff]  ;;  %v7308_v13 = vld [vmem:[#allocation31_spill] sm:$0xff] }
  0xda   :  { %4014 = vmatprep.mubr.f32.mxu0 %v5829_v27  ;;  %1104 = vmatprep.mubr.f32.mxu1 %v7297_v47  ;;  %v7301_v44 = vld [vmem:[#allocation18_spill] sm:$0xff]  ;;  %v4496_v14 = vpack.c.bf16 %v5618_v23, %v5616_v24  ;;  %v4500_v41 = vpack.c.bf16 %v5672_v45, %v5663_v2  ;;  %v7305_v43 = vld [vmem:[#allocation29_spill] sm:$0xff]  ;;  %v4508_v45 = vpack.c.bf16 %v5772_v52, %v5763_v22 }
  0xdb   :  { %v6118_v25 = vpack.c.bf16 %v7295_v19, %v7294_v18  ;;  %4329 = vmatprep.subr.msk.bf16.mxu1 %vm4984_vm7, %v7095_v51  ;;  %4487 = vmatpush3.bf16.msra.mxu0 %v4484_v58  ;;  %v7302_v15 = vld [vmem:[#allocation102_spill] sm:$0xff]  ;;  %v7303_v58 = vld [vmem:[#allocation104_spill] sm:$0xff]  ;;  %v4512_v22 = vpack.c.bf16 %v5820_v38, %v5818_v60  ;;  %v4516_v38 = vpack.c.bf16 %v5855_v1, %v5853_v28  ;;  %v7324_v28 = vld [vmem:[#allocation83_spill] sm:$0xff] }
  0xdc   :  { %4489 = vmatprep.subr.bf16.mxu0 %v4488_v50  ;;  %v7306_v24 = vld [vmem:[#allocation30_spill] sm:$0xff]  ;;  %v7318_v60 = vld [vmem:[#allocation76_spill] sm:$0xff]  ;;  %v7328_v47 = vld [vmem:[#allocation13_spill] sm:$0xff] }
  0xdd   :  { %1106 = vmatmul.mubr.f32.gmra.mrb[42].mxu1 %v7299_v34  ;;  %v7311_v18 = vld [vmem:[#allocation70_spill] sm:$0xff]  ;;  %v6198_v34 = vld [vmem:[%s6749_s2] sm:$0xf]  ;;  %v7411_v19 = vld [vmem:[#allocation84_spill] sm:$0xff] }
  0xde   :  { %4015 = vmatmul.mubr.f32.vlgmr.msra.gmra.mrb[24].mxu0 %v7300_v62  ;;  %1111 = vmatprep.mubr.f32.mxu1 %v7301_v44  ;;  %v7314_v52 = vld [vmem:[#allocation74_spill] sm:$0xff]  ;;  %v62_v56 = vrot.slane %v6198_v34, %v7328_v47  ;;  %v7354_v47 = vld [vmem:[#allocation17_spill] sm:$0xff]  ;;  %v7371_v23 = vand.u32 4294901760, %v7311_v18 }
  0xdf   :  { %4491 = vmatpush3.bf16.msra.mxu0 %v4488_v50  ;;  %4017 = vmatprep.mubr.f32.mxu0 %v5904_v8  ;;  %v7310_v50 = vld [vmem:[#allocation69_spill] sm:$0xff]  ;;  %v7323_v44 = vld [vmem:[#allocation82_spill] sm:$0xff]  ;;  %v7352_v8 = vld [vmem:[#allocation12_spill] sm:$0xff] }
  0xe0   :  { %4493 = vmatprep.subr.bf16.mxu0 %v4492_v39  ;;  %64 = vbcast.lane.b32.xlu0 %v62_v56, 256  ;;  %v7034_v62 = vsub.s32 1, %v7352_v8  ;;  %v7422_v1 = vsub.s32 1, %v7352_v8 }
  0xe1   :  { %1113 = vmatmul.mubr.f32.gmra.mrb[44].mxu1 %v7302_v15  ;;  %72 = vbcast.lane.b32.xlu1 %v62_v56, 272 }
  0xe2   :  { %1118 = vmatprep.mubr.f32.mxu1 %v7303_v58  ;;  %4018 = vmatmul.mubr.f32.gmra.mrb[26].mxu0 %v5923_v48  ;;  %v7320_v58 = vld [vmem:[#allocation80_spill] sm:$0xff]  ;;  %v7349_v48 = vld [vmem:[#allocation65_spill] sm:$0xff]  ;;  %v81_v63 = vrot.slane %v6198_v34, %v7034_v62  ;;  %v99_v62 = vsub.s32 2, %v7352_v8 }
  0xe3   :  { %4495 = vmatpush3.bf16.msra.mxu0 %v4492_v39  ;;  %4020 = vmatprep.mubr.f32.mxu0 %v5936_v9  ;;  %v7347_v9 = vld [vmem:[#allocation16_spill] sm:$0xff]  ;;  %v7413_v39 = vld [vmem:[#allocation103_spill] sm:$0xff] }
  0xe4   :  { %4497 = vmatprep.subr.bf16.mxu0 %v4496_v14  ;;  %68 = vbcast.lane.b32.xlu0 %v62_v56, 264 }
  0xe5   :  { %1120 = vmatmul.mubr.f32.gmra.mrb[46].mxu1 %v7304_v16  ;;  %v7319_v16 = vld [vmem:[#allocation38_spill] sm:$0xff]  ;;  %76 = vbcast.lane.b32.xlu1 %v62_v56, 280  ;;  %v7364_v56 = vld [vmem:[#allocation21_spill] sm:$0xff] }
  0xe6   :  { %1255 = vmatprep.mubr.f32.mxu1 %v7305_v43  ;;  %4021 = vmatmul.mubr.f32.gmra.mrb[28].mxu0 %v5950_v11  ;;  %v7346_v11 = vld [vmem:[#allocation15_spill] sm:$0xff] }
  0xe7   :  { %4499 = vmatpush3.bf16.msra.mxu0 %v4496_v14  ;;  %4023 = vmatprep.mubr.f32.mxu0 %v5971_v32  ;;  %v7315_v14 = vld [vmem:[#allocation75_spill] sm:$0xff]  ;;  %v7344_v32 = vld [vmem:[#allocation64_spill] sm:$0xff] }
  0xe8   :  { %4501 = vmatprep.subr.bf16.mxu0 %v4500_v41  ;;  %83 = vbcast.lane.b32.xlu0 %v81_v63, 256  ;;  %v7374_v2 = vand.u32 4294901760, %v7315_v14 }
  0xe9   :  { %1258 = vmatmul.mubr.f32.vlgmr.msra.gmra.mrb[48].mxu1 %v7306_v24  ;;  %87 = vbcast.lane.b32.xlu1 %v81_v63, 264 }
  0xea   :  { %4331 = vmatpush3.bf16.msk.msra.mxu1 %vm4974_vm6, %v7095_v51  ;;  %1264 = vmatprep.mubr.f32.mxu1 %v7308_v13 }
  0xeb   :  { %4503 = vmatpush3.bf16.msra.mxu0 %v4500_v41  ;;  %4333 = vmatprep.subr.msk.bf16.mxu1 %vm5001_vm10, %v7095_v51 }
  0xec   :  { %4505 = vmatprep.subr.bf16.mxu0 %v4504_v4  ;;  %4024 = vmatmul.mubr.f32.gmra.mrb[30].mxu0 %v5986_v46  ;;  %v7341_v46 = vld [vmem:[#allocation92_spill] sm:$0xff] }
  0xed   :  { %1267 = vmatmul.mubr.f32.gmra.mrb[50].mxu1 %v7310_v50  ;;  %4026 = vmatprep.mubr.f32.mxu0 %v5995_v12  ;;  %v7339_v12 = vld [vmem:[#allocation61_spill] sm:$0xff] }
  0xee   :  { %1273 = vmatprep.mubr.f32.mxu1 %v7311_v18  ;;  %4335 = vmatpush3.bf16.msk.msra.mxu1 %vm5029_vm11, %v7095_v51 }
  0xef   :  { %4507 = vmatpush3.bf16.msra.mxu0 %v4504_v4  ;;  %4337 = vmatprep.subr.msk.bf16.mxu1 %vm5052_vm14, %v7095_v51  ;;  %v7417_v4 = vld [vmem:[#allocation23_spill] sm:$0xff] }
  0xf0   :  { %4509 = vmatprep.subr.bf16.mxu0 %v4508_v45  ;;  %4027 = vmatmul.mubr.f32.gmra.mrb[32].mxu0 %v6021_v6  ;;  %v7338_v6 = vld [vmem:[#allocation94_spill] sm:$0xff] }
  0xf1   :  { %1276 = vmatmul.mubr.f32.gmra.mrb[52].mxu1 %v7314_v52  ;;  %4029 = vmatprep.mubr.f32.mxu0 %v6034_v49  ;;  %v7336_v49 = vld [vmem:[#allocation59_spill] sm:$0xff] }
  0xf2   :  { %1282 = vmatprep.mubr.f32.mxu1 %v7315_v14  ;;  %4339 = vmatpush3.bf16.msk.msra.mxu1 %vm5083_vm1, %v7095_v51  ;;  %v7415_v14 = vld [vmem:[#allocation106_spill] sm:$0xff] }
  0xf3   :  { %4511 = vmatpush3.bf16.msra.mxu0 %v4508_v45  ;;  %4341 = vmatprep.subr.msk.bf16.mxu1 %vm5115_vm5, %v7095_v51  ;;  %v7416_v41 = vand.u32 4294901760, %v7415_v14  ;;  %v7419_v45 = vld [vmem:[#allocation92_spill] sm:$0xff] }
  0xf4   :  { %4513 = vmatprep.subr.bf16.mxu0 %v4512_v22  ;;  %4030 = vmatmul.mubr.f32.gmra.mrb[34].mxu0 %v6039_v36  ;;  %v7335_v36 = vld [vmem:[#allocation90_spill] sm:$0xff] }
  0xf5   :  { %1285 = vmatmul.mubr.f32.gmra.mrb[54].mxu1 %v7318_v60  ;;  %4064 = vmatprep.mubr.f32.mxu0 %v7319_v16  ;;  %v7391_v15 = vand.u32 4294901760, %v7335_v36 }
  0xf6   :  { %1291 = vmatprep.mubr.f32.mxu1 %v7320_v58  ;;  %4343 = vmatpush3.bf16.msk.msra.mxu1 %vm5139_vm9, %v7095_v51 }
  0xf7   :  { %4515 = vmatpush3.bf16.msra.mxu0 %v4512_v22  ;;  %4345 = vmatprep.subr.msk.bf16.mxu1 %vm5164_vm15, %v7095_v51  ;;  %v7326_v22 = vld [vmem:[#allocation55_spill] sm:$0xff] }
  0xf8   :  { %4517 = vmatprep.subr.bf16.mxu0 %v4516_v38  ;;  %vm7327_vm4 = vnez %v7326_v22  ;;  %91 = vbcast.lane.b32.xlu0 %v81_v63, 272 }
  0xf9   :  { %1294 = vmatmul.mubr.f32.gmra.mrb[56].mxu1 %v7323_v44  ;;  %95 = vbcast.lane.b32.xlu1 %v81_v63, 280  ;;  %v7424_v63 = vld [vmem:[#allocation41_spill] sm:$0xff] }
  0xfa   :  { %1300 = vmatprep.mubr.f32.mxu1 %v7324_v28  ;;  %4347 = vmatpush3.bf16.msk.msra.mxu1 %vm5196_vm3, %v7095_v51 }
  0xfb   :  { %4519 = vmatpush3.bf16.msra.mxu0 %v4516_v38  ;;  %4349 = vmatprep.subr.msk.bf16.mxu1 %vm7327_vm4, %v7095_v51  ;;  %v7332_v38 = vld [vmem:[#allocation56_spill] sm:$0xff]  ;;  %vm7337_vm4 = vnez %v7336_v49 }
  0xfc   :  { %4521 = vmatprep.subr.msk.bf16.mxu0 %vm5482_vm13, %v7095_v51  ;;  %vm7333_vm12 = vnez %v7332_v38 }
  0xfd   :  { %1303 = vmatmul.mubr.f32.gmra.mrb[58].mxu1 %v7330_v40 }
  0xfe   :  { %4065 = vmatmul.mubr.f32.vlgmr.msra.gmra.mrb[24].mxu0 %v5885_v42  ;;  %1309 = vmatprep.mubr.f32.mxu1 %v7331_v33 }
  0xff   :  { %4523 = vmatpush3.bf16.msk.msra.mxu0 %vm5482_vm13, %v7095_v51  ;;  %4351 = vmatpush3.bf16.msk.msra.mxu1 %vm7333_vm12, %v7095_v51  ;;  %vm7340_vm13 = vnez %v7339_v12  ;;  %vm7342_vm12 = vnez %v7341_v46  ;;  %v7353_v46 = vld [vmem:[#allocation100_spill] sm:$0xff] }
 0x100   :  { %4525 = vmatprep.subr.msk.bf16.mxu0 %vm5535_vm8, %v7095_v51  ;;  %4067 = vmatprep.mubr.f32.mxu0 %v5915_v3 }
 0x101   :  { %1312 = vmatmul.mubr.f32.gmra.mrb[60].mxu1 %v7335_v36  ;;  %4353 = vmatprep.subr.msk.bf16.mxu1 %vm7337_vm4, %v7095_v51  ;;  %vm7345_vm4 = vnez %v7344_v32  ;;  %v7400_v36 = vld [vmem:[#allocation100_spill] sm:$0xff] }
 0x102   :  { %1318 = vmatprep.mubr.f32.mxu1 %v7338_v6  ;;  %4068 = vmatmul.mubr.f32.gmra.mrb[26].mxu0 %v5934_v5  ;;  %v7401_v32 = vand.u32 4294901760, %v7400_v36 }
 0x103   :  { %4527 = vmatpush3.bf16.msk.msra.mxu0 %vm5535_vm8, %v7095_v51  ;;  %4355 = vmatpush3.bf16.msk.msra.mxu1 %vm7340_vm13, %v7095_v51  ;;  %vm7348_vm8 = vnez %v7347_v9  ;;  %vm7350_vm13 = vnez %v7349_v48  ;;  %v7358_v9 = vld [vmem:[#allocation20_spill] sm:$0xff]  ;;  %v7404_v48 = vld [vmem:[#allocation101_spill] sm:$0xff] }
 0x104   :  { %4529 = vmatprep.subr.msk.bf16.mxu0 %vm7342_vm12, %v7095_v51  ;;  %4070 = vmatprep.mubr.f32.mxu0 %v5945_v55 }
 0x105   :  { %1321 = vmatmul.mubr.f32.gmra.mrb[62].mxu1 %v7343_v29  ;;  %4357 = vmatprep.subr.msk.bf16.mxu1 %vm7345_vm4, %v7095_v51 }
 0x106   :  { %1327 = vmatprep.mubr.f32.mxu1 %v7346_v11  ;;  %4071 = vmatmul.mubr.f32.gmra.mrb[28].mxu0 %v5964_v37 }
 0x107   :  { %4531 = vmatpush3.bf16.msk.msra.mxu0 %vm7342_vm12, %v7095_v51  ;;  %4073 = vmatprep.mubr.f32.mxu0 %v5981_v61  ;;  %vm7355_vm12 = vnez %v7354_v47  ;;  %v7362_v47 = vand.u32 4294901760, %v7319_v16  ;;  %v7367_v16 = vand.u32 4294901760, %v7306_v24  ;;  %v7370_v24 = vand.u32 4294901760, %v5885_v42 }
 0x108   :  { %4533 = vmatprep.subr.msk.bf16.mxu0 %vm7348_vm8, %v7095_v51  ;;  %4359 = vmatpush3.bf16.msk.msra.mxu1 %vm7350_vm13, %v7095_v51  ;;  %v7373_v42 = vand.u32 4294901760, %v5915_v3  ;;  %v7376_v3 = vand.u32 4294901760, %v7318_v60  ;;  %v7418_v60 = vld [vmem:[#allocation24_spill] sm:$0xff] }
 0x109   :  { %1330 = vmatmul.mubr.f32.gmra.mrb[64].mxu1 %v7351_v20  ;;  %4393 = vmatprep.subr.msk.bf16.mxu1 %vm4984_vm7, %v7095_v51  ;;  %vm7359_vm7 = vnez %v7358_v9  ;;  %v7361_v20 = vld [vmem:[#allocation106_spill] sm:$0xff]  ;;  %v7441_v9 = vld [vmem:[#allocation79_spill] sm:$0xff] }
 0x10a   :  { %1336 = vmatprep.mubr.f32.mxu1 %v7353_v46  ;;  %4074 = vmatmul.mubr.f32.gmra.mrb[30].mxu0 %v5999_v17  ;;  %v7357_v46 = vld [vmem:[#allocation19_spill] sm:$0xff] }
 0x10b   :  { %4535 = vmatpush3.bf16.msk.msra.mxu0 %vm7348_vm8, %v7095_v51  ;;  %4076 = vmatprep.mubr.f32.mxu0 %v6003_v31 }
 0x10c   :  { %4537 = vmatprep.subr.msk.bf16.mxu0 %vm7355_vm12, %v7095_v51 }
 0x10d   :  { %1339 = vmatmul.mubr.f32.gmra.mrb[66].mxu1 %v7356_v0  ;;  %v7360_v0 = vld [vmem:[#allocation103_spill] sm:$0xff] }
 0x10e   :  { %1345 = vmatprep.mubr.f32.mxu1 %v7357_v46  ;;  %4077 = vmatmul.mubr.f32.gmra.mrb[32].mxu0 %v6032_v35 }
 0x10f   :  { %4539 = vmatpush3.bf16.msk.msra.mxu0 %vm7355_vm12, %v7095_v51  ;;  %4079 = vmatprep.mubr.f32.mxu0 %v6044_v30 }
 0x110   :  { %4541 = vmatprep.subr.msk.bf16.mxu0 %vm7359_vm7, %v7095_v51 }
 0x111   :  { %1348 = vmatmul.mubr.f32.gmra.mrb[68].mxu1 %v7360_v0  ;;  %v7365_v0 = vand.u32 4294901760, %v7305_v43  ;;  %v7369_v43 = vand.u32 4294901760, %v7310_v50  ;;  %v7377_v50 = vand.u32 4294901760, %v5945_v55  ;;  %v7380_v55 = vand.u32 4294901760, %v7323_v44 }
 0x112   :  { %1354 = vmatprep.mubr.f32.mxu1 %v7361_v20  ;;  %4080 = vmatmul.mubr.f32.gmra.mrb[34].mxu0 %v6049_v7  ;;  %v6296_v20 = vrot.slane %v6198_v34, %v99_v62  ;;  %v7384_v44 = vand.u32 4294901760, %v6003_v31  ;;  %v7390_v31 = vand.u32 4294901760, %v6044_v30  ;;  %v7405_v30 = vand.u32 4294901760, %v7404_v48 }
 0x113   :  { %4543 = vmatpush3.bf16.msk.msra.mxu0 %vm7359_vm7, %v7095_v51  ;;  %4114 = vmatprep.mubr.f32.mxu0 %v7362_v47 }
 0x114   :  { %4545 = vmatprep.subr.msk.bf16.mxu0 %vm5810_vm2, %v7095_v51  ;;  %102 = vbcast.lane.b32.xlu0 %v6296_v20, 256 }
 0x115   :  { %1357 = vmatmul.mubr.f32.gmra.mrb[70].mxu1 %v7364_v56  ;;  %106 = vbcast.lane.b32.xlu1 %v6296_v20, 264 }
 0x116   :  { %1461 = vmatprep.mubr.f32.mxu1 %v7365_v0  ;;  %v7368_v0 = vand.u32 4294901760, %v7308_v13  ;;  %v7372_v13 = vand.u32 4294901760, %v7314_v52  ;;  %v7414_v52 = vand.u32 4294901760, %v7413_v39 }
 0x117   :  { %4547 = vmatpush3.bf16.msk.msra.mxu0 %vm5810_vm2, %v7095_v51 }
 0x118   :  { %4549 = vmatprep.subr.msk.bf16.mxu0 %vm5845_vm0, %v7095_v51  ;;  %110 = vbcast.lane.b32.xlu0 %v6296_v20, 272 }
 0x119   :  { %1465 = vmatmul.mubr.f32.vlgmr.msra.gmra.mrb[72].mxu1 %v7367_v16  ;;  %114 = vbcast.lane.b32.xlu1 %v6296_v20, 280  ;;  %v197_v20 = vld [vmem:[%s6750_s3] sm:$0xf]  ;;  %v7425_v16 = vld [vmem:[#allocation42_spill] sm:$0xff]  ;;  %s4801_s3 = smov [#allocation8]  }
 0x11a   :  { %4395 = vmatpush3.bf16.msk.msra.mxu1 %vm4974_vm6, %v7095_v51  ;;  %1472 = vmatprep.mubr.f32.mxu1 %v7368_v0  ;;  %vm7386_vm6 = vnez %v7326_v22  ;;  %v220_v22 = vrot.slane %v197_v20, %v7422_v1  ;;  %s3149_s6 = sshll.u32 %s4801_s3, 4  ;;  %s3150_s6 = int_to_ptr.vmem [resolvable:$true] %s3149_s6 }
 0x11b   :  { %4551 = vmatpush3.bf16.msk.msra.mxu0 %vm5845_vm0, %v7095_v51  ;;  %4397 = vmatprep.subr.msk.bf16.mxu1 %vm5001_vm10, %v7095_v51  ;;  %vm7389_vm10 = vnez %v7332_v38  ;;  %v7423_v38 = vld [vmem:[#allocation25_spill] sm:$0xff]  ;;  %s4765_s7 = scalar_lea.vmem %s3150_s6, 3584  ;;  %p4770_p11 = scmp.lt.s32.totalorder %s3150_s6, %s3150_s6 }
 0x11c   :  { %4553 = vmatprep.subr.bf16.mxu0 %v6080_v53  ;;  %p4766_p10 = scmp.ne.s32.totalorder %s3150_s6, %s4765_s7  ;;  %p4771_p12 = scmp.lt.s32.totalorder %s4765_s7, %s4765_s7 }
 0x11d   :  { %1476 = vmatmul.mubr.f32.gmra.mrb[74].mxu1 %v7369_v43  ;;  %v7428_v43 = vld [vmem:[#allocation27_spill] sm:$0xff] }
 0x11e   :  { %4115 = vmatmul.mubr.f32.vlgmr.msra.gmra.mrb[24].mxu0 %v7370_v24  ;;  %1483 = vmatprep.mubr.f32.mxu1 %v7371_v23  ;;  %v7429_v24 = vld [vmem:[#allocation45_spill] sm:$0xff]  ;;  %v7430_v23 = vld [vmem:[#allocation46_spill] sm:$0xff]  ;;  %p4772_p13 = por %p4771_p12, %p4770_p11 }
 0x11f   :  { %4555 = vmatpush3.bf16.msra.mxu0 %v6080_v53  ;;  %4399 = vmatpush3.bf16.msk.msra.mxu1 %vm5029_vm11, %v7095_v51  ;;  %v7375_v53 = vand.u32 4294901760, %v5934_v5  ;;  %v7378_v5 = vand.u32 4294901760, %v7320_v58  ;;  %v7381_v58 = vand.u32 4294901760, %v5981_v61  ;;  %v7385_v61 = vand.u32 4294901760, %v7330_v40 }
 0x120   :  { %4557 = vmatprep.subr.bf16.mxu0 %v6086_v21  ;;  %4401 = vmatprep.subr.msk.bf16.mxu1 %vm5052_vm14, %v7095_v51  ;;  %v118_v40 = vsub.s32 3, %v7352_v8  ;;  %vm7392_vm11 = vnez %v7336_v49  ;;  %vm7395_vm14 = vnez %v7339_v12  ;;  %v7442_v8 = vld [vmem:[#allocation81_spill] sm:$0xff]  ;;  %p4773_p0 = pnand %p4772_p13, %p4766_p10 }
 0x121   :  { %1487 = vmatmul.mubr.f32.gmra.mrb[76].mxu1 %v7372_v13  ;;  %4117 = vmatprep.mubr.f32.mxu0 %v7373_v42  ;;  %v7432_v42 = vld [vmem:[#allocation28_spill] sm:$0xff] }
 0x122   :  { %1494 = vmatprep.mubr.f32.mxu1 %v7374_v2  ;;  %4118 = vmatmul.mubr.f32.gmra.mrb[26].mxu0 %v7375_v53  ;;  %v119_v49 = vrot.slane %v6198_v34, %v118_v40  ;;  %v7408_v34 = vld [vmem:[#allocation19_spill] sm:$0xff]  ;;  %v239_v2 = vrot.slane %v197_v20, %v99_v62  ;;  %v7433_v53 = vld [vmem:[#allocation32_spill] sm:$0xff]  ;;  %v7438_v62 = vld [vmem:[#allocation53_spill] sm:$0xff] }
 0x123   :  { %4559 = vmatpush3.bf16.msra.mxu0 %v6086_v21  ;;  %4403 = vmatpush3.bf16.msk.msra.mxu1 %vm5083_vm1, %v7095_v51  ;;  %v7379_v21 = vand.u32 4294901760, %v5964_v37  ;;  %v7382_v37 = vand.u32 4294901760, %v7324_v28  ;;  %v7409_v18 = vand.u32 4294901760, %v7408_v34  ;;  %v7421_v28 = vand.u32 4294901760, %v7364_v56  ;;  %v7427_v56 = vld [vmem:[#allocation26_spill] sm:$0xff] }
 0x124   :  { %4561 = vmatprep.subr.bf16.mxu0 %v6092_v57  ;;  %4405 = vmatprep.subr.msk.bf16.mxu1 %vm5115_vm5, %v7095_v51  ;;  %vm7412_vm5 = vnez %v7411_v19 }
 0x125   :  { %1498 = vmatmul.mubr.f32.gmra.mrb[78].mxu1 %v7376_v3  ;;  %4120 = vmatprep.mubr.f32.mxu0 %v7377_v50  ;;  %v7434_v3 = vld [vmem:[#allocation49_spill] sm:$0xff]  ;;  %v7435_v50 = vld [vmem:[#allocation50_spill] sm:$0xff] }
 0x126   :  { %1505 = vmatprep.mubr.f32.mxu1 %v7378_v5  ;;  %4121 = vmatmul.mubr.f32.gmra.mrb[28].mxu0 %v7379_v21  ;;  %v7436_v5 = vld [vmem:[#allocation71_spill] sm:$0xff]  ;;  %v7437_v21 = vld [vmem:[#allocation72_spill] sm:$0xff] }
 0x127   :  { %4563 = vmatpush3.bf16.msra.mxu0 %v6092_v57  ;;  %4407 = vmatpush3.bf16.msk.msra.mxu1 %vm5139_vm9, %v7095_v51  ;;  %v7383_v57 = vand.u32 4294901760, %v5999_v17  ;;  %v7387_v17 = vand.u32 4294901760, %v7331_v33  ;;  %v7394_v33 = vand.u32 4294901760, %v6049_v7  ;;  %v7397_v7 = vand.u32 4294901760, %v7346_v11  ;;  %v7402_v11 = vld [vmem:[#allocation77_spill] sm:$0xff] }
 0x128   :  { %4565 = vmatprep.subr.bf16.mxu0 %v6098_v10  ;;  %4409 = vmatprep.subr.msk.bf16.mxu1 %vm5164_vm15, %v7095_v51  ;;  %vm7403_vm1 = vnez %v7402_v11  ;;  %vm7420_vm9 = vnez %v7419_v45  ;;  %v7451_v45 = vld [vmem:[#allocation99_spill] sm:$0xff] }
 0x129   :  { %1509 = vmatmul.mubr.f32.gmra.mrb[80].mxu1 %v7380_v55  ;;  %4123 = vmatprep.mubr.f32.mxu0 %v7381_v58  ;;  %v7439_v55 = vld [vmem:[#allocation73_spill] sm:$0xff] }
 0x12a   :  { %1516 = vmatprep.mubr.f32.mxu1 %v7382_v37  ;;  %4124 = vmatmul.mubr.f32.gmra.mrb[30].mxu0 %v7383_v57  ;;  %v258_v37 = vrot.slane %v197_v20, %v118_v40  ;;  %v7440_v57 = vld [vmem:[#allocation78_spill] sm:$0xff] }
 0x12b   :  { %4567 = vmatpush3.bf16.msra.mxu0 %v6098_v10  ;;  %4411 = vmatpush3.bf16.msk.msra.mxu1 %vm5196_vm3, %v7095_v51  ;;  %v7388_v10 = vand.u32 4294901760, %v6032_v35  ;;  %v7393_v35 = vand.u32 4294901760, %v7338_v6  ;;  %v7396_v6 = vand.u32 4294901760, %v7343_v29  ;;  %v7398_v29 = vld [vmem:[#allocation60_spill] sm:$0xff] }
 0x12c   :  { %4569 = vmatprep.subr.bf16.mxu0 %v6104_v54  ;;  %4126 = vmatprep.mubr.f32.mxu0 %v7384_v44  ;;  %v7399_v12 = vand.u32 4294901760, %v7398_v29 }
 0x12d   :  { %1520 = vmatmul.mubr.f32.gmra.mrb[82].mxu1 %v7385_v61  ;;  %4413 = vmatprep.subr.msk.bf16.mxu1 %vm7386_vm6, %v7095_v51 }
 0x12e   :  { %1527 = vmatprep.mubr.f32.mxu1 %v7387_v17  ;;  %4127 = vmatmul.mubr.f32.gmra.mrb[32].mxu0 %v7388_v10 }
 0x12f   :  { %4571 = vmatpush3.bf16.msra.mxu0 %v6104_v54  ;;  %4415 = vmatpush3.bf16.msk.msra.mxu1 %vm7389_vm10, %v7095_v51  ;;  %v7406_v54 = vld [vmem:[#allocation13_spill] sm:$0xff] }
 0x130   :  { %4573 = vmatprep.subr.bf16.mxu0 %v6110_v59  ;;  %4129 = vmatprep.mubr.f32.mxu0 %v7390_v31  ;;  %v7443_v31 = vld [vmem:[#allocation85_spill] sm:$0xff] }
 0x131   :  { %1531 = vmatmul.mubr.f32.gmra.mrb[84].mxu1 %v7391_v15  ;;  %4417 = vmatprep.subr.msk.bf16.mxu1 %vm7392_vm11, %v7095_v51  ;;  %v7444_v15 = vld [vmem:[#allocation87_spill] sm:$0xff] }
 0x132   :  { %1538 = vmatprep.mubr.f32.mxu1 %v7393_v35  ;;  %4130 = vmatmul.mubr.f32.gmra.mrb[34].mxu0 %v7394_v33 }
 0x133   :  { %4575 = vmatpush3.bf16.msra.mxu0 %v6110_v59  ;;  %4419 = vmatpush3.bf16.msk.msra.mxu1 %vm7395_vm14, %v7095_v51  ;;  %v201_v59 = vrot.slane %v197_v20, %v7406_v54  ;;  %v7447_v20 = vld [vmem:[#allocation93_spill] sm:$0xff] }
 0x134   :  { %4577 = vmatprep.subr.bf16.mxu0 %v6118_v25  ;;  %4164 = vmatprep.mubr.f32.mxu0 %v5829_v27 }
 0x135   :  { %1542 = vmatmul.mubr.f32.gmra.mrb[86].mxu1 %v7396_v6  ;;  %4421 = vmatprep.subr.msk.bf16.mxu1 %vm7345_vm4, %v7095_v51 }
 0x136   :  { %1549 = vmatprep.mubr.f32.mxu1 %v7397_v7  ;;  %121 = vbcast.lane.b32.xlu0 %v119_v49, 256  ;;  %v7446_v7 = vld [vmem:[#allocation91_spill] sm:$0xff] }
 0x137   :  { %4579 = vmatpush3.bf16.msra.mxu0 %v6118_v25  ;;  %4423 = vmatpush3.bf16.msk.msra.mxu1 %vm7350_vm13, %v7095_v51  ;;  %v7407_v25 = vld [vmem:[#allocation34_spill] sm:$0xff] }
 0x138   :  { %4581 = vmatprep.subr.bf16.mxu0 %v6120_v26  ;;  %125 = vbcast.lane.b32.xlu1 %v119_v49, 264 }
 0x139   :  { %1553 = vmatmul.mubr.f32.gmra.mrb[88].mxu1 %v7399_v12 }
 0x13a   :  { %1560 = vmatprep.mubr.f32.mxu1 %v7401_v32  ;;  %129 = vbcast.lane.b32.xlu0 %v119_v49, 272 }
 0x13b   :  { %4583 = vmatpush3.bf16.msra.mxu0 %v6120_v26  ;;  %v7410_v26 = vld [vmem:[#allocation35_spill] sm:$0xff] }
 0x13c   :  { %4585 = vmatprep.subr.msk.bf16.mxu0 %vm7403_vm1, %v7095_v51  ;;  %133 = vbcast.lane.b32.xlu1 %v119_v49, 280 }
 0x13d   :  { %1564 = vmatmul.mubr.f32.gmra.mrb[90].mxu1 %v7405_v30  ;;  %v7448_v30 = vld [vmem:[#allocation96_spill] sm:$0xff] }
 0x13e   :  { %4165 = vmatmul.mubr.f32.vlgmr.msra.gmra.mrb[24].mxu0 %v7407_v25  ;;  %1571 = vmatprep.mubr.f32.mxu1 %v7409_v18 }
 0x13f   :  { %4587 = vmatpush3.bf16.msk.msra.mxu0 %vm7403_vm1, %v7095_v51  ;;  %4167 = vmatprep.mubr.f32.mxu0 %v7410_v26 }
 0x140   :  { %4589 = vmatprep.subr.msk.bf16.mxu0 %vm7412_vm5, %v7095_v51  ;;  %203 = vbcast.lane.b32.xlu0 %v201_v59, 256 }
 0x141   :  { %1575 = vmatmul.mubr.f32.gmra.mrb[92].mxu1 %v7414_v52  ;;  %207 = vbcast.lane.b32.xlu1 %v201_v59, 264  ;;  %v7450_v52 = vld [vmem:[#allocation98_spill] sm:$0xff] }
 0x142   :  { %1582 = vmatprep.mubr.f32.mxu1 %v7416_v41  ;;  %4168 = vmatmul.mubr.f32.gmra.mrb[26].mxu0 %v7417_v4 }
 0x143   :  { %4591 = vmatpush3.bf16.msk.msra.mxu0 %vm7412_vm5, %v7095_v51  ;;  %4170 = vmatprep.mubr.f32.mxu0 %v7418_v60 }
 0x144   :  { %4593 = vmatprep.subr.msk.bf16.mxu0 %vm7420_vm9, %v7095_v51  ;;  %211 = vbcast.lane.b32.xlu0 %v201_v59, 272 }
 0x145   :  { %1586 = vmatmul.mubr.f32.gmra.mrb[94].mxu1 %v7421_v28  ;;  %215 = vbcast.lane.b32.xlu1 %v201_v59, 280 }
 0x146   :  { %1933 = vmatprep.mubr.f32.mxu1 %v7423_v38  ;;  %4171 = vmatmul.mubr.f32.gmra.mrb[28].mxu0 %v7424_v63 }
 0x147   :  { %4595 = vmatpush3.bf16.msk.msra.mxu0 %vm7420_vm9, %v7095_v51  ;;  %4173 = vmatprep.mubr.f32.mxu0 %v7425_v16 }
 0x148   :  { %4597 = vmatprep.subr.msk.bf16.mxu0 %vm7348_vm8, %v7095_v51  ;;  %222 = vbcast.lane.b32.xlu0 %v220_v22, 256 }
 0x149   :  { %1935 = vmatmul.mubr.f32.vlgmr.msra.gmra.mrb[96].mxu1 %v7427_v56  ;;  %226 = vbcast.lane.b32.xlu1 %v220_v22, 264  ;;  %v7453_v56 = vld [vmem:[#allocation102_spill] sm:$0xff] }
 0x14a   :  { %1940 = vmatprep.mubr.f32.mxu1 %v7428_v43  ;;  %4174 = vmatmul.mubr.f32.gmra.mrb[30].mxu0 %v7429_v24  ;;  %v3388_v58 = vpop.f32.mrb[0].mxu1 }
 0x14b   :  { %4599 = vmatpush3.bf16.msk.msra.mxu0 %vm7348_vm8, %v7095_v51  ;;  %4176 = vmatprep.mubr.f32.mxu0 %v7430_v23  ;;  %v3389_v44 = vpop.f32.mrb[1].mxu1 }
 0x14c   :  { %4601 = vmatprep.subr.msk.bf16.mxu0 %vm7355_vm12, %v7095_v51  ;;  %230 = vbcast.lane.b32.xlu0 %v220_v22, 272 }
 0x14d   :  { %1942 = vmatmul.mubr.f32.gmra.mrb[98].mxu1 %v7432_v42  ;;  %234 = vbcast.lane.b32.xlu1 %v220_v22, 280  ;;  %v3660_v61 = vpop.f32.mrb[0].mxu0  ;;  %v7452_v22 = vld [vmem:[#allocation18_spill] sm:$0xff] }
 0x14e   :  { %1947 = vmatprep.mubr.f32.mxu1 %v7433_v53  ;;  %4177 = vmatmul.mubr.f32.gmra.mrb[32].mxu0 %v7434_v3  ;;  %v3661_v17 = vpop.f32.mrb[1].mxu0 }
 0x14f   :  { %4603 = vmatpush3.bf16.msk.msra.mxu0 %vm7355_vm12, %v7095_v51  ;;  %4179 = vmatprep.mubr.f32.mxu0 %v7435_v50  ;;  %v6530_v46 = vadd.f32 %v3661_v17, %v3660_v61 }
 0x150   :  { %4605 = vmatprep.subr.msk.bf16.mxu0 %vm7359_vm7, %v7095_v51  ;;  %241 = vbcast.lane.b32.xlu0 %v239_v2, 256  ;;  %v3391_v10 = vpop.f32.mrb[2].mxu1 }
 0x151   :  { %1949 = vmatmul.mubr.f32.gmra.mrb[100].mxu1 %v7436_v5  ;;  %245 = vbcast.lane.b32.xlu1 %v239_v2, 264  ;;  %v3392_v40 = vpop.f32.mrb[3].mxu1 }
 0x152   :  { %1954 = vmatprep.mubr.f32.mxu1 %v7437_v21  ;;  %4180 = vmatmul.mubr.f32.gmra.mrb[34].mxu0 %v7438_v62  ;;  %v6535_v35 = vadd.f32 %v3392_v40, %v3391_v10  ;;  %v3663_v33 = vpop.f32.mrb[2].mxu0 }
 0x153   :  { %4607 = vmatpush3.bf16.msk.msra.mxu0 %vm7359_vm7, %v7095_v51  ;;  %4214 = vmatprep.mubr.f32.mxu0 %v5829_v27  ;;  %v6520_v27 = vadd.f32 %v3389_v44, %v3388_v58  ;;  %v3664_v49 = vpop.f32.mrb[3].mxu0 }
 0x154   :  { %4609 = vmatprep.subr.msk.bf16.mxu0 %vm5810_vm2, %v7095_v51  ;;  %249 = vbcast.lane.b32.xlu0 %v239_v2, 272  ;;  %v6538_v47 = vadd.f32 %v3664_v49, %v3663_v33 }
 0x155   :  { %1956 = vmatmul.mubr.f32.gmra.mrb[102].mxu1 %v7439_v55  ;;  %253 = vbcast.lane.b32.xlu1 %v239_v2, 280 }
 0x156   :  { %1961 = vmatprep.mubr.f32.mxu1 %v7440_v57  ;;  %v3394_v6 = vpop.f32.mrb[4].mxu1  ;;  %v3666_v36 = vpop.f32.mrb[4].mxu0 }
 0x157   :  { %4611 = vmatpush3.bf16.msk.msra.mxu0 %vm5810_vm2, %v7095_v51  ;;  %v3395_v29 = vpop.f32.mrb[5].mxu1  ;;  %v3667_v32 = vpop.f32.mrb[5].mxu0 }
 0x158   :  { %4613 = vmatprep.subr.msk.bf16.mxu0 %vm5845_vm0, %v7095_v51  ;;  %260 = vbcast.lane.b32.xlu0 %v258_v37, 256  ;;  %v6543_v12 = vadd.f32 %v3395_v29, %v3394_v6  ;;  %v6547_v48 = vadd.f32 %v3667_v32, %v3666_v36 }
 0x159   :  { %1963 = vmatmul.mubr.f32.gmra.mrb[104].mxu1 %v7441_v9  ;;  %264 = vbcast.lane.b32.xlu1 %v258_v37, 264 }
 0x15a   :  { %1968 = vmatprep.mubr.f32.mxu1 %v7442_v8  ;;  %v3397_v11 = vpop.f32.mrb[6].mxu1  ;;  %v3669_v34 = vpop.f32.mrb[6].mxu0 }
 0x15b   :  { %4615 = vmatpush3.bf16.msk.msra.mxu0 %vm5845_vm0, %v7095_v51  ;;  %v7445_v51 = vld [vmem:[#allocation88_spill] sm:$0xff]  ;;  %v3398_v59 = vpop.f32.mrb[7].mxu1  ;;  %v3670_v18 = vpop.f32.mrb[7].mxu0 }
 0x15c   :  { %268 = vbcast.lane.b32.xlu0 %v258_v37, 272  ;;  %v6555_v39 = vadd.f32 %v3670_v18, %v3669_v34 }
 0x15d   :  { %1970 = vmatmul.mubr.f32.gmra.mrb[106].mxu1 %v7443_v31  ;;  %272 = vbcast.lane.b32.xlu1 %v258_v37, 280 }
 0x15e   :  { %4215 = vmatmul.mubr.f32.vlgmr.msra.gmra.mrb[24].mxu0 %v7407_v25  ;;  %1975 = vmatprep.mubr.f32.mxu1 %v7444_v15  ;;  %v6551_v25 = vadd.f32 %v3398_v59, %v3397_v11 }
 0x15f   :  { %4217 = vmatprep.mubr.f32.mxu0 %v7410_v26  ;;  %v7449_v26 = vld [vmem:[#allocation97_spill] sm:$0xff] }
 0x160   :  { %v3400_v19 = vpop.f32.mrb[8].mxu1 }
 0x161   :  { %1977 = vmatmul.mubr.f32.gmra.mrb[108].mxu1 %v7445_v51  ;;  %v3401_v14 = vpop.f32.mrb[9].mxu1 }
 0x162   :  { %4218 = vmatmul.mubr.f32.gmra.mrb[26].mxu0 %v7417_v4  ;;  %1982 = vmatprep.mubr.f32.mxu1 %v7446_v7  ;;  %v6559_v41 = vadd.f32 %v3401_v14, %v3400_v19  ;;  %v3672_v4 = vpop.f32.mrb[8].mxu0  ;;  %v6600_v19 = vpop.permute.xlu1 %72 }
 0x163   :  { %4220 = vmatprep.mubr.f32.mxu0 %v7418_v60  ;;  %v3673_v60 = vpop.f32.mrb[9].mxu0 }
 0x164   :  { %v6563_v1 = vadd.f32 %v3673_v60, %v3672_v4 }
 0x165   :  { %1984 = vmatmul.mubr.f32.gmra.mrb[110].mxu1 %v7447_v20  ;;  %v65_v20 = vpop.permute.xlu0 %64 }
 0x166   :  { %4221 = vmatmul.mubr.f32.gmra.mrb[28].mxu0 %v7424_v63  ;;  %1989 = vmatprep.mubr.f32.mxu1 %v7448_v30  ;;  %v3403_v28 = vpop.f32.mrb[10].mxu1 }
 0x167   :  { %4223 = vmatprep.mubr.f32.mxu0 %v7425_v16  ;;  %v3404_v38 = vpop.f32.mrb[11].mxu1  ;;  %v3675_v16 = vpop.f32.mrb[10].mxu0 }
 0x168   :  { %v6567_v63 = vadd.f32 %v3404_v38, %v3403_v28  ;;  %v3676_v0 = vpop.f32.mrb[11].mxu0 }
 0x169   :  { %1991 = vmatmul.mubr.f32.gmra.mrb[112].mxu1 %v7449_v26  ;;  %v3678_v2 = vpop.f32.mrb[12].mxu0  ;;  %v69_v14 = vpop.permute.xlu0 %68 }
 0x16a   :  { %4224 = vmatmul.mubr.f32.gmra.mrb[30].mxu0 %v7429_v24  ;;  %1996 = vmatprep.mubr.f32.mxu1 %v7450_v52  ;;  %v3406_v43 = vpop.f32.mrb[12].mxu1  ;;  %v6571_v24 = vadd.f32 %v3676_v0, %v3675_v16  ;;  %v3679_v53 = vpop.f32.mrb[13].mxu0 }
 0x16b   :  { %4226 = vmatprep.mubr.f32.mxu0 %v7430_v23  ;;  %v7454_v23 = vld [vmem:[#allocation104_spill] sm:$0xff]  ;;  %v3407_v13 = vpop.f32.mrb[13].mxu1  ;;  %v6578_v5 = vadd.f32 %v3679_v53, %v3678_v2  ;;  %v3681_v55 = vpop.f32.mrb[14].mxu0 }
 0x16c   :  { %v6575_v42 = vadd.f32 %v3407_v13, %v3406_v43  ;;  %v3682_v37 = vpop.f32.mrb[15].mxu0 }
 0x16d   :  { %1998 = vmatmul.mubr.f32.gmra.mrb[114].mxu1 %v7451_v45  ;;  %v6582_v57 = vadd.f32 %v3682_v37, %v3681_v55  ;;  %v6607_v0 = vpop.permute.xlu0 %83 }
 0x16e   :  { %4227 = vmatmul.mubr.f32.gmra.mrb[32].mxu0 %v7434_v3  ;;  %2003 = vmatprep.mubr.f32.mxu1 %v7452_v22  ;;  %v7455_v3 = vld [vmem:[#allocation105_spill] sm:$0xff]  ;;  %v6605_v22 = vpop.permute.xlu1 %76 }
 0x16f   :  { %4229 = vmatprep.mubr.f32.mxu0 %v7435_v50 }
 0x171   :  { %2005 = vmatmul.mubr.f32.gmra.mrb[116].mxu1 %v7453_v56 }
 0x172   :  { %4230 = vmatmul.mubr.f32.gmra.mrb[34].mxu0 %v7438_v62  ;;  %2010 = vmatprep.mubr.f32.mxu1 %v7454_v23  ;;  %v3409_v50 = vpop.f32.mrb[14].mxu1  ;;  %v3684_v62 = vpop.f32.mrb[16].mxu0 }
 0x173   :  { %v3410_v21 = vpop.f32.mrb[15].mxu1  ;;  %v3685_v9 = vpop.f32.mrb[17].mxu0 }
 0x174   :  { %v6580_v58 = vadd.f32 %v3410_v21, %v3409_v50  ;;  %v6584_v8 = vadd.f32 %v3685_v9, %v3684_v62  ;;  %v3687_v10 = vpop.f32.mrb[18].mxu0  ;;  %v6612_v2 = vpop.permute.xlu1 %87 }
 0x175   :  { %2012 = vmatmul.mubr.f32.gmra.mrb[118].mxu1 %v7455_v3  ;;  %v3688_v40 = vpop.f32.mrb[19].mxu0  ;;  %v6617_v3 = vpop.permute.xlu0 %91 }
 0x176   :  { %v6588_v33 = vadd.f32 %v3688_v40, %v3687_v10 }
 0x178   :  { %v3412_v44 = vpop.f32.mrb[16].mxu1  ;;  %v6622_v62 = vpop.permute.xlu1 %95 }
 0x179   :  { %v3413_v61 = vpop.f32.mrb[17].mxu1  ;;  %v3690_v6 = vpop.f32.mrb[20].mxu0 }
 0x17a   :  { %v6586_v17 = vadd.f32 %v3413_v61, %v3412_v44  ;;  %v3691_v29 = vpop.f32.mrb[21].mxu0 }
 0x17b   :  { %v6594_v32 = vadd.f32 %v3691_v29, %v3690_v6 }
 0x17c   :  { %v3415_v31 = vpop.f32.mrb[18].mxu1 }
 0x17d   :  { %v3416_v15 = vpop.f32.mrb[19].mxu1  ;;  %v3693_v30 = vpop.f32.mrb[22].mxu0 }
 0x17e   :  { %v6590_v49 = vadd.f32 %v3416_v15, %v3415_v31  ;;  %v3694_v34 = vpop.f32.mrb[23].mxu0 }
 0x17f   :  { %v6598_v26 = vadd.f32 %v3694_v34, %v3693_v30 }
 0x182   :  { %v3418_v51 = vpop.f32.mrb[20].mxu1 }
 0x183   :  { %v3419_v7 = vpop.f32.mrb[21].mxu1 }
 0x184   :  { %v6592_v36 = vadd.f32 %v3419_v7, %v3418_v51  ;;  %v3162_v7 = vld.sshfl [vmem:[#allocation2] sm:$0x33 pattern:$0x75316420] }
 0x186   :  { %v6624_v9 = vpop.permute.xlu0 %102 }
 0x187   :  { %v6629_v40 = vpop.permute.xlu1 %106 }
 0x188   :  { %v3421_v11 = vpop.f32.mrb[22].mxu1 }
 0x189   :  { %v3422_v59 = vpop.f32.mrb[23].mxu1 }
 0x18a   :  { %v6596_v18 = vadd.f32 %v3422_v59, %v3421_v11  ;;  %v6634_v51 = vpop.permute.xlu0 %110 }
 0x18b   :  { %v6640_v34 = vpop.permute.xlu1 %114 }
 0x18c   :  { %v3456_v52 = vpop.f32.mrb[24].mxu1 }
 0x18d   :  { %v3457_v4 = vpop.f32.mrb[25].mxu1 }
 0x18e   :  { %v3458_v60 = vadd.f32 %v3457_v4, %v3456_v52 }
 0x190   :  { %v6603_v45 = vadd.f32 %v3458_v60, %v6520_v27  ;;  %v3459_v28 = vpop.f32.mrb[26].mxu1 }
 0x191   :  { %v3460_v38 = vpop.f32.mrb[27].mxu1 }
 0x192   :  { %v3461_v16 = vadd.f32 %v3460_v38, %v3459_v28 }
 0x194   :  { %v6610_v56 = vadd.f32 %v3461_v16, %v6535_v35  ;;  %v3462_v43 = vpop.f32.mrb[28].mxu1  ;;  %v144_v16 = vcombine.high %v3162_v7, %v3162_v7 }
 0x195   :  { %v3463_v23 = vpop.f32.mrb[29].mxu1 }
 0x196   :  { %v3464_v13 = vadd.f32 %v3463_v23, %v3462_v43 }
 0x198   :  { %v6615_v53 = vadd.f32 %v3464_v13, %v6543_v12  ;;  %v3465_v27 = vpop.f32.mrb[30].mxu1 }
 0x199   :  { %v3466_v50 = vpop.f32.mrb[31].mxu1 }
 0x19a   :  { %v3467_v21 = vadd.f32 %v3466_v50, %v3465_v27 }
 0x19c   :  { %v6620_v55 = vadd.f32 %v3467_v21, %v6551_v25  ;;  %v3468_v37 = vpop.f32.mrb[32].mxu1 }
 0x19d   :  { %v3469_v35 = vpop.f32.mrb[33].mxu1 }
 0x19e   :  { %v3470_v44 = vadd.f32 %v3469_v35, %v3468_v37 }
 0x1a0   :  { %v6627_v61 = vadd.f32 %v3470_v44, %v6559_v41  ;;  %v3471_v12 = vpop.f32.mrb[34].mxu1  ;;  %v7456_v41 = vld [vmem:[#allocation14_spill] sm:$0xff] }
 0x1a1   :  { %v3472_v10 = vpop.f32.mrb[35].mxu1  ;;  %v151_v59 = vrot.slane %v3162_v7, %v7456_v41  ;;  %v158_v37 = vrot.slane %v144_v16, %v7456_v41 }
 0x1a2   :  { %v3473_v31 = vadd.f32 %v3472_v10, %v3471_v12 }
 0x1a3   :  { %v164_v38 = vrot.slane %v151_v59, %v7406_v54  ;;  %v168_v7 = vrot.slane %v158_v37, %v7406_v54  ;;  %v159_v16 = vcombine.high %v151_v59, %v151_v59 }
 0x1a4   :  { %v6632_v15 = vadd.f32 %v3473_v31, %v6567_v63  ;;  %v3474_v25 = vpop.f32.mrb[36].mxu1 }
 0x1a5   :  { %v3475_v6 = vpop.f32.mrb[37].mxu1  ;;  %v181_v21 = vmul.f32 %v164_v38, %v65_v20  ;;  %v182_v12 = vmul.f32 %v164_v38, %v69_v14  ;;  %v184_v41 = vmul.f32 %v164_v38, %v6605_v22 }
 0x1a6   :  { %v3476_v29 = vadd.f32 %v3475_v6, %v3474_v25  ;;  %v183_v6 = vmul.f32 %v164_v38, %v6600_v19 }
 0x1a8   :  { %v6637_v11 = vadd.f32 %v3476_v29, %v6575_v42  ;;  %v3477_v30 = vpop.f32.mrb[38].mxu1  ;;  %v6642_v60 = vpop.permute.xlu0 %121 }
 0x1a9   :  { %v3478_v52 = vpop.f32.mrb[39].mxu1 }
 0x1aa   :  { %v3479_v4 = vadd.f32 %v3478_v52, %v3477_v30  ;;  %v6648_v43 = vpop.permute.xlu1 %125 }
 0x1ac   :  { %v6645_v63 = vadd.f32 %v3479_v4, %v6580_v58  ;;  %v3480_v28 = vpop.f32.mrb[40].mxu1  ;;  %v6650_v13 = vpop.permute.xlu0 %129 }
 0x1ad   :  { %v3481_v42 = vpop.f32.mrb[41].mxu1 }
 0x1ae   :  { %v3482_v23 = vadd.f32 %v3481_v42, %v3480_v28  ;;  %v6656_v44 = vpop.permute.xlu1 %133 }
 0x1b0   :  { %v6653_v27 = vadd.f32 %v3482_v23, %v6586_v17  ;;  %v3483_v50 = vpop.f32.mrb[42].mxu1 }
 0x1b1   :  { %v3484_v35 = vpop.f32.mrb[43].mxu1 }
 0x1b2   :  { %v3485_v58 = vadd.f32 %v3484_v35, %v3483_v50  ;;  %v204_v10 = vpop.permute.xlu0 %203 }
 0x1b3   :  { %v274_v17 = vadd.f32 %v204_v10, %v181_v21  ;;  %v208_v20 = vpop.permute.xlu1 %207  ;;  %v186_v21 = vmul.f32 %v168_v7, %v6612_v2 }
 0x1b4   :  { %v6659_v31 = vadd.f32 %v3485_v58, %v6590_v49  ;;  %v3486_v25 = vpop.f32.mrb[44].mxu1  ;;  %v275_v52 = vadd.f32 %v208_v20, %v182_v12  ;;  %v185_v49 = vmul.f32 %v168_v7, %v6607_v0  ;;  %v172_v12 = vrot.slane %v159_v16, %v7406_v54 }
 0x1b5   :  { %v3487_v29 = vpop.f32.mrb[45].mxu1  ;;  %290 = vst [vmem:[#allocation8] sm:$0xff] %v274_v17  ;;  %v160_v20 = vcombine.high %v158_v37, %v158_v37 }
 0x1b6   :  { %v3488_v30 = vadd.f32 %v3487_v29, %v3486_v25  ;;  %v212_v4 = vpop.permute.xlu0 %211  ;;  %291 = vst [vmem:[#allocation8 + $0x8] sm:$0xff] %v275_v52 }
 0x1b7   :  { %v276_v42 = vadd.f32 %v212_v4, %v183_v6  ;;  %v216_v50 = vpop.permute.xlu1 %215  ;;  %v188_v6 = vmul.f32 %v168_v7, %v6622_v62 }
 0x1b8   :  { %v6665_v14 = vadd.f32 %v3488_v30, %v6592_v36  ;;  %v3489_v28 = vpop.f32.mrb[46].mxu1  ;;  %v277_v35 = vadd.f32 %v216_v50, %v184_v41  ;;  %v187_v36 = vmul.f32 %v168_v7, %v6617_v3  ;;  %v189_v30 = vmul.f32 %v172_v12, %v6624_v9 }
 0x1b9   :  { %v3490_v19 = vpop.f32.mrb[47].mxu1  ;;  %292 = vst [vmem:[#allocation8 + $0x10] sm:$0xff] %v276_v42  ;;  %v176_v42 = vrot.slane %v160_v20, %v7406_v54  ;;  %v192_v50 = vmul.f32 %v172_v12, %v6640_v34 }
 0x1ba   :  { %v3491_v23 = vadd.f32 %v3490_v19, %v3489_v28  ;;  %v223_v58 = vpop.permute.xlu0 %222  ;;  %293 = vst [vmem:[#allocation8 + $0x18] sm:$0xff] %v277_v35  ;;  %v190_v28 = vmul.f32 %v172_v12, %v6629_v40 }
 0x1bb   :  { %v278_v0 = vadd.f32 %v223_v58, %v185_v49  ;;  %v227_v25 = vpop.permute.xlu1 %226  ;;  %v193_v58 = vmul.f32 %v176_v42, %v6642_v60 }
 0x1bc   :  { %v6670_v22 = vadd.f32 %v3491_v23, %v6596_v18  ;;  %v3524_v38 = vpop.f32.mrb[48].mxu1  ;;  %v279_v17 = vadd.f32 %v227_v25, %v186_v21 }
 0x1bd   :  { %v3525_v59 = vpop.f32.mrb[49].mxu1  ;;  %294 = vst [vmem:[#allocation8 + $0x20] sm:$0xff] %v278_v0  ;;  %v194_v0 = vmul.f32 %v176_v42, %v6648_v43 }
 0x1be   :  { %v3526_v10 = vadd.f32 %v3525_v59, %v3524_v38  ;;  %v231_v2 = vpop.permute.xlu0 %230  ;;  %295 = vst [vmem:[#allocation8 + $0x28] sm:$0xff] %v279_v17 }
 0x1bf   :  { %v280_v3 = vadd.f32 %v231_v2, %v187_v36  ;;  %v235_v4 = vpop.permute.xlu1 %234  ;;  %v196_v2 = vmul.f32 %v176_v42, %v6656_v44 }
 0x1c0   :  { %v6676_v29 = vadd.f32 %v3526_v10, %v6603_v45  ;;  %v3527_v18 = vpop.f32.mrb[50].mxu1  ;;  %v281_v49 = vadd.f32 %v235_v4, %v188_v6  ;;  %v191_v45 = vmul.f32 %v172_v12, %v6634_v51 }
 0x1c1   :  { %v3528_v41 = vpop.f32.mrb[51].mxu1  ;;  %296 = vst [vmem:[#allocation8 + $0x30] sm:$0xff] %v280_v3 }
 0x1c2   :  { %v3529_v52 = vadd.f32 %v3528_v41, %v3527_v18  ;;  %v242_v16 = vpop.permute.xlu0 %241  ;;  %297 = vst [vmem:[#allocation8 + $0x38] sm:$0xff] %v281_v49 }
 0x1c3   :  { %v282_v9 = vadd.f32 %v242_v16, %v189_v30  ;;  %v246_v23 = vpop.permute.xlu1 %245 }
 0x1c4   :  { %v6681_v62 = vadd.f32 %v3529_v52, %v6610_v56  ;;  %v3530_v7 = vpop.f32.mrb[52].mxu1  ;;  %v283_v21 = vadd.f32 %v246_v23, %v190_v28 }
 0x1c5   :  { %v3531_v37 = vpop.f32.mrb[53].mxu1  ;;  %298 = vst [vmem:[#allocation8 + $0x40] sm:$0xff] %v282_v9 }
 0x1c6   :  { %v3532_v19 = vadd.f32 %v3531_v37, %v3530_v7  ;;  %v250_v40 = vpop.permute.xlu0 %249  ;;  %299 = vst [vmem:[#allocation8 + $0x48] sm:$0xff] %v283_v21 }
 0x1c7   :  { %v284_v38 = vadd.f32 %v250_v40, %v191_v45  ;;  %v254_v36 = vpop.permute.xlu1 %253 }
 0x1c8   :  { %v6687_v35 = vadd.f32 %v3532_v19, %v6615_v53  ;;  %v3533_v56 = vpop.f32.mrb[54].mxu1  ;;  %v285_v59 = vadd.f32 %v254_v36, %v192_v50  ;;  %v195_v53 = vmul.f32 %v176_v42, %v6650_v13 }
 0x1c9   :  { %v3534_v51 = vpop.f32.mrb[55].mxu1  ;;  %300 = vst [vmem:[#allocation8 + $0x50] sm:$0xff] %v284_v38 }
 0x1ca   :  { %v3535_v54 = vadd.f32 %v3534_v51, %v3533_v56  ;;  %v261_v10 = vpop.permute.xlu0 %260  ;;  %301 = vst [vmem:[#allocation8 + $0x58] sm:$0xff] %v285_v59 }
 0x1cb   :  { %v286_v25 = vadd.f32 %v261_v10, %v193_v58  ;;  %v265_v17 = vpop.permute.xlu1 %264 }
 0x1cc   :  { %v6692_v34 = vadd.f32 %v3535_v54, %v6620_v55  ;;  %v3536_v12 = vpop.f32.mrb[56].mxu1  ;;  %v287_v18 = vadd.f32 %v265_v17, %v194_v0 }
 0x1cd   :  { %v3537_v6 = vpop.f32.mrb[57].mxu1  ;;  %302 = vst [vmem:[#allocation8 + $0x60] sm:$0xff] %v286_v25 }
 0x1ce   :  { %v3538_v60 = vadd.f32 %v3537_v6, %v3536_v12  ;;  %v269_v30 = vpop.permute.xlu0 %268  ;;  %303 = vst [vmem:[#allocation8 + $0x68] sm:$0xff] %v287_v18 }
 0x1cf   :  { %v288_v3 = vadd.f32 %v269_v30, %v195_v53  ;;  %v273_v52 = vpop.permute.xlu1 %272 }
 0x1d0   :  { %v1296_v43 = vadd.f32 %v3538_v60, %v6627_v61  ;;  %v3539_v20 = vpop.f32.mrb[58].mxu1  ;;  %v289_v13 = vadd.f32 %v273_v52, %v196_v2 }
 0x1d1   :  { %v3540_v41 = vpop.f32.mrb[59].mxu1  ;;  %304 = vst [vmem:[#allocation8 + $0x70] sm:$0xff] %v288_v3 }
 0x1d2   :  { %v3541_v55 = vadd.f32 %v3540_v41, %v3539_v20  ;;  %305 = vst [vmem:[#allocation8 + $0x78] sm:$0xff] %v289_v13 }
 0x1d4   :  { %v1305_v4 = vadd.f32 %v3541_v55, %v6632_v15  ;;  %v3542_v28 = vpop.f32.mrb[60].mxu1 }
 0x1d5   :  { %v3543_v49 = vpop.f32.mrb[61].mxu1 }
 0x1d6   :  { %v3544_v16 = vadd.f32 %v3543_v49, %v3542_v28 }
 0x1d8   :  { %v1314_v44 = vadd.f32 %v3544_v16, %v6637_v11  ;;  %v3545_v7 = vpop.f32.mrb[62].mxu1 }
 0x1d9   :  { %v3546_v45 = vpop.f32.mrb[63].mxu1 }
 0x1da   :  { %v3547_v42 = vadd.f32 %v3546_v45, %v3545_v7 }
 0x1dc   :  { %v1323_v61 = vadd.f32 %v3547_v42, %v6645_v63  ;;  %v3548_v9 = vpop.f32.mrb[64].mxu1 }
 0x1dd   :  { %v3549_v37 = vpop.f32.mrb[65].mxu1 }
 0x1de   :  { %v3550_v19 = vadd.f32 %v3549_v37, %v3548_v9 }
 0x1e0   :  { %v1332_v23 = vadd.f32 %v3550_v19, %v6653_v27  ;;  %v3551_v50 = vpop.f32.mrb[66].mxu1 }
 0x1e1   :  { %v3552_v21 = vpop.f32.mrb[67].mxu1 }
 0x1e2   :  { %v3553_v40 = vadd.f32 %v3552_v21, %v3551_v50 }
 0x1e4   :  { %v1341_v15 = vadd.f32 %v3553_v40, %v6659_v31  ;;  %v3554_v56 = vpop.f32.mrb[68].mxu1 }
 0x1e5   :  { %v3555_v58 = vpop.f32.mrb[69].mxu1 }
 0x1e6   :  { %v3556_v38 = vadd.f32 %v3555_v58, %v3554_v56 }
 0x1e8   :  { %v1350_v11 = vadd.f32 %v3556_v38, %v6665_v14  ;;  %v3557_v51 = vpop.f32.mrb[70].mxu1 }
 0x1e9   :  { %v3558_v54 = vpop.f32.mrb[71].mxu1 }
 0x1ea   :  { %v3559_v36 = vadd.f32 %v3558_v54, %v3557_v51 }
 0x1ec   :  { %v1359_v63 = vadd.f32 %v3559_v36, %v6670_v22  ;;  %v3592_v0 = vpop.f32.mrb[72].mxu1 }
 0x1ed   :  { %v3593_v59 = vpop.f32.mrb[73].mxu1 }
 0x1ee   :  { %v3594_v10 = vadd.f32 %v3593_v59, %v3592_v0 }
 0x1f0   :  { %v1467_v27 = vadd.f32 %v3594_v10, %v6676_v29  ;;  %v3595_v12 = vpop.f32.mrb[74].mxu1 }
 0x1f1   :  { %v3596_v53 = vpop.f32.mrb[75].mxu1 }
 0x1f2   :  { %v3597_v25 = vadd.f32 %v3596_v53, %v3595_v12  ;;  %v1756_v31 = vadd.f32 %v6530_v46, %v1467_v27 }
 0x1f4   :  { %v1478_v6 = vadd.f32 %v3597_v25, %v6681_v62  ;;  %v3598_v60 = vpop.f32.mrb[76].mxu1 }
 0x1f5   :  { %v3599_v17 = vpop.f32.mrb[77].mxu1 }
 0x1f6   :  { %v3600_v14 = vadd.f32 %v3599_v17, %v3598_v60  ;;  %v1763_v2 = vadd.f32 %v6538_v47, %v1478_v6 }
 0x1f8   :  { %v1489_v18 = vadd.f32 %v3600_v14, %v6687_v35  ;;  %v3601_v22 = vpop.f32.mrb[78].mxu1 }
 0x1f9   :  { %v3602_v30 = vpop.f32.mrb[79].mxu1 }
 0x1fa   :  { %v3603_v20 = vadd.f32 %v3602_v30, %v3601_v22  ;;  %v1770_v3 = vadd.f32 %v6547_v48, %v1489_v18 }
 0x1fc   :  { %v1500_v29 = vadd.f32 %v3603_v20, %v6692_v34  ;;  %v3604_v41 = vpop.f32.mrb[80].mxu1 }
 0x1fd   :  { %v3605_v55 = vpop.f32.mrb[81].mxu1 }
 0x1fe   :  { %v3606_v52 = vadd.f32 %v3605_v55, %v3604_v41  ;;  %v1777_v46 = vadd.f32 %v6555_v39, %v1500_v29 }
 0x200   :  { %v1511_v62 = vadd.f32 %v3606_v52, %v1296_v43  ;;  %v3607_v13 = vpop.f32.mrb[82].mxu1 }
 0x201   :  { %v3608_v28 = vpop.f32.mrb[83].mxu1 }
 0x202   :  { %v3609_v49 = vadd.f32 %v3608_v28, %v3607_v13  ;;  %v1784_v47 = vadd.f32 %v6563_v1, %v1511_v62 }
 0x204   :  { %v1522_v16 = vadd.f32 %v3609_v49, %v1305_v4  ;;  %v3610_v35 = vpop.f32.mrb[84].mxu1 }
 0x205   :  { %v3611_v7 = vpop.f32.mrb[85].mxu1 }
 0x206   :  { %v3612_v45 = vadd.f32 %v3611_v7, %v3610_v35  ;;  %v1791_v42 = vadd.f32 %v6571_v24, %v1522_v16 }
 0x208   :  { %v1533_v48 = vadd.f32 %v3612_v45, %v1314_v44  ;;  %v3613_v9 = vpop.f32.mrb[86].mxu1 }
 0x209   :  { %v3614_v34 = vpop.f32.mrb[87].mxu1 }
 0x20a   :  { %v3615_v37 = vadd.f32 %v3614_v34, %v3613_v9  ;;  %v1798_v19 = vadd.f32 %v6578_v5, %v1533_v48 }
 0x20c   :  { %v1544_v50 = vadd.f32 %v3615_v37, %v1323_v61  ;;  %v3616_v39 = vpop.f32.mrb[88].mxu1 }
 0x20d   :  { %v3617_v43 = vpop.f32.mrb[89].mxu1 }
 0x20e   :  { %v3618_v21 = vadd.f32 %v3617_v43, %v3616_v39  ;;  %v6716_v40 = vadd.f32 %v6582_v57, %v1544_v50 }
 0x210   :  { %v1555_v1 = vadd.f32 %v3618_v21, %v1332_v23  ;;  %v3619_v4 = vpop.f32.mrb[90].mxu1 }
 0x211   :  { %v3620_v56 = vpop.f32.mrb[91].mxu1 }
 0x212   :  { %v3621_v58 = vadd.f32 %v3620_v56, %v3619_v4  ;;  %v6719_v38 = vadd.f32 %v6584_v8, %v1555_v1 }
 0x214   :  { %v1566_v24 = vadd.f32 %v3621_v58, %v1341_v15  ;;  %v3622_v44 = vpop.f32.mrb[92].mxu1 }
 0x215   :  { %v3623_v51 = vpop.f32.mrb[93].mxu1 }
 0x216   :  { %v3624_v54 = vadd.f32 %v3623_v51, %v3622_v44  ;;  %v6722_v5 = vadd.f32 %v6588_v33, %v1566_v24 }
 0x218   :  { %v1577_v61 = vadd.f32 %v3624_v54, %v1350_v11  ;;  %v3625_v36 = vpop.f32.mrb[94].mxu1 }
 0x219   :  { %v3626_v0 = vpop.f32.mrb[95].mxu1 }
 0x21a   :  { %v3627_v59 = vadd.f32 %v3626_v0, %v3625_v36  ;;  %v6725_v57 = vadd.f32 %v6594_v32, %v1577_v61 }
 0x21c   :  { %v1588_v23 = vadd.f32 %v3627_v59, %v1359_v63  ;;  %v3728_v10 = vpop.f32.mrb[96].mxu1 }
 0x21d   :  { %v3729_v27 = vpop.f32.mrb[97].mxu1 }
 0x21e   :  { %v3730_v12 = vadd.f32 %v3729_v27, %v3728_v10  ;;  %v6728_v8 = vadd.f32 %v6598_v26, %v1588_v23 }
 0x220   :  { %v3731_v15 = vpop.f32.mrb[98].mxu1  ;;  %v1937_v53 = vadd.f32 %v3730_v12, %v1756_v31 }
 0x221   :  { %v3732_v25 = vpop.f32.mrb[99].mxu1 }
 0x222   :  { %v3733_v6 = vadd.f32 %v3732_v25, %v3731_v15 }
 0x224   :  { %v3734_v33 = vpop.f32.mrb[100].mxu1  ;;  %v1944_v60 = vadd.f32 %v3733_v6, %v1763_v2 }
 0x225   :  { %v3735_v11 = vpop.f32.mrb[101].mxu1 }
 0x226   :  { %v3736_v17 = vadd.f32 %v3735_v11, %v3734_v33 }
 0x228   :  { %v3737_v14 = vpop.f32.mrb[102].mxu1  ;;  %v1951_v18 = vadd.f32 %v3736_v17, %v1770_v3 }
 0x229   :  { %v3738_v22 = vpop.f32.mrb[103].mxu1 }
 0x22a   :  { %v3739_v32 = vadd.f32 %v3738_v22, %v3737_v14 }
 0x22c   :  { %v3740_v30 = vpop.f32.mrb[104].mxu1  ;;  %v1958_v63 = vadd.f32 %v3739_v32, %v1777_v46 }
 0x22d   :  { %v3741_v20 = vpop.f32.mrb[105].mxu1 }
 0x22e   :  { %v3742_v29 = vadd.f32 %v3741_v20, %v3740_v30 }
 0x230   :  { %v3743_v41 = vpop.f32.mrb[106].mxu1  ;;  %v1965_v55 = vadd.f32 %v3742_v29, %v1784_v47 }
 0x231   :  { %v3744_v26 = vpop.f32.mrb[107].mxu1  ;;  %v4216_v52 = vpop.f32.mrb[24].mxu0 }
 0x232   :  { %v3745_v62 = vadd.f32 %v3744_v26, %v3743_v41  ;;  %v4616_v31 = vadd.f32 %v4216_v52, %v1944_v60  ;;  %v3061_v13 = vpop.f32.mrb[25].mxu0 }
 0x233   :  { %v4617_v28 = vadd.f32 %v3061_v13, %v1937_v53 }
 0x234   :  { %3133 = vst [vmem:[#allocation8 + $0x88] sm:$0xff] %v4616_v31  ;;  %v3746_v2 = vpop.f32.mrb[108].mxu1  ;;  %v1972_v49 = vadd.f32 %v3745_v62, %v1791_v42 }
 0x235   :  { %3132 = vst [vmem:[#allocation8 + $0x80] sm:$0xff] %v4617_v28  ;;  %v3747_v16 = vpop.f32.mrb[109].mxu1  ;;  %v4219_v3 = vpop.f32.mrb[26].mxu0 }
 0x236   :  { %v3748_v35 = vadd.f32 %v3747_v16, %v3746_v2  ;;  %v4618_v7 = vadd.f32 %v4219_v3, %v1958_v63  ;;  %v3073_v45 = vpop.f32.mrb[27].mxu0 }
 0x237   :  { %v4619_v46 = vadd.f32 %v3073_v45, %v1951_v18 }
 0x238   :  { %3135 = vst [vmem:[#allocation8 + $0x98] sm:$0xff] %v4618_v7  ;;  %v3749_v48 = vpop.f32.mrb[110].mxu1  ;;  %v1979_v9 = vadd.f32 %v3748_v35, %v1798_v19 }
 0x239   :  { %3134 = vst [vmem:[#allocation8 + $0x90] sm:$0xff] %v4619_v46  ;;  %v3750_v47 = vpop.f32.mrb[111].mxu1  ;;  %v4222_v34 = vpop.f32.mrb[28].mxu0 }
 0x23a   :  { %v3751_v37 = vadd.f32 %v3750_v47, %v3749_v48  ;;  %v4620_v50 = vadd.f32 %v4222_v34, %v1972_v49  ;;  %v3085_v39 = vpop.f32.mrb[29].mxu0 }
 0x23b   :  { %v4621_v43 = vadd.f32 %v3085_v39, %v1965_v55 }
 0x23c   :  { %3137 = vst [vmem:[#allocation8 + $0xa8] sm:$0xff] %v4620_v50  ;;  %v3752_v21 = vpop.f32.mrb[112].mxu1  ;;  %v1986_v42 = vadd.f32 %v3751_v37, %v6716_v40 }
 0x23d   :  { %3136 = vst [vmem:[#allocation8 + $0xa0] sm:$0xff] %v4621_v43  ;;  %v3753_v1 = vpop.f32.mrb[113].mxu1  ;;  %v4225_v4 = vpop.f32.mrb[30].mxu0 }
 0x23e   :  { %v3754_v56 = vadd.f32 %v3753_v1, %v3752_v21  ;;  %v4622_v58 = vadd.f32 %v4225_v4, %v1986_v42  ;;  %v3097_v24 = vpop.f32.mrb[31].mxu0 }
 0x23f   :  { %v4623_v44 = vadd.f32 %v3097_v24, %v1979_v9 }
 0x240   :  { %3139 = vst [vmem:[#allocation8 + $0xb8] sm:$0xff] %v4622_v58  ;;  %v3755_v19 = vpop.f32.mrb[114].mxu1  ;;  %v1993_v51 = vadd.f32 %v3754_v56, %v6719_v38 }
 0x241   :  { %3138 = vst [vmem:[#allocation8 + $0xb0] sm:$0xff] %v4623_v44  ;;  %v3756_v54 = vpop.f32.mrb[115].mxu1  ;;  %v4228_v61 = vpop.f32.mrb[32].mxu0 }
 0x242   :  { %v3757_v36 = vadd.f32 %v3756_v54, %v3755_v19  ;;  %v3109_v0 = vpop.f32.mrb[33].mxu0 }
 0x243   :  { %v4625_v59 = vadd.f32 %v3109_v0, %v1993_v51 }
 0x244   :  { %v2000_v23 = vadd.f32 %v3757_v36, %v6722_v5  ;;  %v3758_v40 = vpop.f32.mrb[116].mxu1 }
 0x245   :  { %3140 = vst [vmem:[#allocation8 + $0xc0] sm:$0xff] %v4625_v59  ;;  %v3759_v10 = vpop.f32.mrb[117].mxu1  ;;  %v4231_v27 = vpop.f32.mrb[34].mxu0 }
 0x246   :  { %v4624_v12 = vadd.f32 %v4228_v61, %v2000_v23  ;;  %v3760_v15 = vadd.f32 %v3759_v10, %v3758_v40  ;;  %v3121_v53 = vpop.f32.mrb[35].mxu0 }
 0x248   :  { %3141 = vst [vmem:[#allocation8 + $0xc8] sm:$0xff] %v4624_v12  ;;  %v2007_v25 = vadd.f32 %v3760_v15, %v6725_v57  ;;  %v3761_v6 = vpop.f32.mrb[118].mxu1 }
 0x249   :  { %v3762_v38 = vpop.f32.mrb[119].mxu1 }
 0x24a   :  { %v4627_v33 = vadd.f32 %v3121_v53, %v2007_v25  ;;  %v3763_v60 = vadd.f32 %v3762_v38, %v3761_v6 }
 0x24c   :  { %3142 = vst [vmem:[#allocation8 + $0xd0] sm:$0xff] %v4627_v33  ;;  %v2014_v11 = vadd.f32 %v3763_v60, %v6728_v8 }
 0x24e   :  { %v4626_v5 = vadd.f32 %v4231_v27, %v2014_v11 }
 0x250   :  { %3143 = vst [vmem:[#allocation8 + $0xd8] sm:$0xff] %v4626_v5 }
 0x251   :  { %4776 = shalt.err (!%p4773_p0)
}
 0x252   :  { %s4777_s10 = scalar_lea.hbm %s6752_s5, 3584 }
 0x253   :  { %p4778_p1 = scmp.ne.s32.totalorder %s6752_s5, %s4777_s10  ;;  %p4781_p2 = scmp.lt.u32.totalorder %s4777_s10, %s6752_s5 }
 0x255   :  { %p4783_p3 = pnand %p4781_p2, %p4778_p1 }
 0x257   :  { %4786 = shalt.err (!%p4783_p3)
}
 0x258   :  { %s4802_s1 = smov 128   ;;  %s4803_s15 = smov 8  }
 0x259   :  { %3155 = dma.vmem_to_hbm [thread:$0]  %s3150_s6, 3584, %s6752_s5, [#allocation4], %s4802_s1, %s4802_s1, %s4803_s15  }
 0x25a   :  { %4791 = dma.done.wait [#allocation4], 3584  }
 0x25b   :  { %4792 = vsyncadd [#allocation4], 4294963712 }
 0x25c   :  { %3159 = vsyncpa [#allocation3], 1 }
 0x25d   :  { %3160 = vsyncpa [#allocation6], 1 }
 0x25e   :  { %3161 = vsyncpa [#allocation4], 1 }

</bundles_post_ra>
